<compile_context>
chip_gen: v5e
topology: v5e:2x2
jax: 0.10.0
libtpu: 0.0.40
codegen_flags: <defaults>
</compile_context>

<pallas_src>
import functools
import math

import jax
import jax.numpy as jnp
from jax.experimental import pallas as pl
from jax.experimental.pallas import tpu as pltpu


def _round_up(x, m):
    return (x + m - 1) // m * m


# ----------------------------------------------------------------------------
# Pallas kernel 1: M-tiled matmul + bias (+ ReLU).  Weights/bias use constant
# index maps (kept resident), x/out tiles are pipelined across the grid.
# ----------------------------------------------------------------------------
def _matmul_bias_kernel(x_ref, w_ref, b_ref, o_ref, *, relu):
    acc = jnp.dot(x_ref[...], w_ref[...], preferred_element_type=jnp.float32)
    acc = acc + b_ref[...]
    if relu:
        acc = jnp.maximum(acc, 0.0)
    o_ref[...] = acc.astype(o_ref.dtype)


def matmul_bias_act(x, w, b2d, *, relu, out_dtype=jnp.bfloat16, max_tile_m=512):
    """(M,K) @ (K,N) + b[1,N], optional ReLU.

    M is tiled (pipelined, 'parallel' so megacore chips can shard it across
    TensorCores); K and N use full-extent blocks (K<=1568, N<=512 here), so no
    padding and no K accumulator are needed.  bf16 operands, f32 accumulate.
    """
    M, K = x.shape
    K2, N = w.shape
    assert K == K2 and b2d.shape == (1, N)
    tile_m = min(max_tile_m, _round_up(M, 8))
    grid = (pl.cdiv(M, tile_m),)
    return pl.pallas_call(
        functools.partial(_matmul_bias_kernel, relu=relu),
        out_shape=jax.ShapeDtypeStruct((M, N), out_dtype),
        grid=grid,
        in_specs=[
            pl.BlockSpec((tile_m, K), lambda i: (i, 0)),
            pl.BlockSpec((K, N), lambda i: (0, 0)),
            pl.BlockSpec((1, N), lambda i: (0, 0)),
        ],
        out_specs=pl.BlockSpec((tile_m, N), lambda i: (i, 0)),
        compiler_params=pltpu.CompilerParams(
            dimension_semantics=("parallel",)),
    )(x, w, b2d)


# ----------------------------------------------------------------------------
# Pallas kernel 2: fused fc (ReLU) + critic head in one launch, two outputs.
# The critic head is a per-row dot against a single weight row, done as a
# VPU multiply + lane reduce (avoids an N=1 matmul and an extra HBM round trip).
# ----------------------------------------------------------------------------
def _fc_value_kernel(x_ref, wfc_ref, bfc_ref, wc_ref, bc_ref, feat_ref, val_ref):
    h = jnp.dot(x_ref[...], wfc_ref[...], preferred_element_type=jnp.float32)
    h = jnp.maximum(h + bfc_ref[...], 0.0)
    feat_ref[...] = h.astype(feat_ref.dtype)
    v = jnp.sum(h * wc_ref[...], axis=-1, keepdims=True) + bc_ref[...]
    val_ref[...] = v.astype(val_ref.dtype)


def fc_value(x, wfc, bfc, wc_row, bc, *, max_tile_b=256):
    B, K = x.shape
    K2, H = wfc.shape
    assert K == K2 and wc_row.shape == (1, H) and bc.shape == (1, 1)
    tile_b = min(max_tile_b, _round_up(B, 8))
    grid = (pl.cdiv(B, tile_b),)
    feat, val = pl.pallas_call(
        _fc_value_kernel,
        out_shape=(jax.ShapeDtypeStruct((B, H), jnp.float32),
                   jax.ShapeDtypeStruct((B, 1), jnp.float32)),
        grid=grid,
        in_specs=[
            pl.BlockSpec((tile_b, K), lambda i: (i, 0)),
            pl.BlockSpec((K, H), lambda i: (0, 0)),
            pl.BlockSpec((1, H), lambda i: (0, 0)),
            pl.BlockSpec((1, H), lambda i: (0, 0)),
            pl.BlockSpec((1, 1), lambda i: (0, 0)),
        ],
        out_specs=(pl.BlockSpec((tile_b, H), lambda i: (i, 0)),
                   pl.BlockSpec((tile_b, 1), lambda i: (i, 0))),
        compiler_params=pltpu.CompilerParams(
            dimension_semantics=("parallel",)),
    )(x, wfc, bfc, wc_row, bc)
    return feat, val


# ----------------------------------------------------------------------------
# Conv2d (valid padding, square kernel) via im2col + Pallas matmul kernel.
# TODO(synk): fusing im2col into the Pallas conv kernel (halo DMA + in-kernel
# patch build) would remove the k^2/stride^2 HBM inflation; left as XLA glue
# (bf16, strided slices) here.
# ----------------------------------------------------------------------------
def _im2col_nhwc(x, k, stride):
    B, H, W, C = x.shape
    Ho = (H - k) // stride + 1
    Wo = (W - k) // stride + 1
    cols = []
    for kh in range(k):
        for kw in range(k):
            cols.append(x[:, kh:kh + stride * (Ho - 1) + 1:stride,
                            kw:kw + stride * (Wo - 1) + 1:stride, :])
    patches = jnp.stack(cols, axis=3)  # (B, Ho, Wo, k*k, C) — (kh, kw, c) order
    return patches.reshape(B * Ho * Wo, k * k * C), Ho, Wo


def conv2d_relu(x_nhwc, w_mat, b2d, k, stride):
    """x: (B,H,W,Cin) bf16.  w_mat: pre-reshaped (k*k*Cin, Cout) bf16."""
    B = x_nhwc.shape[0]
    patches, Ho, Wo = _im2col_nhwc(x_nhwc, k, stride)
    y = matmul_bias_act(patches, w_mat, b2d, relu=True, out_dtype=jnp.bfloat16)
    return y.reshape(B, Ho, Wo, w_mat.shape[1])


# ----------------------------------------------------------------------------
# Deterministic parameter init (orthogonal, matching nn.init.orthogonal_) and
# one-time weight preparation (hoisted out of the per-step forward path).
# ----------------------------------------------------------------------------
def orthogonal_init(key, shape, gain=1.0):
    rows = shape[0]
    cols = int(math.prod(shape[1:]))
    a = jax.random.normal(key, (max(rows, cols), min(rows, cols)), jnp.float32)
    q, r = jnp.linalg.qr(a)
    q = q * jnp.sign(jnp.diagonal(r))
    if rows < cols:
        q = q.T
    return (gain * q[:rows, :cols]).reshape(shape).astype(jnp.float32)


def _conv_weight_matrix(w):
    """PyTorch (Cout, Cin, kH, kW) -> (kH*kW*Cin, Cout), matching im2col order."""
    co, ci, kh, kw = w.shape
    return jnp.transpose(w, (2, 3, 1, 0)).reshape(kh * kw * ci, co)


def make_cnn_base_params(key, num_inputs, hidden_size):
    relu_gain = math.sqrt(2.0)  # nn.init.calculate_gain('relu')
    k1, k2, k3, k4, k5 = jax.random.split(key, 5)
    w1 = orthogonal_init(k1, (32, num_inputs, 8, 8), relu_gain)
    w2 = orthogonal_init(k2, (64, 32, 4, 4), relu_gain)
    w3 = orthogonal_init(k3, (32, 64, 3, 3), relu_gain)
    wfc = orthogonal_init(k4, (hidden_size, 32 * 7 * 7), relu_gain)
    wc = orthogonal_init(k5, (1, hidden_size), 1.0)
    # wfc columns are in PyTorch NCHW flatten order (c*49 + h*7 + w); permute
    # to NHWC flatten order (h*7*32 + w*32 + c) so the forward needs no
    # transpose of the (B,7,7,32) activation.
    wfc_nhwc = jnp.transpose(wfc.reshape(hidden_size, 32, 7, 7),
                             (2, 3, 1, 0)).reshape(7 * 7 * 32, hidden_size)
    return {
        # /255 input scale folded into the first-layer weight.
        "w1m": (_conv_weight_matrix(w1) / 255.0).astype(jnp.bfloat16),
        "b1": jnp.zeros((1, 32), jnp.float32),
        "w2m": _conv_weight_matrix(w2).astype(jnp.bfloat16),
        "b2": jnp.zeros((1, 64), jnp.float32),
        "w3m": _conv_weight_matrix(w3).astype(jnp.bfloat16),
        "b3": jnp.zeros((1, 32), jnp.float32),
        "wfcm": wfc_nhwc.astype(jnp.bfloat16),
        "bfc": jnp.zeros((1, hidden_size), jnp.float32),
        "wc": wc.astype(jnp.float32),            # (1, hidden): critic weight row
        "bc": jnp.zeros((1, 1), jnp.float32),
    }


# ----------------------------------------------------------------------------
# CNNBase.forward (recurrent=False, so the GRU branch is skipped and rnn_hxs is
# passed through untouched).
# ----------------------------------------------------------------------------
def cnn_base_forward(params, inputs, rnn_hxs, masks):
    # inputs: NCHW, like the PyTorch module.  /255 is folded into w1m, so the
    # raw input is only cast to bf16 and laid out channels-last (single pass).
    x = jnp.transpose(inputs, (0, 2, 3, 1)).astype(jnp.bfloat16)
    B = x.shape[0]
    x = conv2d_relu(x, params["w1m"], params["b1"], 8, 4)   # (B, 20, 20, 32)
    x = conv2d_relu(x, params["w2m"], params["b2"], 4, 2)   # (B,  9,  9, 64)
    x = conv2d_relu(x, params["w3m"], params["b3"], 3, 1)   # (B,  7,  7, 32)
    # NHWC flatten; wfcm rows were pre-permuted to this order, so this matches
    # PyTorch's NCHW x.view(B, -1) @ Wfc.T exactly (up to bf16 rounding).
    x = x.reshape(B, -1)                                    # (B, 1568)
    feats, value = fc_value(x, params["wfcm"], params["bfc"],
                            params["wc"], params["bc"])
    # TODO(synk): recurrent=True GRU path (_forward_gru) not implemented; the
    # default CNNBase(recurrent=False) forward never invokes it.
    return value, feats, rnn_hxs


if __name__ == "__main__":
    # The 32*7*7 Linear forces 84x84 spatial input; keep batch/channels/hidden small.
    batch, num_inputs, hidden_size = 2, 4, 64

    key = jax.random.PRNGKey(0)
    k_params, k_inputs = jax.random.split(key)
    params = make_cnn_base_params(k_params, num_inputs, hidden_size)

    inputs = jax.random.uniform(
        k_inputs, (batch, num_inputs, 84, 84), jnp.float32, 0.0, 255.0)
    rnn_hxs = jnp.zeros((batch, 1), jnp.float32)   # recurrent_hidden_state_size == 1
    masks = jnp.ones((batch, 1), jnp.float32)

    value, features, rnn_hxs_out = jax.jit(cnn_base_forward)(
        params, inputs, rnn_hxs, masks)
    jax.block_until_ready((value, features, rnn_hxs_out))

    assert value.shape == (batch, 1)
    assert features.shape == (batch, hidden_size)
    assert rnn_hxs_out.shape == (batch, 1)
    assert value.dtype == jnp.float32 and features.dtype == jnp.float32
    print("KERNEL_OK")
</pallas_src>

<mosaic_0001>
module attributes {stable_mosaic.version = 11 : i64} {
  func.func @_matmul_bias_kernel(%arg0: i32, %arg1: memref<512x256xbf16, #tpu.memory_space<vmem>>, %arg2: memref<256x32xbf16, #tpu.memory_space<vmem>>, %arg3: memref<1x32xf32, #tpu.memory_space<vmem>>, %arg4: memref<512x32xbf16, #tpu.memory_space<vmem>>) attributes {dimension_semantics = [#tpu.dimension_semantics<parallel>], iteration_bounds = array<i64: 2>, scalar_prefetch = 0 : i64, scratch_operands = 0 : i64, tpu.core_type = #tpu.core_type<tc>, window_params = [{transform_indices = @transform_0, window_bounds = array<i64: 512, 256>}, {pipeline_mode = #tpu.pipeline_mode<synchronous>, transform_indices = @transform_1, window_bounds = array<i64: 256, 32>}, {pipeline_mode = #tpu.pipeline_mode<synchronous>, transform_indices = @transform_2, window_bounds = array<i64: 1, 32>}, {transform_indices = @transform_3, window_bounds = array<i64: 512, 32>}]} {
    %c0 = arith.constant 0 : index
    %c0_0 = arith.constant 0 : index
    %0 = vector.load %arg1[%c0, %c0_0] : memref<512x256xbf16, #tpu.memory_space<vmem>>, vector<512x256xbf16>
    %c0_1 = arith.constant 0 : index
    %c0_2 = arith.constant 0 : index
    %1 = vector.load %arg2[%c0_1, %c0_2] : memref<256x32xbf16, #tpu.memory_space<vmem>>, vector<256x32xbf16>
    %cst = arith.constant dense<0.000000e+00> : vector<512x32xf32>
    %2 = tpu.matmul %0, %1, %cst {dimension_numbers = #tpu.dot_dimension_numbers<[1], [0], [0], [1], [0, 0, 1, 1], [], []>} : vector<512x256xbf16>, vector<256x32xbf16>, vector<512x32xf32> -> vector<512x32xf32>
    %c0_3 = arith.constant 0 : index
    %c0_4 = arith.constant 0 : index
    %3 = vector.load %arg3[%c0_3, %c0_4] : memref<1x32xf32, #tpu.memory_space<vmem>>, vector<1x32xf32>
    %4 = vector.broadcast %3 : vector<1x32xf32> to vector<512x32xf32>
    %5 = arith.addf %2, %4 : vector<512x32xf32>
    %cst_5 = arith.constant 0.000000e+00 : f32
    %6 = vector.broadcast %cst_5 : f32 to vector<512x32xf32>
    %7 = arith.maximumf %5, %6 : vector<512x32xf32>
    %8 = arith.truncf %7 : vector<512x32xf32> to vector<512x32xbf16>
    %c0_6 = arith.constant 0 : index
    %c0_7 = arith.constant 0 : index
    %9 = vector.load %arg4[%c0_6, %c0_7] : memref<512x32xbf16, #tpu.memory_space<vmem>>, vector<512x32xbf16>
    tpu.vector_store %arg4[%c0_6, %c0_7], %8 {strides = array<i32>} : memref<512x32xbf16, #tpu.memory_space<vmem>>, vector<512x32xbf16>,
    return
  }
  func.func @transform_0(%arg0: i32) -> (i32, i32) {
    %c0_i32 = arith.constant 0 : i32
    %c0_i32_0 = arith.constant 0 : i32
    return %arg0, %c0_i32 : i32, i32
  }
  func.func @transform_1(%arg0: i32) -> (i32, i32) {
    %c0_i32 = arith.constant 0 : i32
    %c0_i32_0 = arith.constant 0 : i32
    %c0_i32_1 = arith.constant 0 : i32
    return %c0_i32, %c0_i32_0 : i32, i32
  }
  func.func @transform_2(%arg0: i32) -> (i32, i32) {
    %c0_i32 = arith.constant 0 : i32
    %c0_i32_0 = arith.constant 0 : i32
    %c0_i32_1 = arith.constant 0 : i32
    return %c0_i32, %c0_i32_0 : i32, i32
  }
  func.func @transform_3(%arg0: i32) -> (i32, i32) {
    %c0_i32 = arith.constant 0 : i32
    %c0_i32_0 = arith.constant 0 : i32
    return %arg0, %c0_i32 : i32, i32
  }
}

module attributes {stable_mosaic.version = 11 : i64} {
  func.func @_matmul_bias_kernel(%arg0: i32, %arg1: memref<168x512xbf16, #tpu.memory_space<vmem>>, %arg2: memref<512x64xbf16, #tpu.memory_space<vmem>>, %arg3: memref<1x64xf32, #tpu.memory_space<vmem>>, %arg4: memref<168x64xbf16, #tpu.memory_space<vmem>>) attributes {dimension_semantics = [#tpu.dimension_semantics<parallel>], iteration_bounds = array<i64: 1>, scalar_prefetch = 0 : i64, scratch_operands = 0 : i64, tpu.core_type = #tpu.core_type<tc>, window_params = [{transform_indices = @transform_0, window_bounds = array<i64: 168, 512>}, {pipeline_mode = #tpu.pipeline_mode<synchronous>, transform_indices = @transform_1, window_bounds = array<i64: 512, 64>}, {pipeline_mode = #tpu.pipeline_mode<synchronous>, transform_indices = @transform_2, window_bounds = array<i64: 1, 64>}, {transform_indices = @transform_3, window_bounds = array<i64: 168, 64>}]} {
    %c0 = arith.constant 0 : index
    %c0_0 = arith.constant 0 : index
    %0 = vector.load %arg1[%c0, %c0_0] : memref<168x512xbf16, #tpu.memory_space<vmem>>, vector<168x512xbf16>
    %c0_1 = arith.constant 0 : index
    %c0_2 = arith.constant 0 : index
    %1 = vector.load %arg2[%c0_1, %c0_2] : memref<512x64xbf16, #tpu.memory_space<vmem>>, vector<512x64xbf16>
    %cst = arith.constant dense<0.000000e+00> : vector<168x64xf32>
    %2 = tpu.matmul %0, %1, %cst {dimension_numbers = #tpu.dot_dimension_numbers<[1], [0], [0], [1], [0, 0, 1, 1], [], []>} : vector<168x512xbf16>, vector<512x64xbf16>, vector<168x64xf32> -> vector<168x64xf32>
    %c0_3 = arith.constant 0 : index
    %c0_4 = arith.constant 0 : index
    %3 = vector.load %arg3[%c0_3, %c0_4] : memref<1x64xf32, #tpu.memory_space<vmem>>, vector<1x64xf32>
    %4 = vector.broadcast %3 : vector<1x64xf32> to vector<168x64xf32>
    %5 = arith.addf %2, %4 : vector<168x64xf32>
    %cst_5 = arith.constant 0.000000e+00 : f32
    %6 = vector.broadcast %cst_5 : f32 to vector<168x64xf32>
    %7 = arith.maximumf %5, %6 : vector<168x64xf32>
    %8 = arith.truncf %7 : vector<168x64xf32> to vector<168x64xbf16>
    %c0_6 = arith.constant 0 : index
    %c0_7 = arith.constant 0 : index
    %9 = vector.load %arg4[%c0_6, %c0_7] : memref<168x64xbf16, #tpu.memory_space<vmem>>, vector<168x64xbf16>
    tpu.vector_store %arg4[%c0_6, %c0_7], %8 {strides = array<i32>} : memref<168x64xbf16, #tpu.memory_space<vmem>>, vector<168x64xbf16>,
    return
  }
  func.func @transform_0(%arg0: i32) -> (i32, i32) {
    %c0_i32 = arith.constant 0 : i32
    %c0_i32_0 = arith.constant 0 : i32
    return %arg0, %c0_i32 : i32, i32
  }
  func.func @transform_1(%arg0: i32) -> (i32, i32) {
    %c0_i32 = arith.constant 0 : i32
    %c0_i32_0 = arith.constant 0 : i32
    %c0_i32_1 = arith.constant 0 : i32
    return %c0_i32, %c0_i32_0 : i32, i32
  }
  func.func @transform_2(%arg0: i32) -> (i32, i32) {
    %c0_i32 = arith.constant 0 : i32
    %c0_i32_0 = arith.constant 0 : i32
    %c0_i32_1 = arith.constant 0 : i32
    return %c0_i32, %c0_i32_0 : i32, i32
  }
  func.func @transform_3(%arg0: i32) -> (i32, i32) {
    %c0_i32 = arith.constant 0 : i32
    %c0_i32_0 = arith.constant 0 : i32
    return %arg0, %c0_i32 : i32, i32
  }
}

module attributes {stable_mosaic.version = 11 : i64} {
  func.func @_matmul_bias_kernel(%arg0: i32, %arg1: memref<104x576xbf16, #tpu.memory_space<vmem>>, %arg2: memref<576x32xbf16, #tpu.memory_space<vmem>>, %arg3: memref<1x32xf32, #tpu.memory_space<vmem>>, %arg4: memref<104x32xbf16, #tpu.memory_space<vmem>>) attributes {dimension_semantics = [#tpu.dimension_semantics<parallel>], iteration_bounds = array<i64: 1>, scalar_prefetch = 0 : i64, scratch_operands = 0 : i64, tpu.core_type = #tpu.core_type<tc>, window_params = [{transform_indices = @transform_0, window_bounds = array<i64: 104, 576>}, {pipeline_mode = #tpu.pipeline_mode<synchronous>, transform_indices = @transform_1, window_bounds = array<i64: 576, 32>}, {pipeline_mode = #tpu.pipeline_mode<synchronous>, transform_indices = @transform_2, window_bounds = array<i64: 1, 32>}, {transform_indices = @transform_3, window_bounds = array<i64: 104, 32>}]} {
    %c0 = arith.constant 0 : index
    %c0_0 = arith.constant 0 : index
    %0 = vector.load %arg1[%c0, %c0_0] : memref<104x576xbf16, #tpu.memory_space<vmem>>, vector<104x576xbf16>
    %c0_1 = arith.constant 0 : index
    %c0_2 = arith.constant 0 : index
    %1 = vector.load %arg2[%c0_1, %c0_2] : memref<576x32xbf16, #tpu.memory_space<vmem>>, vector<576x32xbf16>
    %cst = arith.constant dense<0.000000e+00> : vector<104x32xf32>
    %2 = tpu.matmul %0, %1, %cst {dimension_numbers = #tpu.dot_dimension_numbers<[1], [0], [0], [1], [0, 0, 1, 1], [], []>} : vector<104x576xbf16>, vector<576x32xbf16>, vector<104x32xf32> -> vector<104x32xf32>
    %c0_3 = arith.constant 0 : index
    %c0_4 = arith.constant 0 : index
    %3 = vector.load %arg3[%c0_3, %c0_4] : memref<1x32xf32, #tpu.memory_space<vmem>>, vector<1x32xf32>
    %4 = vector.broadcast %3 : vector<1x32xf32> to vector<104x32xf32>
    %5 = arith.addf %2, %4 : vector<104x32xf32>
    %cst_5 = arith.constant 0.000000e+00 : f32
    %6 = vector.broadcast %cst_5 : f32 to vector<104x32xf32>
    %7 = arith.maximumf %5, %6 : vector<104x32xf32>
    %8 = arith.truncf %7 : vector<104x32xf32> to vector<104x32xbf16>
    %c0_6 = arith.constant 0 : index
    %c0_7 = arith.constant 0 : index
    %9 = vector.load %arg4[%c0_6, %c0_7] : memref<104x32xbf16, #tpu.memory_space<vmem>>, vector<104x32xbf16>
    tpu.vector_store %arg4[%c0_6, %c0_7], %8 {strides = array<i32>} : memref<104x32xbf16, #tpu.memory_space<vmem>>, vector<104x32xbf16>,
    return
  }
  func.func @transform_0(%arg0: i32) -> (i32, i32) {
    %c0_i32 = arith.constant 0 : i32
    %c0_i32_0 = arith.constant 0 : i32
    return %arg0, %c0_i32 : i32, i32
  }
  func.func @transform_1(%arg0: i32) -> (i32, i32) {
    %c0_i32 = arith.constant 0 : i32
    %c0_i32_0 = arith.constant 0 : i32
    %c0_i32_1 = arith.constant 0 : i32
    return %c0_i32, %c0_i32_0 : i32, i32
  }
  func.func @transform_2(%arg0: i32) -> (i32, i32) {
    %c0_i32 = arith.constant 0 : i32
    %c0_i32_0 = arith.constant 0 : i32
    %c0_i32_1 = arith.constant 0 : i32
    return %c0_i32, %c0_i32_0 : i32, i32
  }
  func.func @transform_3(%arg0: i32) -> (i32, i32) {
    %c0_i32 = arith.constant 0 : i32
    %c0_i32_0 = arith.constant 0 : i32
    return %arg0, %c0_i32 : i32, i32
  }
}

module attributes {stable_mosaic.version = 11 : i64} {
  func.func @_fc_value_kernel(%arg0: i32, %arg1: memref<8x1568xbf16, #tpu.memory_space<vmem>>, %arg2: memref<1568x64xbf16, #tpu.memory_space<vmem>>, %arg3: memref<1x64xf32, #tpu.memory_space<vmem>>, %arg4: memref<1x64xf32, #tpu.memory_space<vmem>>, %arg5: memref<1x1xf32, #tpu.memory_space<vmem>>, %arg6: memref<8x64xf32, #tpu.memory_space<vmem>>, %arg7: memref<8x1xf32, #tpu.memory_space<vmem>>) attributes {dimension_semantics = [#tpu.dimension_semantics<parallel>], iteration_bounds = array<i64: 1>, scalar_prefetch = 0 : i64, scratch_operands = 0 : i64, tpu.core_type = #tpu.core_type<tc>, window_params = [{transform_indices = @transform_0, window_bounds = array<i64: 8, 1568>}, {pipeline_mode = #tpu.pipeline_mode<synchronous>, transform_indices = @transform_1, window_bounds = array<i64: 1568, 64>}, {pipeline_mode = #tpu.pipeline_mode<synchronous>, transform_indices = @transform_2, window_bounds = array<i64: 1, 64>}, {pipeline_mode = #tpu.pipeline_mode<synchronous>, transform_indices = @transform_3, window_bounds = array<i64: 1, 64>}, {pipeline_mode = #tpu.pipeline_mode<synchronous>, transform_indices = @transform_4, window_bounds = array<i64: 1, 1>}, {transform_indices = @transform_5, window_bounds = array<i64: 8, 64>}, {transform_indices = @transform_6, window_bounds = array<i64: 8, 1>}]} {
    %c0 = arith.constant 0 : index
    %c0_0 = arith.constant 0 : index
    %0 = vector.load %arg1[%c0, %c0_0] : memref<8x1568xbf16, #tpu.memory_space<vmem>>, vector<8x1568xbf16>
    %c0_1 = arith.constant 0 : index
    %c0_2 = arith.constant 0 : index
    %1 = vector.load %arg2[%c0_1, %c0_2] : memref<1568x64xbf16, #tpu.memory_space<vmem>>, vector<1568x64xbf16>
    %cst = arith.constant dense<0.000000e+00> : vector<8x64xf32>
    %2 = tpu.matmul %0, %1, %cst {dimension_numbers = #tpu.dot_dimension_numbers<[1], [0], [0], [1], [0, 0, 1, 1], [], []>} : vector<8x1568xbf16>, vector<1568x64xbf16>, vector<8x64xf32> -> vector<8x64xf32>
    %c0_3 = arith.constant 0 : index
    %c0_4 = arith.constant 0 : index
    %3 = vector.load %arg3[%c0_3, %c0_4] : memref<1x64xf32, #tpu.memory_space<vmem>>, vector<1x64xf32>
    %4 = vector.broadcast %3 : vector<1x64xf32> to vector<8x64xf32>
    %5 = arith.addf %2, %4 : vector<8x64xf32>
    %cst_5 = arith.constant 0.000000e+00 : f32
    %6 = vector.broadcast %cst_5 : f32 to vector<8x64xf32>
    %7 = arith.maximumf %5, %6 : vector<8x64xf32>
    %c0_6 = arith.constant 0 : index
    %c0_7 = arith.constant 0 : index
    %8 = vector.load %arg6[%c0_6, %c0_7] : memref<8x64xf32, #tpu.memory_space<vmem>>, vector<8x64xf32>
    tpu.vector_store %arg6[%c0_6, %c0_7], %7 {strides = array<i32>} : memref<8x64xf32, #tpu.memory_space<vmem>>, vector<8x64xf32>,
    %c0_8 = arith.constant 0 : index
    %c0_9 = arith.constant 0 : index
    %9 = vector.load %arg4[%c0_8, %c0_9] : memref<1x64xf32, #tpu.memory_space<vmem>>, vector<1x64xf32>
    %10 = vector.broadcast %9 : vector<1x64xf32> to vector<8x64xf32>
    %11 = arith.mulf %7, %10 : vector<8x64xf32>
    %cst_10 = arith.constant dense<0.000000e+00> : vector<8xf32>
    %12 = vector.multi_reduction <add>, %11, %cst_10 [1] : vector<8x64xf32> to vector<8xf32>
    %13 = vector.shape_cast %12 : vector<8xf32> to vector<8x1xf32>
    %c0_11 = arith.constant 0 : index
    %c0_12 = arith.constant 0 : index
    %14 = vector.load %arg5[%c0_11, %c0_12] : memref<1x1xf32, #tpu.memory_space<vmem>>, vector<1x1xf32>
    %15 = vector.broadcast %14 : vector<1x1xf32> to vector<8x1xf32>
    %16 = arith.addf %13, %15 : vector<8x1xf32>
    %c0_13 = arith.constant 0 : index
    %c0_14 = arith.constant 0 : index
    %17 = vector.load %arg7[%c0_13, %c0_14] : memref<8x1xf32, #tpu.memory_space<vmem>>, vector<8x1xf32>
    tpu.vector_store %arg7[%c0_13, %c0_14], %16 {strides = array<i32>} : memref<8x1xf32, #tpu.memory_space<vmem>>, vector<8x1xf32>,
    return
  }
  func.func @transform_0(%arg0: i32) -> (i32, i32) {
    %c0_i32 = arith.constant 0 : i32
    %c0_i32_0 = arith.constant 0 : i32
    return %arg0, %c0_i32 : i32, i32
  }
  func.func @transform_1(%arg0: i32) -> (i32, i32) {
    %c0_i32 = arith.constant 0 : i32
    %c0_i32_0 = arith.constant 0 : i32
    %c0_i32_1 = arith.constant 0 : i32
    return %c0_i32, %c0_i32_0 : i32, i32
  }
  func.func @transform_2(%arg0: i32) -> (i32, i32) {
    %c0_i32 = arith.constant 0 : i32
    %c0_i32_0 = arith.constant 0 : i32
    %c0_i32_1 = arith.constant 0 : i32
    return %c0_i32, %c0_i32_0 : i32, i32
  }
  func.func @transform_3(%arg0: i32) -> (i32, i32) {
    %c0_i32 = arith.constant 0 : i32
    %c0_i32_0 = arith.constant 0 : i32
    %c0_i32_1 = arith.constant 0 : i32
    return %c0_i32, %c0_i32_0 : i32, i32
  }
  func.func @transform_4(%arg0: i32) -> (i32, i32) {
    %c0_i32 = arith.constant 0 : i32
    %c0_i32_0 = arith.constant 0 : i32
    %c0_i32_1 = arith.constant 0 : i32
    return %c0_i32, %c0_i32_0 : i32, i32
  }
  func.func @transform_5(%arg0: i32) -> (i32, i32) {
    %c0_i32 = arith.constant 0 : i32
    %c0_i32_0 = arith.constant 0 : i32
    return %arg0, %c0_i32 : i32, i32
  }
  func.func @transform_6(%arg0: i32) -> (i32, i32) {
    %c0_i32 = arith.constant 0 : i32
    %c0_i32_0 = arith.constant 0 : i32
    return %arg0, %c0_i32 : i32, i32
  }
}

</mosaic_0001>

<bundles_post_ra>
// kernel: cnn_base_forward.4
= control target key start
LH: loop header
LB: loop body
LE: loop exit
PB: predicated region body
PF: predicated region fallthrough
CT: control target
= control target key end

     0   :  { %s2230_s12 = smov 0   ;;  %s2232_s13 = smov 0   ;;  %s2781_s0 = inlined_call_operand.vmem [shape: bf16[800,256], index: 0, kind: input, shape index: {}]   ;;  %s2782_s1 = inlined_call_operand.vmem [shape: bf16[256,32], index: 1, kind: input, shape index: {}]   ;;  %s2783_s2 = inlined_call_operand.vmem [shape: f32[1,32], index: 2, kind: input, shape index: {}]   ;;  %s2784_s3 = inlined_call_operand.vmem [shape: bf16[800,32], index: 3, kind: output, shape index: {}]  }
   0x1   :  { %s2234_s14 = smov 0  }
   0x2 LB: > { %s2243_s15 = sadd.s32 4294967295, %s2176_s14   ;;  %s2245_s16 = sadd.s32 1, %s2176_s14   ;;  %s2176_s14 = sphi %s2234_s14, %s2793_s14   ;;  %s2172_s13 = sphi %s2232_s13, %s2792_s13   ;;  %s2168_s12 = sphi %s2230_s12, %s2791_s12  }
   0x3   : > { %s85_s17 = ssub.s32 %s2176_s14, %s2245_s16  ;;  %s88_s18 = sadd.s32 1, %s2172_s13 }
   0x4   : > { %p86_p0 = scmp.eq.s32.totalorder %s85_s17, 0  ;;  %p98_p1 = scmp.ne.s32.totalorder %s2172_s13, %s2168_s12 }
   0x5   : > { %p99_p2 = scmp.eq.s32.totalorder %s2243_s15, 1  ;;  %p1590_p3 = scmp.ge.s32.totalorder %s2176_s14, 1 }
   0x6   : > { %s2253_s19 = scalar_select %p86_p0, %s2172_s13, %s88_s18  }
   0x7   : > { %p2255_p4 = por %p99_p2, %p98_p1  ;;  %p149_p5 = scmp.lt.s32.totalorder %s2176_s14, 3 }
   0x9   : > { %p150_p6 = pnand %p1590_p3, %p149_p5 }
   0xa   : > { %s2278_s6 = sshll.u32 (!%p150_p6), %s2243_s15, 6  ;;  %s175_s18 = sand.u32 (!%p150_p6), 1, %s2168_s12  }
   0xb   : > { %153 = sbr.rel (%p150_p6) target bundleno = 501 (0x1f5), region = 32  ;;  %p184_p7 = scmp.lt.s32.totalorder (!%p150_p6), %s2278_s6, 99 }
  0x10   : > { %v2004_v0 = vld [vmem:[%s2782_s1 + $0x38] sm:$0xff]  ;;  %v2003_v2 = vld [vmem:[%s2782_s1 + $0x30] sm:$0xff]  ;;  %v2002_v4 = vld [vmem:[%s2782_s1 + $0x28] sm:$0xff]  ;;  %s185_s21 = scalar_select %p184_p7, %s2278_s6, 99  ;;  %vm1182_vm0 = vcmask 257024  }
  0x11   : > { %v2012_v1 = vld [vmem:[%s2782_s1 + $0x78] sm:$0xff]  ;;  %716 = vmatpush.bf16.msra.mxu0 %v2004_v0  ;;  %2016 = vmatpush.bf16.msra.mxu2 %v2004_v0  ;;  %v2011_v3 = vld [vmem:[%s2782_s1 + $0x70] sm:$0xff]  ;;  %v2010_v5 = vld [vmem:[%s2782_s1 + $0x68] sm:$0xff]  ;;  %s1255_s24 = ssub.s32 (%p2255_p4), 100, %s2278_s6  ;;  %s2013_s25 = sshll.u32 (%p2255_p4), %s2243_s15, 8 }
  0x12   : > { %885 = vmatpush.bf16.msra.mxu1 %v2012_v1  ;;  %2024 = vmatpush.bf16.msra.mxu3 %v2012_v1  ;;  %v2001_v6 = vld [vmem:[%s2782_s1 + $0x20] sm:$0xff]  ;;  %v2000_v8 = vld [vmem:[%s2782_s1 + $0x18] sm:$0xff]  ;;  %v1999_v10 = vld [vmem:[%s2782_s1 + $0x10] sm:$0xff]  ;;  %s1932_s26 = sshll.u32 %s185_s21, 3  ;;  %s1591_s21 = sshll.u32 %s175_s18, 8 }
  0x13   : > { %v2009_v7 = vld [vmem:[%s2782_s1 + $0x60] sm:$0xff]  ;;  %v2008_v9 = vld [vmem:[%s2782_s1 + $0x58] sm:$0xff]  ;;  %v2007_v11 = vld [vmem:[%s2782_s1 + $0x50] sm:$0xff]  ;;  %s2306_s4 = scalar_lea.vmem %s2781_s0, %s1932_s26  ;;  %s2397_s12 = scalar_lea.vmem [#allocation2], %s1591_s21  }
  0x14   : > { %v1998_v12 = vld [vmem:[%s2782_s1 + $0x8] sm:$0xff]  ;;  %v1997_v14 = vld [vmem:[%s2782_s1] sm:$0xff]  ;;  %v1605_v28 = vld [vmem:[%s2306_s4 + $0x10] sm:$0xf]  ;;  %p1256_p8 = scmp.lt.s32.totalorder (%p2255_p4), %s1255_s24, 64  ;;  %s2646_s28 = scalar_lea.vmem (%p2255_p4), %s2784_s3, %s2013_s25  }
  0x15   : > { %717 = vmatpush.bf16.msra.mxu0 %v2003_v2  ;;  %2017 = vmatpush.bf16.msra.mxu2 %v2003_v2  ;;  %v2006_v13 = vld [vmem:[%s2782_s1 + $0x48] sm:$0xff]  ;;  %v2005_v15 = vld [vmem:[%s2782_s1 + $0x40] sm:$0xff]  ;;  %v1936_v29 = vld [vmem:[%s2306_s4 + $0x14] sm:$0xf0] }
  0x16   : > { %886 = vmatpush.bf16.msra.mxu1 %v2011_v3  ;;  %2025 = vmatpush.bf16.msra.mxu3 %v2011_v3  ;;  %v1597_v16 = vld [vmem:[%s2306_s4] sm:$0xf]  ;;  %v1934_v17 = vld [vmem:[%s2306_s4 + $0x4] sm:$0xf0]  ;;  %v1933_v20 = vld [vmem:[%s2306_s4 + $0x4] sm:$0xf]  ;;  %v1606_v36 = vor.u32 %v1936_v29, %v1605_v28 }
  0x17   : > { %v1725_v18 = vld [vmem:[%s2306_s4 + $0x100] sm:$0xf]  ;;  %v1966_v19 = vld [vmem:[%s2306_s4 + $0x104] sm:$0xf0]  ;;  %v1599_v21 = vld [vmem:[%s2306_s4 + $0x8] sm:$0xf0]  ;;  %v1598_v24 = vor.u32 %v1934_v17, %v1597_v16 }
  0x18   : > { %v1965_v22 = vld [vmem:[%s2306_s4 + $0x104] sm:$0xf]  ;;  %v1727_v23 = vld [vmem:[%s2306_s4 + $0x108] sm:$0xf0]  ;;  %v1726_v25 = vor.u32 %v1966_v19, %v1725_v18  ;;  %v1602_v26 = vor.u32 %v1933_v20, %v1599_v21  ;;  %v1733_v30 = vld [vmem:[%s2306_s4 + $0x110] sm:$0xf] }
  0x19   : > { %718 = vmatpush.bf16.msra.mxu0 %v2002_v4  ;;  %2018 = vmatpush.bf16.msra.mxu2 %v2002_v4  ;;  %v1730_v27 = vor.u32 %v1965_v22, %v1727_v23  ;;  %v1968_v31 = vld [vmem:[%s2306_s4 + $0x114] sm:$0xf0]  ;;  %v1935_v32 = vld [vmem:[%s2306_s4 + $0x14] sm:$0xf]  ;;  %v1607_v33 = vld [vmem:[%s2306_s4 + $0x18] sm:$0xf0] }
  0x1a   : > { %887 = vmatpush.bf16.msra.mxu1 %v2010_v5  ;;  %2026 = vmatpush.bf16.msra.mxu3 %v2010_v5  ;;  %v1967_v34 = vld [vmem:[%s2306_s4 + $0x114] sm:$0xf]  ;;  %v1735_v35 = vld [vmem:[%s2306_s4 + $0x118] sm:$0xf0]  ;;  %v1734_v37 = vor.u32 %v1968_v31, %v1733_v30  ;;  %v1610_v38 = vor.u32 %v1935_v32, %v1607_v33  ;;  %v1613_v40 = vld [vmem:[%s2306_s4 + $0x20] sm:$0xf] }
  0x1b   : > { %v1738_v39 = vor.u32 %v1967_v34, %v1735_v35  ;;  %v1938_v41 = vld [vmem:[%s2306_s4 + $0x24] sm:$0xf0]  ;;  %v1741_v42 = vld [vmem:[%s2306_s4 + $0x120] sm:$0xf]  ;;  %v1937_v44 = vld [vmem:[%s2306_s4 + $0x24] sm:$0xf] }
  0x1c   : > { %v1970_v43 = vld [vmem:[%s2306_s4 + $0x124] sm:$0xf0]  ;;  %v1615_v45 = vld [vmem:[%s2306_s4 + $0x28] sm:$0xf0]  ;;  %v1969_v46 = vld [vmem:[%s2306_s4 + $0x124] sm:$0xf]  ;;  %v1614_v48 = vor.u32 %v1938_v41, %v1613_v40 }
  0x1d   : > { %719 = vmatpush.bf16.msra.mxu0 %v2001_v6  ;;  %2019 = vmatpush.bf16.msra.mxu2 %v2001_v6  ;;  %v1743_v47 = vld [vmem:[%s2306_s4 + $0x128] sm:$0xf0]  ;;  %v1742_v49 = vor.u32 %v1970_v43, %v1741_v42  ;;  %v1618_v50 = vor.u32 %v1937_v44, %v1615_v45  ;;  %v1621_v52 = vld [vmem:[%s2306_s4 + $0x30] sm:$0xf]  ;;  %v1940_v53 = vld [vmem:[%s2306_s4 + $0x34] sm:$0xf0] }
  0x1e   : > { %888 = vmatpush.bf16.msra.mxu1 %v2009_v7  ;;  %2027 = vmatpush.bf16.msra.mxu3 %v2009_v7  ;;  %v1746_v51 = vor.u32 %v1969_v46, %v1743_v47  ;;  %v1749_v54 = vld [vmem:[%s2306_s4 + $0x130] sm:$0xf]  ;;  %v1972_v55 = vld [vmem:[%s2306_s4 + $0x134] sm:$0xf0]  ;;  %v1939_v56 = vld [vmem:[%s2306_s4 + $0x34] sm:$0xf]  ;;  %v1622_v60 = vor.u32 %v1940_v53, %v1621_v52 }
  0x1f   : > { %v1623_v57 = vld [vmem:[%s2306_s4 + $0x38] sm:$0xf0]  ;;  %v1971_v58 = vld [vmem:[%s2306_s4 + $0x134] sm:$0xf]  ;;  %v1750_v61 = vor.u32 %v1972_v55, %v1749_v54  ;;  %v1629_v0 = vld [vmem:[%s2306_s4 + $0x40] sm:$0xf] }
  0x20   : > { %v1751_v59 = vld [vmem:[%s2306_s4 + $0x138] sm:$0xf0]  ;;  %v1626_v62 = vor.u32 %v1939_v56, %v1623_v57  ;;  %v1942_v1 = vld [vmem:[%s2306_s4 + $0x44] sm:$0xf0]  ;;  %v1757_v2 = vld [vmem:[%s2306_s4 + $0x140] sm:$0xf] }
  0x21   : > { %720 = vmatpush.bf16.msra.mxu0 %v2000_v8  ;;  %2020 = vmatpush.bf16.msra.mxu2 %v2000_v8  ;;  %v1754_v63 = vor.u32 %v1971_v58, %v1751_v59  ;;  %v1974_v3 = vld [vmem:[%s2306_s4 + $0x144] sm:$0xf0]  ;;  %v1941_v4 = vld [vmem:[%s2306_s4 + $0x44] sm:$0xf]  ;;  %v1631_v5 = vld [vmem:[%s2306_s4 + $0x48] sm:$0xf0]  ;;  %v1630_v8 = vor.u32 %v1942_v1, %v1629_v0 }
  0x22   : > { %889 = vmatpush.bf16.msra.mxu1 %v2008_v9  ;;  %2028 = vmatpush.bf16.msra.mxu3 %v2008_v9  ;;  %v1973_v6 = vld [vmem:[%s2306_s4 + $0x144] sm:$0xf]  ;;  %v1759_v7 = vld [vmem:[%s2306_s4 + $0x148] sm:$0xf0]  ;;  %v1758_v9 = vor.u32 %v1974_v3, %v1757_v2  ;;  %v1943_v16 = vld [vmem:[%s2306_s4 + $0x54] sm:$0xf] }
  0x23   : > { %v1639_v17 = vld [vmem:[%s2306_s4 + $0x58] sm:$0xf0]  ;;  %v1975_v18 = vld [vmem:[%s2306_s4 + $0x154] sm:$0xf]  ;;  %v1945_v28 = vld [vmem:[%s2306_s4 + $0x64] sm:$0xf] }
  0x24   : > { %v1767_v19 = vld [vmem:[%s2306_s4 + $0x158] sm:$0xf0]  ;;  %v1642_v22 = vor.u32 %v1943_v16, %v1639_v17  ;;  %v1647_v29 = vld [vmem:[%s2306_s4 + $0x68] sm:$0xf0]  ;;  %v1977_v30 = vld [vmem:[%s2306_s4 + $0x164] sm:$0xf] }
  0x25   : > { %721 = vmatpush.bf16.msra.mxu0 %v1999_v10  ;;  %2021 = vmatpush.bf16.msra.mxu2 %v1999_v10  ;;  %v1634_v10 = vor.u32 %v1941_v4, %v1631_v5  ;;  %v1770_v23 = vor.u32 %v1975_v18, %v1767_v19  ;;  %v1775_v31 = vld [vmem:[%s2306_s4 + $0x168] sm:$0xf0]  ;;  %v1650_v34 = vor.u32 %v1945_v28, %v1647_v29  ;;  %v1947_v40 = vld [vmem:[%s2306_s4 + $0x74] sm:$0xf]  ;;  %v1655_v41 = vld [vmem:[%s2306_s4 + $0x78] sm:$0xf0] }
  0x26   : > { %890 = vmatpush.bf16.msra.mxu1 %v2007_v11  ;;  %2029 = vmatpush.bf16.msra.mxu3 %v2007_v11  ;;  %v1762_v11 = vor.u32 %v1973_v6, %v1759_v7  ;;  %v1778_v35 = vor.u32 %v1977_v30, %v1775_v31  ;;  %v1979_v42 = vld [vmem:[%s2306_s4 + $0x174] sm:$0xf]  ;;  %v1783_v43 = vld [vmem:[%s2306_s4 + $0x178] sm:$0xf0]  ;;  %v1658_v46 = vor.u32 %v1947_v40, %v1655_v41  ;;  %v1982_v52 = vld [vmem:[%s2306_s4 + $0x184] sm:$0xf0] }
  0x27   : > { %v1786_v47 = vor.u32 %v1979_v42, %v1783_v43  ;;  %v1949_v53 = vld [vmem:[%s2306_s4 + $0x84] sm:$0xf]  ;;  %v1663_v54 = vld [vmem:[%s2306_s4 + $0x88] sm:$0xf0]  ;;  %v1951_v16 = vld [vmem:[%s2306_s4 + $0x94] sm:$0xf] }
  0x28   : > { %v1981_v55 = vld [vmem:[%s2306_s4 + $0x184] sm:$0xf]  ;;  %v1791_v56 = vld [vmem:[%s2306_s4 + $0x188] sm:$0xf0]  ;;  %v1671_v17 = vld [vmem:[%s2306_s4 + $0x98] sm:$0xf0] }
  0x29   : > { %722 = vmatpush.bf16.msra.mxu0 %v1998_v12  ;;  %2022 = vmatpush.bf16.msra.mxu2 %v1998_v12  ;;  %v1637_v12 = vld [vmem:[%s2306_s4 + $0x50] sm:$0xf]  ;;  %v1674_v29 = vor.u32 %v1951_v16, %v1671_v17 }
  0x2a   : > { %891 = vmatpush.bf16.msra.mxu1 %v2006_v13  ;;  %2030 = vmatpush.bf16.msra.mxu3 %v2006_v13  ;;  %v1944_v13 = vld [vmem:[%s2306_s4 + $0x54] sm:$0xf0] }
  0x2b   : > { %v1638_v20 = vor.u32 %v1944_v13, %v1637_v12  ;;  %v1952_v13 = vld [vmem:[%s2306_s4 + $0x94] sm:$0xf0] }
  0x2d   : > { %723 = vmatpush.bf16.msra.mxu0 %v1997_v14  ;;  %2023 = vmatpush.bf16.msra.mxu2 %v1997_v14  ;;  %v1765_v14 = vld [vmem:[%s2306_s4 + $0x150] sm:$0xf] }
  0x2e   : > { %892 = vmatpush.bf16.msra.mxu1 %v2005_v15  ;;  %2031 = vmatpush.bf16.msra.mxu3 %v2005_v15  ;;  %v1976_v15 = vld [vmem:[%s2306_s4 + $0x154] sm:$0xf0] }
  0x2f   : > { %v1766_v21 = vor.u32 %v1976_v15, %v1765_v14  ;;  %v1797_v14 = vld [vmem:[%s2306_s4 + $0x190] sm:$0xf]  ;;  %v1984_v15 = vld [vmem:[%s2306_s4 + $0x194] sm:$0xf0] }
  0x30   : > { %724 = vmatmul.bf16.vlgmr.msra.gmra.mxu0 %v1598_v24  ;;  %804 = vmatmul.bf16.vlgmr.msra.gmra.mxu2 %v1726_v25  ;;  %v1645_v24 = vld [vmem:[%s2306_s4 + $0x60] sm:$0xf]  ;;  %v1946_v25 = vld [vmem:[%s2306_s4 + $0x64] sm:$0xf0] }
  0x31   : > { %893 = vmatmul.bf16.vlgmr.msra.gmra.mxu1 %v1602_v26  ;;  %973 = vmatmul.bf16.vlgmr.msra.gmra.mxu3 %v1730_v27  ;;  %v1773_v26 = vld [vmem:[%s2306_s4 + $0x160] sm:$0xf]  ;;  %v1978_v27 = vld [vmem:[%s2306_s4 + $0x164] sm:$0xf0]  ;;  %v1646_v32 = vor.u32 %v1946_v25, %v1645_v24 }
  0x32   : > { %v1774_v33 = vor.u32 %v1978_v27, %v1773_v26  ;;  %v1798_v27 = vor.u32 %v1984_v15, %v1797_v14 }
  0x40   : > { %729 = vmatmul.bf16.gmra.mxu0 %v1606_v36  ;;  %809 = vmatmul.bf16.gmra.mxu2 %v1734_v37  ;;  %v1653_v36 = vld [vmem:[%s2306_s4 + $0x70] sm:$0xf]  ;;  %v1948_v37 = vld [vmem:[%s2306_s4 + $0x74] sm:$0xf0] }
  0x41   : > { %898 = vmatmul.bf16.gmra.mxu1 %v1610_v38  ;;  %978 = vmatmul.bf16.gmra.mxu3 %v1738_v39  ;;  %v1781_v38 = vld [vmem:[%s2306_s4 + $0x170] sm:$0xf]  ;;  %v1980_v39 = vld [vmem:[%s2306_s4 + $0x174] sm:$0xf0]  ;;  %v1654_v44 = vor.u32 %v1948_v37, %v1653_v36 }
  0x42   : > { %v1782_v45 = vor.u32 %v1980_v39, %v1781_v38 }
  0x50   : > { %734 = vmatmul.bf16.gmra.mxu0 %v1614_v48  ;;  %814 = vmatmul.bf16.gmra.mxu2 %v1742_v49  ;;  %v2384_v48 = vld [vmem:[%s2783_s2] ss:$0 sm:$0xff] }
  0x51   : > { %903 = vmatmul.bf16.gmra.mxu1 %v1618_v50  ;;  %983 = vmatmul.bf16.gmra.mxu3 %v1746_v51  ;;  %v1661_v49 = vld [vmem:[%s2306_s4 + $0x80] sm:$0xf]  ;;  %v1950_v50 = vld [vmem:[%s2306_s4 + $0x84] sm:$0xf0] }
  0x52   : > { %v1789_v51 = vld [vmem:[%s2306_s4 + $0x180] sm:$0xf]  ;;  %v1662_v57 = vor.u32 %v1950_v50, %v1661_v49  ;;  %v1954_v50 = vld [vmem:[%s2306_s4 + $0xa4] sm:$0xf0] }
  0x53   : > { %v1790_v58 = vor.u32 %v1982_v52, %v1789_v51  ;;  %v1805_v51 = vld [vmem:[%s2306_s4 + $0x1a0] sm:$0xf]  ;;  %v1986_v52 = vld [vmem:[%s2306_s4 + $0x1a4] sm:$0xf0] }
  0x60   : > { %739 = vmatmul.bf16.gmra.mxu0 %v1622_v60  ;;  %819 = vmatmul.bf16.gmra.mxu2 %v1750_v61  ;;  %v1666_v60 = vor.u32 %v1949_v53, %v1663_v54  ;;  %v1794_v61 = vor.u32 %v1981_v55, %v1791_v56  ;;  %v1953_v53 = vld [vmem:[%s2306_s4 + $0xa4] sm:$0xf]  ;;  %v1679_v54 = vld [vmem:[%s2306_s4 + $0xa8] sm:$0xf0] }
  0x61   : > { %908 = vmatmul.bf16.gmra.mxu1 %v1626_v62  ;;  %988 = vmatmul.bf16.gmra.mxu3 %v1754_v63 }
  0x70   : > { %744 = vmatmul.bf16.gmra.mxu0 %v1630_v8  ;;  %824 = vmatmul.bf16.gmra.mxu2 %v1758_v9 }
  0x71   : > { %913 = vmatmul.bf16.gmra.mxu1 %v1634_v10  ;;  %993 = vmatmul.bf16.gmra.mxu3 %v1762_v11  ;;  %v1669_v10 = vld [vmem:[%s2306_s4 + $0x90] sm:$0xf] }
  0x72   : > { %v1670_v26 = vor.u32 %v1952_v13, %v1669_v10 }
  0x80   : > { %749 = vmatmul.bf16.gmra.mxu0 %v1638_v20  ;;  %829 = vmatmul.bf16.gmra.mxu2 %v1766_v21  ;;  %v1983_v20 = vld [vmem:[%s2306_s4 + $0x194] sm:$0xf]  ;;  %v1799_v21 = vld [vmem:[%s2306_s4 + $0x198] sm:$0xf0] }
  0x81   : > { %918 = vmatmul.bf16.gmra.mxu1 %v1642_v22  ;;  %998 = vmatmul.bf16.gmra.mxu3 %v1770_v23  ;;  %v1802_v30 = vor.u32 %v1983_v20, %v1799_v21 }
  0x90   : > { %754 = vmatmul.bf16.gmra.mxu0 %v1646_v32  ;;  %834 = vmatmul.bf16.gmra.mxu2 %v1774_v33 }
  0x91   : > { %923 = vmatmul.bf16.gmra.mxu1 %v1650_v34  ;;  %1003 = vmatmul.bf16.gmra.mxu3 %v1778_v35 }
  0xa0   : > { %759 = vmatmul.bf16.gmra.mxu0 %v1654_v44  ;;  %839 = vmatmul.bf16.gmra.mxu2 %v1782_v45 }
  0xa1   : > { %928 = vmatmul.bf16.gmra.mxu1 %v1658_v46  ;;  %1008 = vmatmul.bf16.gmra.mxu3 %v1786_v47  ;;  %v1677_v46 = vld [vmem:[%s2306_s4 + $0xa0] sm:$0xf] }
  0xad   : > { %v725_v59 = vpop.f32.mrf.mxu0 }
  0xae   : > { %v726_v62 = vadd.f32 %v2384_v48, %v725_v59  ;;  %v894_v63 = vpop.f32.mrf.mxu1 }
  0xb0   : > { %v895_v0 = vadd.f32 %v894_v63, %v726_v62  ;;  %764 = vmatmul.bf16.gmra.mxu0 %v1662_v57  ;;  %844 = vmatmul.bf16.gmra.mxu2 %v1790_v58  ;;  %v1985_v57 = vld [vmem:[%s2306_s4 + $0x1a4] sm:$0xf]  ;;  %v1807_v58 = vld [vmem:[%s2306_s4 + $0x1a8] sm:$0xf0]  ;;  %v1678_v63 = vor.u32 %v1954_v50, %v1677_v46 }
  0xb1   : > { %933 = vmatmul.bf16.gmra.mxu1 %v1666_v60  ;;  %1013 = vmatmul.bf16.gmra.mxu3 %v1794_v61 }
  0xb2   : > { %v1054_v1 = vmax.f32 %v895_v0, 0.0  ;;  %v1806_v0 = vor.u32 %v1986_v52, %v1805_v51 }
  0xb3   : > { %v805_v2 = vpop.f32.mrf.mxu2 }
  0xb4   : > { %v1118_v3 = vpack.c.bf16 %v1054_v1, %v1054_v1  ;;  %v806_v4 = vadd.f32 %v2384_v48, %v805_v2  ;;  %v974_v5 = vpop.f32.mrf.mxu3  ;;  %v1682_v2 = vor.u32 %v1953_v53, %v1679_v54 }
  0xb5   : > { %v727_v6 = vpop.f32.mrf.mxu0 }
  0xb6   : > { %1183 = vst.msk [vmem:[%s2397_s12] sm:$0xf] %vm1182_vm0, %v1118_v3  ;;  %v975_v7 = vadd.f32 %v974_v5, %v806_v4  ;;  %v728_v8 = vadd.f32 %v2384_v48, %v727_v6  ;;  %v896_v9 = vpop.f32.mrf.mxu1  ;;  %v1810_v3 = vor.u32 %v1985_v57, %v1807_v58 }
  0xb8   : > { %v1086_v11 = vmax.f32 %v975_v7, 0.0  ;;  %v897_v12 = vadd.f32 %v896_v9, %v728_v8 }
  0xba   : > { %v1150_v18 = vpack.c.bf16 %v1086_v11, %v1086_v11  ;;  %v1055_v19 = vmax.f32 %v897_v12, 0.0 }
  0xbb   : > { %v807_v22 = vpop.f32.mrf.mxu2 }
  0xbc   : > { %1215 = vst.msk [vmem:[%s2397_s12 + $0x80] sm:$0xf] %vm1182_vm0, %v1150_v18  ;;  %v1119_v23 = vpack.c.bf16 %v1055_v19, %v1055_v19  ;;  %v808_v24 = vadd.f32 %v2384_v48, %v807_v22  ;;  %v976_v25 = vpop.f32.mrf.mxu3  ;;  %v1685_v19 = vld [vmem:[%s2306_s4 + $0xb0] sm:$0xf]  ;;  %v1956_v22 = vld [vmem:[%s2306_s4 + $0xb4] sm:$0xf0] }
  0xbd   : > { %v730_v28 = vpop.f32.mrf.mxu0 }
  0xbe   : > { %1184 = vst.msk [vmem:[%s2397_s12 + $0x4] sm:$0xf] %vm1182_vm0, %v1119_v23  ;;  %v977_v31 = vadd.f32 %v976_v25, %v808_v24  ;;  %v731_v32 = vadd.f32 %v2384_v48, %v730_v28  ;;  %v899_v33 = vpop.f32.mrf.mxu1  ;;  %v1813_v23 = vld [vmem:[%s2306_s4 + $0x1b0] sm:$0xf]  ;;  %v1988_v24 = vld [vmem:[%s2306_s4 + $0x1b4] sm:$0xf0] }
  0xbf   : > { %v1955_v25 = vld [vmem:[%s2306_s4 + $0xb4] sm:$0xf] }
  0xc0   : > { %v1087_v34 = vmax.f32 %v977_v31, 0.0  ;;  %v900_v35 = vadd.f32 %v899_v33, %v731_v32  ;;  %769 = vmatmul.bf16.gmra.mxu0 %v1670_v26  ;;  %849 = vmatmul.bf16.gmra.mxu2 %v1798_v27  ;;  %v1687_v26 = vld [vmem:[%s2306_s4 + $0xb8] sm:$0xf0] }
  0xc1   : > { %938 = vmatmul.bf16.gmra.mxu1 %v1674_v29  ;;  %1018 = vmatmul.bf16.gmra.mxu3 %v1802_v30  ;;  %v1987_v29 = vld [vmem:[%s2306_s4 + $0x1b4] sm:$0xf]  ;;  %v1815_v30 = vld [vmem:[%s2306_s4 + $0x1b8] sm:$0xf0] }
  0xc2   : > { %v1151_v36 = vpack.c.bf16 %v1087_v34, %v1087_v34  ;;  %v1056_v37 = vmax.f32 %v900_v35, 0.0  ;;  %v1686_v35 = vor.u32 %v1956_v22, %v1685_v19 }
  0xc3   : > { %v810_v38 = vpop.f32.mrf.mxu2 }
  0xc4   : > { %1216 = vst.msk [vmem:[%s2397_s12 + $0x84] sm:$0xf] %vm1182_vm0, %v1151_v36  ;;  %v1120_v39 = vpack.c.bf16 %v1056_v37, %v1056_v37  ;;  %v811_v40 = vadd.f32 %v2384_v48, %v810_v38  ;;  %v979_v41 = vpop.f32.mrf.mxu3  ;;  %v1814_v36 = vor.u32 %v1988_v24, %v1813_v23  ;;  %v1690_v38 = vor.u32 %v1955_v25, %v1687_v26 }
  0xc5   : > { %v732_v42 = vpop.f32.mrf.mxu0 }
  0xc6   : > { %1185 = vst.msk [vmem:[%s2397_s12 + $0x8] sm:$0xf] %vm1182_vm0, %v1120_v39  ;;  %v980_v43 = vadd.f32 %v979_v41, %v811_v40  ;;  %v733_v44 = vadd.f32 %v2384_v48, %v732_v42  ;;  %v901_v45 = vpop.f32.mrf.mxu1  ;;  %v1818_v39 = vor.u32 %v1987_v29, %v1815_v30 }
  0xc8   : > { %v1088_v47 = vmax.f32 %v980_v43, 0.0  ;;  %v902_v49 = vadd.f32 %v901_v45, %v733_v44 }
  0xca   : > { %v1152_v55 = vpack.c.bf16 %v1088_v47, %v1088_v47  ;;  %v1057_v56 = vmax.f32 %v902_v49, 0.0 }
  0xcb   : > { %v812_v59 = vpop.f32.mrf.mxu2 }
  0xcc   : > { %1217 = vst.msk [vmem:[%s2397_s12 + $0x88] sm:$0xf] %vm1182_vm0, %v1152_v55  ;;  %v1121_v60 = vpack.c.bf16 %v1057_v56, %v1057_v56  ;;  %v813_v61 = vadd.f32 %v2384_v48, %v812_v59  ;;  %v981_v62 = vpop.f32.mrf.mxu3  ;;  %v1693_v56 = vld [vmem:[%s2306_s4 + $0xc0] sm:$0xf]  ;;  %v1958_v59 = vld [vmem:[%s2306_s4 + $0xc4] sm:$0xf0] }
  0xcd   : > { %v735_v1 = vpop.f32.mrf.mxu0 }
  0xce   : > { %1186 = vst.msk [vmem:[%s2397_s12 + $0xc] sm:$0xf] %vm1182_vm0, %v1121_v60  ;;  %v982_v4 = vadd.f32 %v981_v62, %v813_v61  ;;  %v736_v5 = vadd.f32 %v2384_v48, %v735_v1  ;;  %v904_v6 = vpop.f32.mrf.mxu1  ;;  %v1821_v60 = vld [vmem:[%s2306_s4 + $0x1c0] sm:$0xf]  ;;  %v1990_v61 = vld [vmem:[%s2306_s4 + $0x1c4] sm:$0xf0] }
  0xcf   : > { %v1957_v62 = vld [vmem:[%s2306_s4 + $0xc4] sm:$0xf] }
  0xd0   : > { %v1089_v7 = vmax.f32 %v982_v4, 0.0  ;;  %v905_v8 = vadd.f32 %v904_v6, %v736_v5  ;;  %774 = vmatmul.bf16.gmra.mxu0 %v1678_v63  ;;  %854 = vmatmul.bf16.gmra.mxu2 %v1806_v0  ;;  %v1695_v63 = vld [vmem:[%s2306_s4 + $0xc8] sm:$0xf0] }
  0xd1   : > { %943 = vmatmul.bf16.gmra.mxu1 %v1682_v2  ;;  %1023 = vmatmul.bf16.gmra.mxu3 %v1810_v3  ;;  %v1989_v2 = vld [vmem:[%s2306_s4 + $0x1c4] sm:$0xf]  ;;  %v1823_v3 = vld [vmem:[%s2306_s4 + $0x1c8] sm:$0xf0] }
  0xd2   : > { %v1153_v9 = vpack.c.bf16 %v1089_v7, %v1089_v7  ;;  %v1058_v10 = vmax.f32 %v905_v8, 0.0  ;;  %v1694_v8 = vor.u32 %v1958_v59, %v1693_v56 }
  0xd3   : > { %v815_v11 = vpop.f32.mrf.mxu2 }
  0xd4   : > { %1218 = vst.msk [vmem:[%s2397_s12 + $0x8c] sm:$0xf] %vm1182_vm0, %v1153_v9  ;;  %v1122_v12 = vpack.c.bf16 %v1058_v10, %v1058_v10  ;;  %v816_v13 = vadd.f32 %v2384_v48, %v815_v11  ;;  %v984_v14 = vpop.f32.mrf.mxu3  ;;  %v1822_v9 = vor.u32 %v1990_v61, %v1821_v60  ;;  %v1698_v11 = vor.u32 %v1957_v62, %v1695_v63 }
  0xd5   : > { %v737_v15 = vpop.f32.mrf.mxu0 }
  0xd6   : > { %1187 = vst.msk [vmem:[%s2397_s12 + $0x10] sm:$0xf] %vm1182_vm0, %v1122_v12  ;;  %v985_v16 = vadd.f32 %v984_v14, %v816_v13  ;;  %v738_v17 = vadd.f32 %v2384_v48, %v737_v15  ;;  %v906_v18 = vpop.f32.mrf.mxu1  ;;  %v1826_v12 = vor.u32 %v1989_v2, %v1823_v3 }
  0xd8   : > { %v1090_v20 = vmax.f32 %v985_v16, 0.0  ;;  %v907_v21 = vadd.f32 %v906_v18, %v738_v17 }
  0xda   : > { %v1154_v27 = vpack.c.bf16 %v1090_v20, %v1090_v20  ;;  %v1059_v28 = vmax.f32 %v907_v21, 0.0 }
  0xdb   : > { %v817_v31 = vpop.f32.mrf.mxu2 }
  0xdc   : > { %1219 = vst.msk [vmem:[%s2397_s12 + $0x90] sm:$0xf] %vm1182_vm0, %v1154_v27  ;;  %v1123_v32 = vpack.c.bf16 %v1059_v28, %v1059_v28  ;;  %v818_v33 = vadd.f32 %v2384_v48, %v817_v31  ;;  %v986_v34 = vpop.f32.mrf.mxu3  ;;  %v1701_v28 = vld [vmem:[%s2306_s4 + $0xd0] sm:$0xf]  ;;  %v1960_v31 = vld [vmem:[%s2306_s4 + $0xd4] sm:$0xf0] }
  0xdd   : > { %v740_v37 = vpop.f32.mrf.mxu0 }
  0xde   : > { %1188 = vst.msk [vmem:[%s2397_s12 + $0x14] sm:$0xf] %vm1182_vm0, %v1123_v32  ;;  %v987_v40 = vadd.f32 %v986_v34, %v818_v33  ;;  %v741_v41 = vadd.f32 %v2384_v48, %v740_v37  ;;  %v909_v42 = vpop.f32.mrf.mxu1  ;;  %v1829_v32 = vld [vmem:[%s2306_s4 + $0x1d0] sm:$0xf]  ;;  %v1992_v33 = vld [vmem:[%s2306_s4 + $0x1d4] sm:$0xf0] }
  0xdf   : > { %v1959_v34 = vld [vmem:[%s2306_s4 + $0xd4] sm:$0xf] }
  0xe0   : > { %v1091_v43 = vmax.f32 %v987_v40, 0.0  ;;  %v910_v44 = vadd.f32 %v909_v42, %v741_v41  ;;  %779 = vmatmul.bf16.gmra.mxu0 %v1686_v35  ;;  %859 = vmatmul.bf16.gmra.mxu2 %v1814_v36  ;;  %v1703_v35 = vld [vmem:[%s2306_s4 + $0xd8] sm:$0xf0] }
  0xe1   : > { %948 = vmatmul.bf16.gmra.mxu1 %v1690_v38  ;;  %1028 = vmatmul.bf16.gmra.mxu3 %v1818_v39  ;;  %v1991_v38 = vld [vmem:[%s2306_s4 + $0x1d4] sm:$0xf]  ;;  %v1831_v39 = vld [vmem:[%s2306_s4 + $0x1d8] sm:$0xf0] }
  0xe2   : > { %v1155_v45 = vpack.c.bf16 %v1091_v43, %v1091_v43  ;;  %v1060_v46 = vmax.f32 %v910_v44, 0.0  ;;  %v1702_v44 = vor.u32 %v1960_v31, %v1701_v28 }
  0xe3   : > { %v820_v47 = vpop.f32.mrf.mxu2 }
  0xe4   : > { %1220 = vst.msk [vmem:[%s2397_s12 + $0x94] sm:$0xf] %vm1182_vm0, %v1155_v45  ;;  %v1124_v49 = vpack.c.bf16 %v1060_v46, %v1060_v46  ;;  %v821_v50 = vadd.f32 %v2384_v48, %v820_v47  ;;  %v989_v51 = vpop.f32.mrf.mxu3  ;;  %v1830_v45 = vor.u32 %v1992_v33, %v1829_v32  ;;  %v1706_v47 = vor.u32 %v1959_v34, %v1703_v35 }
  0xe5   : > { %v742_v52 = vpop.f32.mrf.mxu0 }
  0xe6   : > { %1189 = vst.msk [vmem:[%s2397_s12 + $0x18] sm:$0xf] %vm1182_vm0, %v1124_v49  ;;  %v990_v53 = vadd.f32 %v989_v51, %v821_v50  ;;  %v743_v54 = vadd.f32 %v2384_v48, %v742_v52  ;;  %v911_v55 = vpop.f32.mrf.mxu1  ;;  %v1834_v49 = vor.u32 %v1991_v38, %v1831_v39 }
  0xe8   : > { %v1092_v57 = vmax.f32 %v990_v53, 0.0  ;;  %v912_v58 = vadd.f32 %v911_v55, %v743_v54 }
  0xea   : > { %v1156_v0 = vpack.c.bf16 %v1092_v57, %v1092_v57  ;;  %v1061_v1 = vmax.f32 %v912_v58, 0.0 }
  0xeb   : > { %v822_v4 = vpop.f32.mrf.mxu2 }
  0xec   : > { %1221 = vst.msk [vmem:[%s2397_s12 + $0x98] sm:$0xf] %vm1182_vm0, %v1156_v0  ;;  %v1125_v5 = vpack.c.bf16 %v1061_v1, %v1061_v1  ;;  %v823_v6 = vadd.f32 %v2384_v48, %v822_v4  ;;  %v991_v7 = vpop.f32.mrf.mxu3  ;;  %v1709_v1 = vld [vmem:[%s2306_s4 + $0xe0] sm:$0xf]  ;;  %v1962_v4 = vld [vmem:[%s2306_s4 + $0xe4] sm:$0xf0] }
  0xed   : > { %v745_v10 = vpop.f32.mrf.mxu0 }
  0xee   : > { %1190 = vst.msk [vmem:[%s2397_s12 + $0x1c] sm:$0xf] %vm1182_vm0, %v1125_v5  ;;  %v992_v13 = vadd.f32 %v991_v7, %v823_v6  ;;  %v746_v14 = vadd.f32 %v2384_v48, %v745_v10  ;;  %v914_v15 = vpop.f32.mrf.mxu1  ;;  %v1837_v5 = vld [vmem:[%s2306_s4 + $0x1e0] sm:$0xf]  ;;  %v1994_v6 = vld [vmem:[%s2306_s4 + $0x1e4] sm:$0xf0] }
  0xef   : > { %v1961_v7 = vld [vmem:[%s2306_s4 + $0xe4] sm:$0xf] }
  0xf0   : > { %v1093_v16 = vmax.f32 %v992_v13, 0.0  ;;  %v915_v17 = vadd.f32 %v914_v15, %v746_v14  ;;  %784 = vmatmul.bf16.gmra.mxu0 %v1694_v8  ;;  %864 = vmatmul.bf16.gmra.mxu2 %v1822_v9  ;;  %v1711_v8 = vld [vmem:[%s2306_s4 + $0xe8] sm:$0xf0] }
  0xf1   : > { %953 = vmatmul.bf16.gmra.mxu1 %v1698_v11  ;;  %1033 = vmatmul.bf16.gmra.mxu3 %v1826_v12  ;;  %v1993_v11 = vld [vmem:[%s2306_s4 + $0x1e4] sm:$0xf]  ;;  %v1839_v12 = vld [vmem:[%s2306_s4 + $0x1e8] sm:$0xf0] }
  0xf2   : > { %v1157_v18 = vpack.c.bf16 %v1093_v16, %v1093_v16  ;;  %v1062_v19 = vmax.f32 %v915_v17, 0.0  ;;  %v1710_v17 = vor.u32 %v1962_v4, %v1709_v1 }
  0xf3   : > { %v825_v20 = vpop.f32.mrf.mxu2 }
  0xf4   : > { %1222 = vst.msk [vmem:[%s2397_s12 + $0x9c] sm:$0xf] %vm1182_vm0, %v1157_v18  ;;  %v1126_v21 = vpack.c.bf16 %v1062_v19, %v1062_v19  ;;  %v826_v22 = vadd.f32 %v2384_v48, %v825_v20  ;;  %v994_v23 = vpop.f32.mrf.mxu3  ;;  %v1838_v18 = vor.u32 %v1994_v6, %v1837_v5  ;;  %v1714_v20 = vor.u32 %v1961_v7, %v1711_v8 }
  0xf5   : > { %v747_v24 = vpop.f32.mrf.mxu0 }
  0xf6   : > { %1191 = vst.msk [vmem:[%s2397_s12 + $0x20] sm:$0xf] %vm1182_vm0, %v1126_v21  ;;  %v995_v25 = vadd.f32 %v994_v23, %v826_v22  ;;  %v748_v26 = vadd.f32 %v2384_v48, %v747_v24  ;;  %v916_v27 = vpop.f32.mrf.mxu1  ;;  %v1842_v21 = vor.u32 %v1993_v11, %v1839_v12 }
  0xf8   : > { %v1094_v29 = vmax.f32 %v995_v25, 0.0  ;;  %v917_v30 = vadd.f32 %v916_v27, %v748_v26 }
  0xfa   : > { %v1158_v36 = vpack.c.bf16 %v1094_v29, %v1094_v29  ;;  %v1063_v37 = vmax.f32 %v917_v30, 0.0 }
  0xfb   : > { %v827_v40 = vpop.f32.mrf.mxu2 }
  0xfc   : > { %1223 = vst.msk [vmem:[%s2397_s12 + $0xa0] sm:$0xf] %vm1182_vm0, %v1158_v36  ;;  %v1127_v41 = vpack.c.bf16 %v1063_v37, %v1063_v37  ;;  %v828_v42 = vadd.f32 %v2384_v48, %v827_v40  ;;  %v996_v43 = vpop.f32.mrf.mxu3  ;;  %v1717_v37 = vld [vmem:[%s2306_s4 + $0xf0] sm:$0xf]  ;;  %v1964_v40 = vld [vmem:[%s2306_s4 + $0xf4] sm:$0xf0] }
  0xfd   : > { %v750_v46 = vpop.f32.mrf.mxu0 }
  0xfe   : > { %1192 = vst.msk [vmem:[%s2397_s12 + $0x24] sm:$0xf] %vm1182_vm0, %v1127_v41  ;;  %v997_v50 = vadd.f32 %v996_v43, %v828_v42  ;;  %v751_v51 = vadd.f32 %v2384_v48, %v750_v46  ;;  %v919_v52 = vpop.f32.mrf.mxu1  ;;  %v1845_v41 = vld [vmem:[%s2306_s4 + $0x1f0] sm:$0xf]  ;;  %v1996_v42 = vld [vmem:[%s2306_s4 + $0x1f4] sm:$0xf0] }
  0xff   : > { %v1963_v43 = vld [vmem:[%s2306_s4 + $0xf4] sm:$0xf] }
 0x100   : > { %v1095_v53 = vmax.f32 %v997_v50, 0.0  ;;  %v920_v54 = vadd.f32 %v919_v52, %v751_v51  ;;  %789 = vmatmul.bf16.gmra.mxu0 %v1702_v44  ;;  %869 = vmatmul.bf16.gmra.mxu2 %v1830_v45  ;;  %v1719_v44 = vld [vmem:[%s2306_s4 + $0xf8] sm:$0xf0] }
 0x101   : > { %958 = vmatmul.bf16.gmra.mxu1 %v1706_v47  ;;  %1038 = vmatmul.bf16.gmra.mxu3 %v1834_v49  ;;  %v1995_v47 = vld [vmem:[%s2306_s4 + $0x1f4] sm:$0xf]  ;;  %v1847_v49 = vld [vmem:[%s2306_s4 + $0x1f8] sm:$0xf0] }
 0x102   : > { %v1159_v55 = vpack.c.bf16 %v1095_v53, %v1095_v53  ;;  %v1064_v56 = vmax.f32 %v920_v54, 0.0  ;;  %v1718_v54 = vor.u32 %v1964_v40, %v1717_v37 }
 0x103   : > { %v830_v57 = vpop.f32.mrf.mxu2 }
 0x104   : > { %1224 = vst.msk [vmem:[%s2397_s12 + $0xa4] sm:$0xf] %vm1182_vm0, %v1159_v55  ;;  %v1128_v58 = vpack.c.bf16 %v1064_v56, %v1064_v56  ;;  %v831_v59 = vadd.f32 %v2384_v48, %v830_v57  ;;  %v999_v60 = vpop.f32.mrf.mxu3  ;;  %v1846_v55 = vor.u32 %v1996_v42, %v1845_v41  ;;  %v1722_v57 = vor.u32 %v1963_v43, %v1719_v44 }
 0x105   : > { %v752_v61 = vpop.f32.mrf.mxu0 }
 0x106   : > { %1193 = vst.msk [vmem:[%s2397_s12 + $0x28] sm:$0xf] %vm1182_vm0, %v1128_v58  ;;  %v1000_v62 = vadd.f32 %v999_v60, %v831_v59  ;;  %v753_v63 = vadd.f32 %v2384_v48, %v752_v61  ;;  %v921_v0 = vpop.f32.mrf.mxu1  ;;  %v1850_v58 = vor.u32 %v1995_v47, %v1847_v49 }
 0x108   : > { %v1096_v2 = vmax.f32 %v1000_v62, 0.0  ;;  %v922_v3 = vadd.f32 %v921_v0, %v753_v63 }
 0x10a   : > { %v1160_v9 = vpack.c.bf16 %v1096_v2, %v1096_v2  ;;  %v1065_v10 = vmax.f32 %v922_v3, 0.0 }
 0x10b   : > { %v832_v13 = vpop.f32.mrf.mxu2 }
 0x10c   : > { %1225 = vst.msk [vmem:[%s2397_s12 + $0xa8] sm:$0xf] %vm1182_vm0, %v1160_v9  ;;  %v1129_v14 = vpack.c.bf16 %v1065_v10, %v1065_v10  ;;  %v833_v15 = vadd.f32 %v2384_v48, %v832_v13  ;;  %v1001_v16 = vpop.f32.mrf.mxu3 }
 0x10d   : > { %v755_v19 = vpop.f32.mrf.mxu0 }
 0x10e   : > { %1194 = vst.msk [vmem:[%s2397_s12 + $0x2c] sm:$0xf] %vm1182_vm0, %v1129_v14  ;;  %v1002_v22 = vadd.f32 %v1001_v16, %v833_v15  ;;  %v756_v23 = vadd.f32 %v2384_v48, %v755_v19  ;;  %v924_v24 = vpop.f32.mrf.mxu1 }
 0x110   : > { %v1097_v25 = vmax.f32 %v1002_v22, 0.0  ;;  %v925_v26 = vadd.f32 %v924_v24, %v756_v23  ;;  %794 = vmatmul.bf16.gmra.mxu0 %v1710_v17  ;;  %874 = vmatmul.bf16.gmra.mxu2 %v1838_v18 }
 0x111   : > { %963 = vmatmul.bf16.gmra.mxu1 %v1714_v20  ;;  %1043 = vmatmul.bf16.gmra.mxu3 %v1842_v21 }
 0x112   : > { %v1161_v27 = vpack.c.bf16 %v1097_v25, %v1097_v25  ;;  %v1066_v28 = vmax.f32 %v925_v26, 0.0 }
 0x113   : > { %v835_v29 = vpop.f32.mrf.mxu2 }
 0x114   : > { %1226 = vst.msk [vmem:[%s2397_s12 + $0xac] sm:$0xf] %vm1182_vm0, %v1161_v27  ;;  %v1130_v30 = vpack.c.bf16 %v1066_v28, %v1066_v28  ;;  %v836_v31 = vadd.f32 %v2384_v48, %v835_v29  ;;  %v1004_v32 = vpop.f32.mrf.mxu3 }
 0x115   : > { %v757_v33 = vpop.f32.mrf.mxu0 }
 0x116   : > { %1195 = vst.msk [vmem:[%s2397_s12 + $0x30] sm:$0xf] %vm1182_vm0, %v1130_v30  ;;  %v1005_v34 = vadd.f32 %v1004_v32, %v836_v31  ;;  %v758_v35 = vadd.f32 %v2384_v48, %v757_v33  ;;  %v926_v36 = vpop.f32.mrf.mxu1 }
 0x118   : > { %v1098_v38 = vmax.f32 %v1005_v34, 0.0  ;;  %v927_v39 = vadd.f32 %v926_v36, %v758_v35 }
 0x11a   : > { %v1162_v45 = vpack.c.bf16 %v1098_v38, %v1098_v38  ;;  %v1067_v46 = vmax.f32 %v927_v39, 0.0 }
 0x11b   : > { %v837_v50 = vpop.f32.mrf.mxu2 }
 0x11c   : > { %1227 = vst.msk [vmem:[%s2397_s12 + $0xb0] sm:$0xf] %vm1182_vm0, %v1162_v45  ;;  %v1131_v51 = vpack.c.bf16 %v1067_v46, %v1067_v46  ;;  %v838_v52 = vadd.f32 %v2384_v48, %v837_v50  ;;  %v1006_v53 = vpop.f32.mrf.mxu3 }
 0x11d   : > { %v760_v56 = vpop.f32.mrf.mxu0 }
 0x11e   : > { %1196 = vst.msk [vmem:[%s2397_s12 + $0x34] sm:$0xf] %vm1182_vm0, %v1131_v51  ;;  %v1007_v59 = vadd.f32 %v1006_v53, %v838_v52  ;;  %v761_v60 = vadd.f32 %v2384_v48, %v760_v56  ;;  %v929_v61 = vpop.f32.mrf.mxu1 }
 0x120   : > { %v1099_v62 = vmax.f32 %v1007_v59, 0.0  ;;  %v930_v63 = vadd.f32 %v929_v61, %v761_v60  ;;  %799 = vmatmul.bf16.gmra.mxu0 %v1718_v54  ;;  %879 = vmatmul.bf16.gmra.mxu2 %v1846_v55 }
 0x121   : > { %968 = vmatmul.bf16.gmra.mxu1 %v1722_v57  ;;  %1048 = vmatmul.bf16.gmra.mxu3 %v1850_v58 }
 0x122   : > { %v1163_v0 = vpack.c.bf16 %v1099_v62, %v1099_v62  ;;  %v1068_v1 = vmax.f32 %v930_v63, 0.0 }
 0x123   : > { %v840_v2 = vpop.f32.mrf.mxu2 }
 0x124   : > { %1228 = vst.msk [vmem:[%s2397_s12 + $0xb4] sm:$0xf] %vm1182_vm0, %v1163_v0  ;;  %v1132_v3 = vpack.c.bf16 %v1068_v1, %v1068_v1  ;;  %v841_v4 = vadd.f32 %v2384_v48, %v840_v2  ;;  %v1009_v5 = vpop.f32.mrf.mxu3 }
 0x125   : > { %v762_v6 = vpop.f32.mrf.mxu0 }
 0x126   : > { %1197 = vst.msk [vmem:[%s2397_s12 + $0x38] sm:$0xf] %vm1182_vm0, %v1132_v3  ;;  %v1010_v7 = vadd.f32 %v1009_v5, %v841_v4  ;;  %v763_v8 = vadd.f32 %v2384_v48, %v762_v6  ;;  %v931_v9 = vpop.f32.mrf.mxu1 }
 0x128   : > { %v1100_v10 = vmax.f32 %v1010_v7, 0.0  ;;  %v932_v11 = vadd.f32 %v931_v9, %v763_v8 }
 0x12a   : > { %v1164_v12 = vpack.c.bf16 %v1100_v10, %v1100_v10  ;;  %v1069_v13 = vmax.f32 %v932_v11, 0.0 }
 0x12b   : > { %v842_v14 = vpop.f32.mrf.mxu2 }
 0x12c   : > { %1229 = vst.msk [vmem:[%s2397_s12 + $0xb8] sm:$0xf] %vm1182_vm0, %v1164_v12  ;;  %v1133_v15 = vpack.c.bf16 %v1069_v13, %v1069_v13  ;;  %v843_v16 = vadd.f32 %v2384_v48, %v842_v14  ;;  %v1011_v17 = vpop.f32.mrf.mxu3 }
 0x12d   : > { %v765_v18 = vpop.f32.mrf.mxu0 }
 0x12e   : > { %1198 = vst.msk [vmem:[%s2397_s12 + $0x3c] sm:$0xf] %vm1182_vm0, %v1133_v15  ;;  %v1012_v19 = vadd.f32 %v1011_v17, %v843_v16  ;;  %v766_v20 = vadd.f32 %v2384_v48, %v765_v18  ;;  %v934_v21 = vpop.f32.mrf.mxu1 }
 0x130   : > { %v1101_v22 = vmax.f32 %v1012_v19, 0.0  ;;  %v935_v23 = vadd.f32 %v934_v21, %v766_v20 }
 0x132   : > { %v1165_v24 = vpack.c.bf16 %v1101_v22, %v1101_v22  ;;  %v1070_v25 = vmax.f32 %v935_v23, 0.0 }
 0x133   : > { %v845_v26 = vpop.f32.mrf.mxu2 }
 0x134   : > { %1230 = vst.msk [vmem:[%s2397_s12 + $0xbc] sm:$0xf] %vm1182_vm0, %v1165_v24  ;;  %v1134_v27 = vpack.c.bf16 %v1070_v25, %v1070_v25  ;;  %v846_v28 = vadd.f32 %v2384_v48, %v845_v26  ;;  %v1014_v29 = vpop.f32.mrf.mxu3 }
 0x135   : > { %v767_v30 = vpop.f32.mrf.mxu0 }
 0x136   : > { %1199 = vst.msk [vmem:[%s2397_s12 + $0x40] sm:$0xf] %vm1182_vm0, %v1134_v27  ;;  %v1015_v31 = vadd.f32 %v1014_v29, %v846_v28  ;;  %v768_v32 = vadd.f32 %v2384_v48, %v767_v30  ;;  %v936_v33 = vpop.f32.mrf.mxu1 }
 0x138   : > { %v1102_v34 = vmax.f32 %v1015_v31, 0.0  ;;  %v937_v35 = vadd.f32 %v936_v33, %v768_v32 }
 0x13a   : > { %v1166_v36 = vpack.c.bf16 %v1102_v34, %v1102_v34  ;;  %v1071_v37 = vmax.f32 %v937_v35, 0.0 }
 0x13b   : > { %v847_v38 = vpop.f32.mrf.mxu2 }
 0x13c   : > { %1231 = vst.msk [vmem:[%s2397_s12 + $0xc0] sm:$0xf] %vm1182_vm0, %v1166_v36  ;;  %v1135_v39 = vpack.c.bf16 %v1071_v37, %v1071_v37  ;;  %v848_v40 = vadd.f32 %v2384_v48, %v847_v38  ;;  %v1016_v41 = vpop.f32.mrf.mxu3 }
 0x13d   : > { %v770_v42 = vpop.f32.mrf.mxu0 }
 0x13e   : > { %1200 = vst.msk [vmem:[%s2397_s12 + $0x44] sm:$0xf] %vm1182_vm0, %v1135_v39  ;;  %v1017_v43 = vadd.f32 %v1016_v41, %v848_v40  ;;  %v771_v44 = vadd.f32 %v2384_v48, %v770_v42  ;;  %v939_v45 = vpop.f32.mrf.mxu1 }
 0x140   : > { %v1103_v46 = vmax.f32 %v1017_v43, 0.0  ;;  %v940_v47 = vadd.f32 %v939_v45, %v771_v44 }
 0x142   : > { %v1167_v49 = vpack.c.bf16 %v1103_v46, %v1103_v46  ;;  %v1072_v50 = vmax.f32 %v940_v47, 0.0 }
 0x143   : > { %v850_v51 = vpop.f32.mrf.mxu2 }
 0x144   : > { %1232 = vst.msk [vmem:[%s2397_s12 + $0xc4] sm:$0xf] %vm1182_vm0, %v1167_v49  ;;  %v1136_v52 = vpack.c.bf16 %v1072_v50, %v1072_v50  ;;  %v851_v53 = vadd.f32 %v2384_v48, %v850_v51  ;;  %v1019_v54 = vpop.f32.mrf.mxu3 }
 0x145   : > { %v772_v55 = vpop.f32.mrf.mxu0 }
 0x146   : > { %1201 = vst.msk [vmem:[%s2397_s12 + $0x48] sm:$0xf] %vm1182_vm0, %v1136_v52  ;;  %v1020_v56 = vadd.f32 %v1019_v54, %v851_v53  ;;  %v773_v57 = vadd.f32 %v2384_v48, %v772_v55  ;;  %v941_v58 = vpop.f32.mrf.mxu1 }
 0x148   : > { %v1104_v59 = vmax.f32 %v1020_v56, 0.0  ;;  %v942_v60 = vadd.f32 %v941_v58, %v773_v57 }
 0x14a   : > { %v1168_v61 = vpack.c.bf16 %v1104_v59, %v1104_v59  ;;  %v1073_v62 = vmax.f32 %v942_v60, 0.0 }
 0x14b   : > { %v852_v63 = vpop.f32.mrf.mxu2 }
 0x14c   : > { %1233 = vst.msk [vmem:[%s2397_s12 + $0xc8] sm:$0xf] %vm1182_vm0, %v1168_v61  ;;  %v1137_v0 = vpack.c.bf16 %v1073_v62, %v1073_v62  ;;  %v853_v1 = vadd.f32 %v2384_v48, %v852_v63  ;;  %v1021_v2 = vpop.f32.mrf.mxu3 }
 0x14d   : > { %v775_v3 = vpop.f32.mrf.mxu0 }
 0x14e   : > { %1202 = vst.msk [vmem:[%s2397_s12 + $0x4c] sm:$0xf] %vm1182_vm0, %v1137_v0  ;;  %v1022_v4 = vadd.f32 %v1021_v2, %v853_v1  ;;  %v776_v5 = vadd.f32 %v2384_v48, %v775_v3  ;;  %v944_v6 = vpop.f32.mrf.mxu1 }
 0x150   : > { %v1105_v7 = vmax.f32 %v1022_v4, 0.0  ;;  %v945_v8 = vadd.f32 %v944_v6, %v776_v5 }
 0x152   : > { %v1169_v9 = vpack.c.bf16 %v1105_v7, %v1105_v7  ;;  %v1074_v10 = vmax.f32 %v945_v8, 0.0 }
 0x153   : > { %v855_v11 = vpop.f32.mrf.mxu2 }
 0x154   : > { %1234 = vst.msk [vmem:[%s2397_s12 + $0xcc] sm:$0xf] %vm1182_vm0, %v1169_v9  ;;  %v1138_v12 = vpack.c.bf16 %v1074_v10, %v1074_v10  ;;  %v856_v13 = vadd.f32 %v2384_v48, %v855_v11  ;;  %v1024_v14 = vpop.f32.mrf.mxu3 }
 0x155   : > { %v777_v15 = vpop.f32.mrf.mxu0 }
 0x156   : > { %1203 = vst.msk [vmem:[%s2397_s12 + $0x50] sm:$0xf] %vm1182_vm0, %v1138_v12  ;;  %v1025_v16 = vadd.f32 %v1024_v14, %v856_v13  ;;  %v778_v17 = vadd.f32 %v2384_v48, %v777_v15  ;;  %v946_v18 = vpop.f32.mrf.mxu1 }
 0x158   : > { %v1106_v19 = vmax.f32 %v1025_v16, 0.0  ;;  %v947_v20 = vadd.f32 %v946_v18, %v778_v17 }
 0x15a   : > { %v1170_v21 = vpack.c.bf16 %v1106_v19, %v1106_v19  ;;  %v1075_v22 = vmax.f32 %v947_v20, 0.0 }
 0x15b   : > { %v857_v23 = vpop.f32.mrf.mxu2 }
 0x15c   : > { %1235 = vst.msk [vmem:[%s2397_s12 + $0xd0] sm:$0xf] %vm1182_vm0, %v1170_v21  ;;  %v1139_v24 = vpack.c.bf16 %v1075_v22, %v1075_v22  ;;  %v858_v25 = vadd.f32 %v2384_v48, %v857_v23  ;;  %v1026_v26 = vpop.f32.mrf.mxu3 }
 0x15d   : > { %v780_v27 = vpop.f32.mrf.mxu0 }
 0x15e   : > { %1204 = vst.msk [vmem:[%s2397_s12 + $0x54] sm:$0xf] %vm1182_vm0, %v1139_v24  ;;  %v1027_v28 = vadd.f32 %v1026_v26, %v858_v25  ;;  %v781_v29 = vadd.f32 %v2384_v48, %v780_v27  ;;  %v949_v30 = vpop.f32.mrf.mxu1 }
 0x160   : > { %v1107_v31 = vmax.f32 %v1027_v28, 0.0  ;;  %v950_v32 = vadd.f32 %v949_v30, %v781_v29 }
 0x162   : > { %v1171_v33 = vpack.c.bf16 %v1107_v31, %v1107_v31  ;;  %v1076_v34 = vmax.f32 %v950_v32, 0.0 }
 0x163   : > { %v860_v35 = vpop.f32.mrf.mxu2 }
 0x164   : > { %1236 = vst.msk [vmem:[%s2397_s12 + $0xd4] sm:$0xf] %vm1182_vm0, %v1171_v33  ;;  %v1140_v36 = vpack.c.bf16 %v1076_v34, %v1076_v34  ;;  %v861_v37 = vadd.f32 %v2384_v48, %v860_v35  ;;  %v1029_v38 = vpop.f32.mrf.mxu3  ;;  %v2121_v34 = vld [vmem:[%s2783_s2] ss:$0 sm:$0xff] }
 0x165   : > { %v782_v39 = vpop.f32.mrf.mxu0 }
 0x166   : > { %1205 = vst.msk [vmem:[%s2397_s12 + $0x58] sm:$0xf] %vm1182_vm0, %v1140_v36  ;;  %v1030_v40 = vadd.f32 %v1029_v38, %v861_v37  ;;  %v783_v41 = vadd.f32 %v2384_v48, %v782_v39  ;;  %v951_v42 = vpop.f32.mrf.mxu1 }
 0x168   : > { %v1108_v43 = vmax.f32 %v1030_v40, 0.0  ;;  %v952_v44 = vadd.f32 %v951_v42, %v783_v41 }
 0x16a   : > { %v1172_v45 = vpack.c.bf16 %v1108_v43, %v1108_v43  ;;  %v1077_v46 = vmax.f32 %v952_v44, 0.0 }
 0x16b   : > { %v862_v47 = vpop.f32.mrf.mxu2 }
 0x16c   : > { %1237 = vst.msk [vmem:[%s2397_s12 + $0xd8] sm:$0xf] %vm1182_vm0, %v1172_v45  ;;  %v1141_v49 = vpack.c.bf16 %v1077_v46, %v1077_v46  ;;  %v863_v50 = vadd.f32 %v2384_v48, %v862_v47  ;;  %v1031_v51 = vpop.f32.mrf.mxu3 }
 0x16d   : > { %v785_v52 = vpop.f32.mrf.mxu0 }
 0x16e   : > { %1206 = vst.msk [vmem:[%s2397_s12 + $0x5c] sm:$0xf] %vm1182_vm0, %v1141_v49  ;;  %v1032_v53 = vadd.f32 %v1031_v51, %v863_v50  ;;  %v786_v54 = vadd.f32 %v2384_v48, %v785_v52  ;;  %v954_v55 = vpop.f32.mrf.mxu1 }
 0x170   : > { %v1109_v56 = vmax.f32 %v1032_v53, 0.0  ;;  %v955_v57 = vadd.f32 %v954_v55, %v786_v54 }
 0x172   : > { %v1173_v58 = vpack.c.bf16 %v1109_v56, %v1109_v56  ;;  %v1078_v59 = vmax.f32 %v955_v57, 0.0 }
 0x173   : > { %v865_v60 = vpop.f32.mrf.mxu2 }
 0x174   : > { %1238 = vst.msk [vmem:[%s2397_s12 + $0xdc] sm:$0xf] %vm1182_vm0, %v1173_v58  ;;  %v1142_v61 = vpack.c.bf16 %v1078_v59, %v1078_v59  ;;  %v866_v62 = vadd.f32 %v2384_v48, %v865_v60  ;;  %v1034_v63 = vpop.f32.mrf.mxu3 }
 0x175   : > { %v787_v0 = vpop.f32.mrf.mxu0 }
 0x176   : > { %1207 = vst.msk [vmem:[%s2397_s12 + $0x60] sm:$0xf] %vm1182_vm0, %v1142_v61  ;;  %v1035_v1 = vadd.f32 %v1034_v63, %v866_v62  ;;  %v788_v2 = vadd.f32 %v2384_v48, %v787_v0  ;;  %v956_v3 = vpop.f32.mrf.mxu1 }
 0x178   : > { %v1110_v4 = vmax.f32 %v1035_v1, 0.0  ;;  %v957_v5 = vadd.f32 %v956_v3, %v788_v2 }
 0x17a   : > { %v1174_v6 = vpack.c.bf16 %v1110_v4, %v1110_v4  ;;  %v1079_v7 = vmax.f32 %v957_v5, 0.0 }
 0x17b   : > { %v867_v8 = vpop.f32.mrf.mxu2 }
 0x17c   : > { %1239 = vst.msk [vmem:[%s2397_s12 + $0xe0] sm:$0xf] %vm1182_vm0, %v1174_v6  ;;  %v1143_v9 = vpack.c.bf16 %v1079_v7, %v1079_v7  ;;  %v868_v10 = vadd.f32 %v2384_v48, %v867_v8  ;;  %v1036_v11 = vpop.f32.mrf.mxu3 }
 0x17d   : > { %v790_v12 = vpop.f32.mrf.mxu0 }
 0x17e   : > { %1208 = vst.msk [vmem:[%s2397_s12 + $0x64] sm:$0xf] %vm1182_vm0, %v1143_v9  ;;  %v1037_v13 = vadd.f32 %v1036_v11, %v868_v10  ;;  %v791_v14 = vadd.f32 %v2384_v48, %v790_v12  ;;  %v959_v15 = vpop.f32.mrf.mxu1 }
 0x180   : > { %v1111_v16 = vmax.f32 %v1037_v13, 0.0  ;;  %v960_v17 = vadd.f32 %v959_v15, %v791_v14 }
 0x182   : > { %v1175_v18 = vpack.c.bf16 %v1111_v16, %v1111_v16  ;;  %v1080_v19 = vmax.f32 %v960_v17, 0.0 }
 0x183   : > { %v870_v20 = vpop.f32.mrf.mxu2 }
 0x184   : > { %1240 = vst.msk [vmem:[%s2397_s12 + $0xe4] sm:$0xf] %vm1182_vm0, %v1175_v18  ;;  %v1144_v21 = vpack.c.bf16 %v1080_v19, %v1080_v19  ;;  %v871_v22 = vadd.f32 %v2384_v48, %v870_v20  ;;  %v1039_v23 = vpop.f32.mrf.mxu3 }
 0x185   : > { %v792_v24 = vpop.f32.mrf.mxu0 }
 0x186   : > { %1209 = vst.msk [vmem:[%s2397_s12 + $0x68] sm:$0xf] %vm1182_vm0, %v1144_v21  ;;  %v1040_v25 = vadd.f32 %v1039_v23, %v871_v22  ;;  %v793_v26 = vadd.f32 %v2384_v48, %v792_v24  ;;  %v961_v27 = vpop.f32.mrf.mxu1 }
 0x188   : > { %v1112_v28 = vmax.f32 %v1040_v25, 0.0  ;;  %v962_v29 = vadd.f32 %v961_v27, %v793_v26 }
 0x18a   : > { %v1176_v30 = vpack.c.bf16 %v1112_v28, %v1112_v28  ;;  %v1081_v31 = vmax.f32 %v962_v29, 0.0 }
 0x18b   : > { %v872_v32 = vpop.f32.mrf.mxu2 }
 0x18c   : > { %1241 = vst.msk [vmem:[%s2397_s12 + $0xe8] sm:$0xf] %vm1182_vm0, %v1176_v30  ;;  %v1145_v33 = vpack.c.bf16 %v1081_v31, %v1081_v31  ;;  %v873_v35 = vadd.f32 %v2121_v34, %v872_v32  ;;  %v1041_v36 = vpop.f32.mrf.mxu3 }
 0x18d   : > { %v795_v37 = vpop.f32.mrf.mxu0 }
 0x18e   : > { %1210 = vst.msk [vmem:[%s2397_s12 + $0x6c] sm:$0xf] %vm1182_vm0, %v1145_v33  ;;  %v1042_v48 = vadd.f32 %v1041_v36, %v873_v35  ;;  %v796_v38 = vadd.f32 %v2121_v34, %v795_v37  ;;  %v964_v39 = vpop.f32.mrf.mxu1 }
 0x190   : > { %v1113_v40 = vmax.f32 %v1042_v48, 0.0  ;;  %v965_v41 = vadd.f32 %v964_v39, %v796_v38 }
 0x192   : > { %v1177_v42 = vpack.c.bf16 %v1113_v40, %v1113_v40  ;;  %v1082_v43 = vmax.f32 %v965_v41, 0.0 }
 0x193   : > { %v875_v44 = vpop.f32.mrf.mxu2 }
 0x194   : > { %1242 = vst.msk [vmem:[%s2397_s12 + $0xec] sm:$0xf] %vm1182_vm0, %v1177_v42  ;;  %v1146_v45 = vpack.c.bf16 %v1082_v43, %v1082_v43  ;;  %v876_v46 = vadd.f32 %v2121_v34, %v875_v44  ;;  %v1044_v47 = vpop.f32.mrf.mxu3 }
 0x195   : > { %v797_v49 = vpop.f32.mrf.mxu0 }
 0x196   : > { %1211 = vst.msk [vmem:[%s2397_s12 + $0x70] sm:$0xf] %vm1182_vm0, %v1146_v45  ;;  %v1045_v50 = vadd.f32 %v1044_v47, %v876_v46  ;;  %v798_v51 = vadd.f32 %v2121_v34, %v797_v49  ;;  %v966_v52 = vpop.f32.mrf.mxu1 }
 0x198   : > { %v1114_v53 = vmax.f32 %v1045_v50, 0.0  ;;  %v967_v54 = vadd.f32 %v966_v52, %v798_v51 }
 0x19a   : > { %v1178_v55 = vpack.c.bf16 %v1114_v53, %v1114_v53  ;;  %v1083_v56 = vmax.f32 %v967_v54, 0.0 }
 0x19b   : > { %v877_v57 = vpop.f32.mrf.mxu2 }
 0x19c   : > { %1243 = vst.msk [vmem:[%s2397_s12 + $0xf0] sm:$0xf] %vm1182_vm0, %v1178_v55  ;;  %v1147_v58 = vpack.c.bf16 %v1083_v56, %v1083_v56  ;;  %v878_v59 = vadd.f32 %v2121_v34, %v877_v57  ;;  %v1046_v60 = vpop.f32.mrf.mxu3 }
 0x19d   : > { %v800_v61 = vpop.f32.mrf.mxu0 }
 0x19e   : > { %1212 = vst.msk [vmem:[%s2397_s12 + $0x74] sm:$0xf] %vm1182_vm0, %v1147_v58  ;;  %v1047_v62 = vadd.f32 %v1046_v60, %v878_v59  ;;  %v801_v63 = vadd.f32 %v2121_v34, %v800_v61  ;;  %v969_v0 = vpop.f32.mrf.mxu1 }
 0x1a0   : > { %v1115_v1 = vmax.f32 %v1047_v62, 0.0  ;;  %v970_v2 = vadd.f32 %v969_v0, %v801_v63 }
 0x1a2   : > { %v1179_v3 = vpack.c.bf16 %v1115_v1, %v1115_v1  ;;  %v1084_v4 = vmax.f32 %v970_v2, 0.0 }
 0x1a3   : > { %v880_v5 = vpop.f32.mrf.mxu2 }
 0x1a4   : > { %1244 = vst.msk [vmem:[%s2397_s12 + $0xf4] sm:$0xf] %vm1182_vm0, %v1179_v3  ;;  %v1148_v6 = vpack.c.bf16 %v1084_v4, %v1084_v4  ;;  %v881_v7 = vadd.f32 %v2121_v34, %v880_v5  ;;  %v1049_v8 = vpop.f32.mrf.mxu3 }
 0x1a5   : > { %v802_v9 = vpop.f32.mrf.mxu0 }
 0x1a6   : > { %1213 = vst.msk [vmem:[%s2397_s12 + $0x78] sm:$0xf] %vm1182_vm0, %v1148_v6  ;;  %v1050_v10 = vadd.f32 %v1049_v8, %v881_v7  ;;  %v803_v11 = vadd.f32 %v2121_v34, %v802_v9  ;;  %v971_v12 = vpop.f32.mrf.mxu1 }
 0x1a8   : > { %v1116_v13 = vmax.f32 %v1050_v10, 0.0  ;;  %v972_v14 = vadd.f32 %v971_v12, %v803_v11 }
 0x1aa   : > { %v1180_v15 = vpack.c.bf16 %v1116_v13, %v1116_v13  ;;  %v1085_v16 = vmax.f32 %v972_v14, 0.0 }
 0x1ab   : > { %v882_v17 = vpop.f32.mrf.mxu2 }
 0x1ac   : > { %1245 = vst.msk [vmem:[%s2397_s12 + $0xf8] sm:$0xf] %vm1182_vm0, %v1180_v15  ;;  %v1149_v18 = vpack.c.bf16 %v1085_v16, %v1085_v16  ;;  %v883_v19 = vadd.f32 %v2121_v34, %v882_v17  ;;  %v1051_v20 = vpop.f32.mrf.mxu3 }
 0x1ae   : > { %1214 = vst.msk [vmem:[%s2397_s12 + $0x7c] sm:$0xf] %vm1182_vm0, %v1149_v18  ;;  %v1052_v21 = vadd.f32 %v1051_v20, %v883_v19 }
 0x1b0   : > { %v1117_v22 = vmax.f32 %v1052_v21, 0.0  ;;  %1253 = sbr.rel (!%p2255_p4) target bundleno = 501 (0x1f5), region = 36 }
 0x1b2   : > { %v1181_v23 = vpack.c.bf16 %v1117_v22, %v1117_v22 }
 0x1b4   : > { %1246 = vst.msk [vmem:[%s2397_s12 + $0xfc] sm:$0xf] %vm1182_vm0, %v1181_v23 }
 0x1b5   : > { %s2795_s24 = smov (!%p1256_p8, %s1255_s24), 64 }
 0x1b6   : > { %s1917_s29 = sshll.u32 %s2795_s24, 2 }
 0x1b7   : > { %p1920_p9 = scmp.eq.s32.totalorder %s1917_s29, 0 }
 0x1b8   : > { %s2652_s30 = sshrl.u32 (!%p1920_p9), %s2795_s24, 5 }
 0x1b9   : > { %1264 = sbr.rel (%p1920_p9) target bundleno = 501 (0x1f5), region = 40  ;;  %p1921_p10 = scmp.le.s32.totalorder (!%p1920_p9), %s2652_s30, 0 }
 0x1be   : > { %1543 = sbr.rel (%p1921_p10) target bundleno = 484 (0x1e4), region = 112  ;;  %s2786_s15 = smov (!%p1921_p10), %s2646_s28 }
 0x1bf   : > { %s2787_s20 = smov (!%p1921_p10), %s2397_s12  ;;  %s2661_s6 = smov (!%p1921_p10), 0  }
 0x1c0   : > { %s2663_s4 = smov (!%p1921_p10), 0  }
 0x1c3 LB: >> { %v1281_v24 = vld [vmem:[%s2184_s20] sm:$0xf]  ;;  %v1283_v25 = vld [vmem:[%s2184_s20 + $0x4] sm:$0xf]  ;;  %v1285_v26 = vld [vmem:[%s2184_s20 + $0x8] sm:$0xf]  ;;  %s2192_s4 = sphi %s2663_s4, %s1275_s4   ;;  %s2188_s6 = sphi %s2661_s6, %s2790_s6   ;;  %s2184_s20 = sphi %s2787_s20, %s2789_s20   ;;  %s2180_s15 = sphi %s2786_s15, %s2788_s15  }
 0x1c4   : >> { %1282 = vst [vmem:[%s2180_s15] sm:$0xf] %v1281_v24  ;;  %v1287_v27 = vld [vmem:[%s2184_s20 + $0xc] sm:$0xf]  ;;  %v1289_v28 = vld [vmem:[%s2184_s20 + $0x10] sm:$0xf]  ;;  %s1345_s5 = sadd.s32 1, %s2188_s6 }
 0x1c5   : >> { %1284 = vst [vmem:[%s2180_s15 + $0x4] sm:$0xf] %v1283_v25  ;;  %v1291_v29 = vld [vmem:[%s2184_s20 + $0x14] sm:$0xf]  ;;  %v1293_v30 = vld [vmem:[%s2184_s20 + $0x18] sm:$0xf]  ;;  %p1346_p11 = scmp.ge.s32.totalorder %s1345_s5, %s2652_s30 }
 0x1c6   : >> { %1286 = vst [vmem:[%s2180_s15 + $0x8] sm:$0xf] %v1285_v26  ;;  %v1295_v31 = vld [vmem:[%s2184_s20 + $0x1c] sm:$0xf]  ;;  %v1297_v32 = vld [vmem:[%s2184_s20 + $0x20] sm:$0xf] }
 0x1c7   : >> { %1288 = vst [vmem:[%s2180_s15 + $0xc] sm:$0xf] %v1287_v27  ;;  %v1299_v33 = vld [vmem:[%s2184_s20 + $0x24] sm:$0xf]  ;;  %v1301_v34 = vld [vmem:[%s2184_s20 + $0x28] sm:$0xf] }
 0x1c8   : >> { %1290 = vst [vmem:[%s2180_s15 + $0x10] sm:$0xf] %v1289_v28  ;;  %v1303_v35 = vld [vmem:[%s2184_s20 + $0x2c] sm:$0xf]  ;;  %v1305_v36 = vld [vmem:[%s2184_s20 + $0x30] sm:$0xf] }
 0x1c9   : >> { %1292 = vst [vmem:[%s2180_s15 + $0x14] sm:$0xf] %v1291_v29  ;;  %v1307_v37 = vld [vmem:[%s2184_s20 + $0x34] sm:$0xf]  ;;  %v1309_v48 = vld [vmem:[%s2184_s20 + $0x38] sm:$0xf] }
 0x1ca   : >> { %1294 = vst [vmem:[%s2180_s15 + $0x18] sm:$0xf] %v1293_v30  ;;  %v1311_v38 = vld [vmem:[%s2184_s20 + $0x3c] sm:$0xf]  ;;  %v1313_v39 = vld [vmem:[%s2184_s20 + $0x40] sm:$0xf] }
 0x1cb   : >> { %1296 = vst [vmem:[%s2180_s15 + $0x1c] sm:$0xf] %v1295_v31  ;;  %v1315_v40 = vld [vmem:[%s2184_s20 + $0x44] sm:$0xf]  ;;  %s2797_s5 = smov (%p1346_p11, %s1345_s5), 0  ;;  %s1275_s4 = sadd.s32 1, %s2192_s4  }
 0x1cc   : >> { %1298 = vst [vmem:[%s2180_s15 + $0x20] sm:$0xf] %v1297_v32  ;;  %v1317_v41 = vld [vmem:[%s2184_s20 + $0x48] sm:$0xf]  ;;  %v1319_v42 = vld [vmem:[%s2184_s20 + $0x4c] sm:$0xf]  ;;  %p1274_p12 = scmp.ge.s32.totalorder %s1275_s4, %s2652_s30  ;;  %s2790_s6 = smov %s2797_s5 }
 0x1cd   : >> { %1300 = vst [vmem:[%s2180_s15 + $0x24] sm:$0xf] %v1299_v33  ;;  %s1922_s7 = sshll.u32 %s2797_s5, 7  ;;  %v1321_v43 = vld [vmem:[%s2184_s20 + $0x50] sm:$0xf] }
 0x1ce   : >> { %1302 = vst [vmem:[%s2180_s15 + $0x28] sm:$0xf] %v1301_v34  ;;  %s2722_s8 = scalar_lea.vmem %s2397_s12, %s1922_s7 [#allocation2]   ;;  %s1351_s9 = scalar_lea.vmem %s2646_s28, %s1922_s7   ;;  %v1323_v44 = vld [vmem:[%s2184_s20 + $0x54] sm:$0xf]  ;;  %v1325_v45 = vld [vmem:[%s2184_s20 + $0x58] sm:$0xf] }
 0x1cf   : >> { %1304 = vst [vmem:[%s2180_s15 + $0x2c] sm:$0xf] %v1303_v35  ;;  %v1327_v46 = vld [vmem:[%s2184_s20 + $0x5c] sm:$0xf]  ;;  %v1329_v47 = vld [vmem:[%s2184_s20 + $0x60] sm:$0xf] }
 0x1d0   : >> { %1306 = vst [vmem:[%s2180_s15 + $0x30] sm:$0xf] %v1305_v36  ;;  %v1331_v49 = vld [vmem:[%s2184_s20 + $0x64] sm:$0xf]  ;;  %v1333_v50 = vld [vmem:[%s2184_s20 + $0x68] sm:$0xf] }
 0x1d1   : >> { %1308 = vst [vmem:[%s2180_s15 + $0x34] sm:$0xf] %v1307_v37  ;;  %v1335_v51 = vld [vmem:[%s2184_s20 + $0x6c] sm:$0xf]  ;;  %v1337_v52 = vld [vmem:[%s2184_s20 + $0x70] sm:$0xf] }
 0x1d2   : >> { %1310 = vst [vmem:[%s2180_s15 + $0x38] sm:$0xf] %v1309_v48  ;;  %v1339_v53 = vld [vmem:[%s2184_s20 + $0x74] sm:$0xf]  ;;  %v1341_v54 = vld [vmem:[%s2184_s20 + $0x78] sm:$0xf] }
 0x1d3   : >> { %1312 = vst [vmem:[%s2180_s15 + $0x3c] sm:$0xf] %v1311_v38  ;;  %v1343_v55 = vld [vmem:[%s2184_s20 + $0x7c] sm:$0xf]  ;;  %s2789_s20 = smov %s2722_s8 }
 0x1d4   : >> { %1314 = vst [vmem:[%s2180_s15 + $0x40] sm:$0xf] %v1313_v39 }
 0x1d5   : >> { %1316 = vst [vmem:[%s2180_s15 + $0x44] sm:$0xf] %v1315_v40 }
 0x1d6   : >> { %1318 = vst [vmem:[%s2180_s15 + $0x48] sm:$0xf] %v1317_v41 }
 0x1d7   : >> { %1320 = vst [vmem:[%s2180_s15 + $0x4c] sm:$0xf] %v1319_v42 }
 0x1d8   : >> { %1322 = vst [vmem:[%s2180_s15 + $0x50] sm:$0xf] %v1321_v43 }
 0x1d9   : >> { %1324 = vst [vmem:[%s2180_s15 + $0x54] sm:$0xf] %v1323_v44 }
 0x1da   : >> { %1326 = vst [vmem:[%s2180_s15 + $0x58] sm:$0xf] %v1325_v45 }
 0x1db   : >> { %1328 = vst [vmem:[%s2180_s15 + $0x5c] sm:$0xf] %v1327_v46 }
 0x1dc   : >> { %1330 = vst [vmem:[%s2180_s15 + $0x60] sm:$0xf] %v1329_v47 }
 0x1dd   : >> { %1332 = vst [vmem:[%s2180_s15 + $0x64] sm:$0xf] %v1331_v49 }
 0x1de   : >> { %1334 = vst [vmem:[%s2180_s15 + $0x68] sm:$0xf] %v1333_v50 }
 0x1df   : >> { %1336 = vst [vmem:[%s2180_s15 + $0x6c] sm:$0xf] %v1335_v51  ;;  %1277 = sbr.rel (!%p1274_p12) target bundleno = 451 (0x1c3), region = 118 }
 0x1e0   : >> { %1338 = vst [vmem:[%s2180_s15 + $0x70] sm:$0xf] %v1337_v52 }
 0x1e1   : >> { %1340 = vst [vmem:[%s2180_s15 + $0x74] sm:$0xf] %v1339_v53 }
 0x1e2   : >> { %1342 = vst [vmem:[%s2180_s15 + $0x78] sm:$0xf] %v1341_v54 }
 0x1e3   : >> { %1344 = vst [vmem:[%s2180_s15 + $0x7c] sm:$0xf] %v1343_v55  ;;  %s2788_s15 = smov %s1351_s9 }
 0x1e4 PF: > { %s2763_s10 = sand.u32 31, %s2795_s24   ;;  %s2014_s11 = sshll.u32 %s2652_s30, 7 }
 0x1e5   : > { %s1356_s14 = scalar_lea.vmem %s2397_s12, %s2014_s11 [#allocation2]   ;;  %s1358_s17 = scalar_lea.vmem %s2646_s28, %s2014_s11  }
 0x1e6   : > { %p1927_p13 = scmp.le.s32.totalorder %s2763_s10, 0 }
 0x1e7   : > { %s2194_s18 = smov (!%p1927_p13), %s1358_s17   ;;  %s2198_s21 = smov (!%p1927_p13), %s1356_s14  }
 0x1e8   : > { %1557 = sbr.rel (%p1927_p13) target bundleno = 501 (0x1f5), region = 123  ;;  %s2202_s22 = smov (!%p1927_p13), 0  }
 0x1e9   : > { %s2206_s23 = smov (!%p1927_p13), 0  }
 0x1ed LB: >> { %v1368_v56 = vld [vmem:[%s2200_s21] sm:$0xf]  ;;  %s1370_s24 = sadd.s32 1, %s2204_s22  ;;  %s1362_s23 = sadd.s32 1, %s2208_s23   ;;  %s2208_s23 = sphi %s2206_s23, %s1362_s23   ;;  %s2204_s22 = sphi %s2202_s22, %s2203_s22   ;;  %s2200_s21 = sphi %s2198_s21, %s1375_s21   ;;  %s2196_s18 = sphi %s2194_s18, %s1376_s18  }
 0x1ee   : >> { %1369 = vst [vmem:[%s2196_s18] sm:$0xf] %v1368_v56  ;;  %p1371_p0 = scmp.ge.s32.totalorder %s1370_s24, %s2763_s10  ;;  %p1361_p1 = scmp.ge.s32.totalorder %s1362_s23, %s2763_s10 }
 0x1f0   : >> { %s2799_s24 = smov (%p1371_p0, %s1370_s24), 0  ;;  %1364 = sbr.rel (!%p1361_p1) target bundleno = 493 (0x1ed), region = 129 }
 0x1f1   : >> { %s1928_s12 = sshll.u32 %s2799_s24, 2  ;;  %s2203_s22 = smov %s2799_s24  }
 0x1f2   : >> { %s1375_s21 = scalar_lea.vmem %s1356_s14, %s1928_s12 [#allocation2]   ;;  %s1376_s18 = scalar_lea.vmem %s1358_s17, %s1928_s12  }
 0x1f5 PF: > { %p10_p2 = scmp.ge.s32.totalorder %s2245_s16, 4   ;;  %s2791_s12 = smov %s2172_s13 }
 0x1f6   : > { %s2792_s13 = smov %s2253_s19  ;;  %s2793_s14 = smov %s2245_s16 }
 0x1f7   :  { %12 = sbr.rel (!%p10_p2) target bundleno = 2 (0x2), region = 140 }

// kernel: cnn_base_forward.5
= control target key start
LH: loop header
LB: loop body
LE: loop exit
PB: predicated region body
PF: predicated region fallthrough
CT: control target
= control target key end

     0   :  { %vm824_vm0 = vcmask 519168   ;;  %s1683_s1 = inlined_call_operand.vmem [shape: bf16[512,64], index: 1, kind: input, shape index: {}]   ;;  %s1684_s2 = inlined_call_operand.vmem [shape: f32[1,64], index: 2, kind: input, shape index: {}]   ;;  %s1685_s0 = inlined_call_operand.vmem [shape: bf16[162,512], index: 0, kind: input, shape index: {}]   ;;  %s1686_s3 = inlined_call_operand.vmem [shape: bf16[162,64], index: 3, kind: output, shape index: {}]  }
   0x1   :  { %v1185_v0 = vld [vmem:[%s1683_s1 + $0x38] sm:$0xff]  ;;  %v1184_v4 = vld [vmem:[%s1683_s1 + $0x30] sm:$0xff]  ;;  %v1183_v8 = vld [vmem:[%s1683_s1 + $0x28] sm:$0xff] }
   0x2   :  { %v1193_v1 = vld [vmem:[%s1683_s1 + $0x78] sm:$0xff]  ;;  %530 = vmatpush.bf16.msra.mxu0 %v1185_v0  ;;  %v1192_v5 = vld [vmem:[%s1683_s1 + $0x70] sm:$0xff]  ;;  %v1191_v9 = vld [vmem:[%s1683_s1 + $0x68] sm:$0xff] }
   0x3   :  { %v1201_v2 = vld [vmem:[%s1683_s1 + $0xb8] sm:$0xff]  ;;  %593 = vmatpush.bf16.msra.mxu1 %v1193_v1  ;;  %v1200_v6 = vld [vmem:[%s1683_s1 + $0xb0] sm:$0xff]  ;;  %v1199_v10 = vld [vmem:[%s1683_s1 + $0xa8] sm:$0xff] }
   0x4   :  { %v1209_v3 = vld [vmem:[%s1683_s1 + $0xf8] sm:$0xff]  ;;  %656 = vmatpush.bf16.msra.mxu2 %v1201_v2  ;;  %v1208_v7 = vld [vmem:[%s1683_s1 + $0xf0] sm:$0xff]  ;;  %v1207_v11 = vld [vmem:[%s1683_s1 + $0xe8] sm:$0xff] }
   0x5   :  { %719 = vmatpush.bf16.msra.mxu3 %v1209_v3  ;;  %v1182_v12 = vld [vmem:[%s1683_s1 + $0x20] sm:$0xff]  ;;  %v1181_v16 = vld [vmem:[%s1683_s1 + $0x18] sm:$0xff]  ;;  %v1180_v20 = vld [vmem:[%s1683_s1 + $0x10] sm:$0xff] }
   0x6   :  { %531 = vmatpush.bf16.msra.mxu0 %v1184_v4  ;;  %v1190_v13 = vld [vmem:[%s1683_s1 + $0x60] sm:$0xff]  ;;  %v1189_v17 = vld [vmem:[%s1683_s1 + $0x58] sm:$0xff]  ;;  %v1188_v21 = vld [vmem:[%s1683_s1 + $0x50] sm:$0xff] }
   0x7   :  { %594 = vmatpush.bf16.msra.mxu1 %v1192_v5  ;;  %v1198_v14 = vld [vmem:[%s1683_s1 + $0xa0] sm:$0xff]  ;;  %v1197_v18 = vld [vmem:[%s1683_s1 + $0x98] sm:$0xff]  ;;  %v1196_v22 = vld [vmem:[%s1683_s1 + $0x90] sm:$0xff] }
   0x8   :  { %657 = vmatpush.bf16.msra.mxu2 %v1200_v6  ;;  %v1206_v15 = vld [vmem:[%s1683_s1 + $0xe0] sm:$0xff]  ;;  %v1205_v19 = vld [vmem:[%s1683_s1 + $0xd8] sm:$0xff]  ;;  %v1204_v23 = vld [vmem:[%s1683_s1 + $0xd0] sm:$0xff] }
   0x9   :  { %720 = vmatpush.bf16.msra.mxu3 %v1208_v7  ;;  %v1179_v24 = vld [vmem:[%s1683_s1 + $0x8] sm:$0xff]  ;;  %v1178_v28 = vld [vmem:[%s1683_s1] sm:$0xff]  ;;  %v1140_v33 = vld [vmem:[%s1685_s0 + $0xc] sm:$0xf0] }
   0xa   :  { %532 = vmatpush.bf16.msra.mxu0 %v1183_v8  ;;  %v1187_v25 = vld [vmem:[%s1683_s1 + $0x48] sm:$0xff]  ;;  %v1186_v29 = vld [vmem:[%s1683_s1 + $0x40] sm:$0xff]  ;;  %v854_v35 = vld [vmem:[%s1685_s0 + $0x10] sm:$0xf0] }
   0xb   :  { %595 = vmatpush.bf16.msra.mxu1 %v1191_v9  ;;  %v1195_v26 = vld [vmem:[%s1683_s1 + $0x88] sm:$0xff]  ;;  %v1194_v30 = vld [vmem:[%s1683_s1 + $0x80] sm:$0xff]  ;;  %v1141_v37 = vld [vmem:[%s1685_s0 + $0x14] sm:$0xf0] }
   0xc   :  { %658 = vmatpush.bf16.msra.mxu2 %v1199_v10  ;;  %v1203_v27 = vld [vmem:[%s1683_s1 + $0xc8] sm:$0xff]  ;;  %v1202_v31 = vld [vmem:[%s1683_s1 + $0xc0] sm:$0xff]  ;;  %v862_v39 = vld [vmem:[%s1685_s0 + $0x18] sm:$0xf0] }
   0xd   :  { %721 = vmatpush.bf16.msra.mxu3 %v1207_v11  ;;  %v852_v32 = vld [vmem:[%s1685_s0] sm:$0xf]  ;;  %v1138_v34 = vld [vmem:[%s1685_s0 + $0x4] sm:$0xf]  ;;  %v860_v36 = vld [vmem:[%s1685_s0 + $0x8] sm:$0xf] }
   0xe   :  { %533 = vmatpush.bf16.msra.mxu0 %v1182_v12  ;;  %v1139_v38 = vld [vmem:[%s1685_s0 + $0xc] sm:$0xf]  ;;  %v853_v40 = vor.u32 %v1140_v33, %v852_v32  ;;  %v857_v41 = vor.u32 %v1138_v34, %v854_v35  ;;  %v861_v42 = vor.u32 %v1141_v37, %v860_v36  ;;  %v868_v44 = vld [vmem:[%s1685_s0 + $0x20] sm:$0xf]  ;;  %v1144_v45 = vld [vmem:[%s1685_s0 + $0x2c] sm:$0xf0] }
   0xf   :  { %596 = vmatpush.bf16.msra.mxu1 %v1190_v13  ;;  %v865_v43 = vor.u32 %v1139_v38, %v862_v39  ;;  %v1142_v46 = vld [vmem:[%s1685_s0 + $0x24] sm:$0xf]  ;;  %v870_v47 = vld [vmem:[%s1685_s0 + $0x30] sm:$0xf0]  ;;  %v876_v48 = vld [vmem:[%s1685_s0 + $0x28] sm:$0xf]  ;;  %v869_v52 = vor.u32 %v1144_v45, %v868_v44 }
  0x10   :  { %659 = vmatpush.bf16.msra.mxu2 %v1198_v14  ;;  %v1145_v49 = vld [vmem:[%s1685_s0 + $0x34] sm:$0xf0]  ;;  %v1143_v50 = vld [vmem:[%s1685_s0 + $0x2c] sm:$0xf]  ;;  %v878_v51 = vld [vmem:[%s1685_s0 + $0x38] sm:$0xf0]  ;;  %v873_v53 = vor.u32 %v1142_v46, %v870_v47 }
  0x11   :  { %722 = vmatpush.bf16.msra.mxu3 %v1206_v15  ;;  %v877_v54 = vor.u32 %v1145_v49, %v876_v48  ;;  %v881_v55 = vor.u32 %v1143_v50, %v878_v51  ;;  %v884_v56 = vld [vmem:[%s1685_s0 + $0x40] sm:$0xf]  ;;  %v1148_v57 = vld [vmem:[%s1685_s0 + $0x4c] sm:$0xf0]  ;;  %v1146_v58 = vld [vmem:[%s1685_s0 + $0x44] sm:$0xf] }
  0x12   :  { %534 = vmatpush.bf16.msra.mxu0 %v1181_v16  ;;  %v886_v59 = vld [vmem:[%s1685_s0 + $0x50] sm:$0xf0]  ;;  %v892_v60 = vld [vmem:[%s1685_s0 + $0x48] sm:$0xf]  ;;  %v1149_v61 = vld [vmem:[%s1685_s0 + $0x54] sm:$0xf0]  ;;  %v885_v0 = vor.u32 %v1148_v57, %v884_v56 }
  0x13   :  { %597 = vmatpush.bf16.msra.mxu1 %v1189_v17  ;;  %v1147_v62 = vld [vmem:[%s1685_s0 + $0x4c] sm:$0xf]  ;;  %v894_v63 = vld [vmem:[%s1685_s0 + $0x58] sm:$0xf0]  ;;  %v889_v1 = vor.u32 %v1146_v58, %v886_v59  ;;  %v893_v2 = vor.u32 %v1149_v61, %v892_v60  ;;  %v900_v4 = vld [vmem:[%s1685_s0 + $0x60] sm:$0xf] }
  0x14   :  { %660 = vmatpush.bf16.msra.mxu2 %v1197_v18  ;;  %v897_v3 = vor.u32 %v1147_v62, %v894_v63  ;;  %v1152_v5 = vld [vmem:[%s1685_s0 + $0x6c] sm:$0xf0]  ;;  %v1150_v6 = vld [vmem:[%s1685_s0 + $0x64] sm:$0xf]  ;;  %v902_v7 = vld [vmem:[%s1685_s0 + $0x70] sm:$0xf0] }
  0x15   :  { %723 = vmatpush.bf16.msra.mxu3 %v1205_v19  ;;  %v908_v8 = vld [vmem:[%s1685_s0 + $0x68] sm:$0xf]  ;;  %v1153_v9 = vld [vmem:[%s1685_s0 + $0x74] sm:$0xf0]  ;;  %v1151_v10 = vld [vmem:[%s1685_s0 + $0x6c] sm:$0xf]  ;;  %v901_v12 = vor.u32 %v1152_v5, %v900_v4  ;;  %v905_v13 = vor.u32 %v1150_v6, %v902_v7 }
  0x16   :  { %535 = vmatpush.bf16.msra.mxu0 %v1180_v20  ;;  %v910_v11 = vld [vmem:[%s1685_s0 + $0x78] sm:$0xf0]  ;;  %v909_v14 = vor.u32 %v1153_v9, %v908_v8  ;;  %v916_v16 = vld [vmem:[%s1685_s0 + $0x80] sm:$0xf]  ;;  %v1156_v17 = vld [vmem:[%s1685_s0 + $0x8c] sm:$0xf0] }
  0x17   :  { %598 = vmatpush.bf16.msra.mxu1 %v1188_v21  ;;  %v913_v15 = vor.u32 %v1151_v10, %v910_v11  ;;  %v1154_v18 = vld [vmem:[%s1685_s0 + $0x84] sm:$0xf]  ;;  %v918_v19 = vld [vmem:[%s1685_s0 + $0x90] sm:$0xf0]  ;;  %v924_v20 = vld [vmem:[%s1685_s0 + $0x88] sm:$0xf] }
  0x18   :  { %661 = vmatpush.bf16.msra.mxu2 %v1196_v22  ;;  %v1157_v21 = vld [vmem:[%s1685_s0 + $0x94] sm:$0xf0]  ;;  %v1155_v22 = vld [vmem:[%s1685_s0 + $0x8c] sm:$0xf]  ;;  %v940_v32 = vld [vmem:[%s1685_s0 + $0xa8] sm:$0xf] }
  0x19   :  { %724 = vmatpush.bf16.msra.mxu3 %v1204_v23  ;;  %v926_v23 = vld [vmem:[%s1685_s0 + $0x98] sm:$0xf0]  ;;  %v1161_v33 = vld [vmem:[%s1685_s0 + $0xb4] sm:$0xf0]  ;;  %v1159_v34 = vld [vmem:[%s1685_s0 + $0xac] sm:$0xf] }
  0x1a   :  { %536 = vmatpush.bf16.msra.mxu0 %v1179_v24  ;;  %v917_v24 = vor.u32 %v1156_v17, %v916_v16  ;;  %v942_v35 = vld [vmem:[%s1685_s0 + $0xb8] sm:$0xf0]  ;;  %v941_v38 = vor.u32 %v1161_v33, %v940_v32  ;;  %v956_v44 = vld [vmem:[%s1685_s0 + $0xc8] sm:$0xf]  ;;  %v1165_v45 = vld [vmem:[%s1685_s0 + $0xd4] sm:$0xf0] }
  0x1b   :  { %599 = vmatpush.bf16.msra.mxu1 %v1187_v25  ;;  %v921_v25 = vor.u32 %v1154_v18, %v918_v19  ;;  %v945_v39 = vor.u32 %v1159_v34, %v942_v35  ;;  %v1163_v46 = vld [vmem:[%s1685_s0 + $0xcc] sm:$0xf]  ;;  %v958_v47 = vld [vmem:[%s1685_s0 + $0xd8] sm:$0xf0]  ;;  %v957_v50 = vor.u32 %v1165_v45, %v956_v44  ;;  %v972_v56 = vld [vmem:[%s1685_s0 + $0xe8] sm:$0xf] }
  0x1c   :  { %662 = vmatpush.bf16.msra.mxu2 %v1195_v26  ;;  %v925_v26 = vor.u32 %v1157_v21, %v924_v20  ;;  %v961_v51 = vor.u32 %v1163_v46, %v958_v47  ;;  %v1169_v57 = vld [vmem:[%s1685_s0 + $0xf4] sm:$0xf0]  ;;  %v1167_v58 = vld [vmem:[%s1685_s0 + $0xec] sm:$0xf]  ;;  %v974_v59 = vld [vmem:[%s1685_s0 + $0xf8] sm:$0xf0] }
  0x1d   :  { %725 = vmatpush.bf16.msra.mxu3 %v1203_v27  ;;  %v929_v27 = vor.u32 %v1155_v22, %v926_v23  ;;  %v973_v62 = vor.u32 %v1169_v57, %v972_v56  ;;  %v977_v63 = vor.u32 %v1167_v58, %v974_v59  ;;  %v982_v4 = vld [vmem:[%s1685_s0 + $0x110] sm:$0xf0]  ;;  %v988_v5 = vld [vmem:[%s1685_s0 + $0x108] sm:$0xf]  ;;  %v1173_v6 = vld [vmem:[%s1685_s0 + $0x114] sm:$0xf0] }
  0x1e   :  { %537 = vmatpush.bf16.msra.mxu0 %v1178_v28  ;;  %v932_v28 = vld [vmem:[%s1685_s0 + $0xa0] sm:$0xf]  ;;  %v1171_v7 = vld [vmem:[%s1685_s0 + $0x10c] sm:$0xf]  ;;  %v990_v8 = vld [vmem:[%s1685_s0 + $0x118] sm:$0xf0] }
  0x1f   :  { %600 = vmatpush.bf16.msra.mxu1 %v1186_v29  ;;  %v1160_v29 = vld [vmem:[%s1685_s0 + $0xac] sm:$0xf0]  ;;  %v1006_v32 = vld [vmem:[%s1685_s0 + $0x138] sm:$0xf0] }
  0x20   :  { %663 = vmatpush.bf16.msra.mxu2 %v1194_v30  ;;  %v1158_v30 = vld [vmem:[%s1685_s0 + $0xa4] sm:$0xf]  ;;  %v933_v36 = vor.u32 %v1160_v29, %v932_v28  ;;  %v998_v28 = vld [vmem:[%s1685_s0 + $0x130] sm:$0xf0]  ;;  %v1004_v29 = vld [vmem:[%s1685_s0 + $0x128] sm:$0xf] }
  0x21   :  { %726 = vmatpush.bf16.msra.mxu3 %v1202_v31  ;;  %538 = vmatmul.bf16.vlgmr.msra.gmra.mxu0 %v853_v40  ;;  %v934_v31 = vld [vmem:[%s1685_s0 + $0xb0] sm:$0xf0]  ;;  %v948_v40 = vld [vmem:[%s1685_s0 + $0xc0] sm:$0xf] }
  0x22   :  { %601 = vmatmul.bf16.vlgmr.msra.gmra.mxu1 %v857_v41  ;;  %v937_v37 = vor.u32 %v1158_v30, %v934_v31  ;;  %v1164_v41 = vld [vmem:[%s1685_s0 + $0xcc] sm:$0xf0]  ;;  %v1177_v30 = vld [vmem:[%s1685_s0 + $0x134] sm:$0xf0]  ;;  %v1175_v31 = vld [vmem:[%s1685_s0 + $0x12c] sm:$0xf] }
  0x23   :  { %664 = vmatmul.bf16.vlgmr.msra.gmra.mxu2 %v861_v42  ;;  %v1162_v42 = vld [vmem:[%s1685_s0 + $0xc4] sm:$0xf]  ;;  %v949_v48 = vor.u32 %v1164_v41, %v948_v40 }
  0x24   :  { %727 = vmatmul.bf16.vlgmr.msra.gmra.mxu3 %v865_v43  ;;  %v950_v43 = vld [vmem:[%s1685_s0 + $0xd0] sm:$0xf0] }
  0x25   :  { %v953_v49 = vor.u32 %v1162_v42, %v950_v43  ;;  %v1005_v42 = vor.u32 %v1177_v30, %v1004_v29  ;;  %v1009_v43 = vor.u32 %v1175_v31, %v1006_v32 }
  0x31   :  { %543 = vmatmul.bf16.gmra.mxu0 %v869_v52  ;;  %v964_v52 = vld [vmem:[%s1685_s0 + $0xe0] sm:$0xf] }
  0x32   :  { %606 = vmatmul.bf16.gmra.mxu1 %v873_v53  ;;  %v1168_v53 = vld [vmem:[%s1685_s0 + $0xec] sm:$0xf0] }
  0x33   :  { %669 = vmatmul.bf16.gmra.mxu2 %v877_v54  ;;  %v1166_v54 = vld [vmem:[%s1685_s0 + $0xe4] sm:$0xf]  ;;  %v965_v60 = vor.u32 %v1168_v53, %v964_v52 }
  0x34   :  { %732 = vmatmul.bf16.gmra.mxu3 %v881_v55  ;;  %v966_v55 = vld [vmem:[%s1685_s0 + $0xf0] sm:$0xf0] }
  0x35   :  { %v969_v61 = vor.u32 %v1166_v54, %v966_v55  ;;  %v54_v54 = vld [vmem:[%s1685_s0 + $0x140] sm:$0xff]  ;;  %v55_v55 = vld [vmem:[%s1685_s0 + $0x148] sm:$0xff] }
  0x36   :  { %v246_v58 = vunpack.c.l.b16 %v54_v54  ;;  %v247_v59 = vunpack.c.h.b16 %v54_v54 }
  0x41   :  { %548 = vmatmul.bf16.gmra.mxu0 %v885_v0  ;;  %v1522_v0 = vld [vmem:[%s1684_s2] ss:$0 sm:$0xff] }
  0x42   :  { %611 = vmatmul.bf16.gmra.mxu1 %v889_v1  ;;  %v980_v1 = vld [vmem:[%s1685_s0 + $0x100] sm:$0xf] }
  0x43   :  { %674 = vmatmul.bf16.gmra.mxu2 %v893_v2  ;;  %v1172_v2 = vld [vmem:[%s1685_s0 + $0x10c] sm:$0xf0] }
  0x44   :  { %737 = vmatmul.bf16.gmra.mxu3 %v897_v3  ;;  %v1170_v3 = vld [vmem:[%s1685_s0 + $0x104] sm:$0xf]  ;;  %v981_v9 = vor.u32 %v1172_v2, %v980_v1 }
  0x45   :  { %v985_v10 = vor.u32 %v1170_v3, %v982_v4  ;;  %v290_v4 = vpack.c.b16 %v246_v58, %v246_v58 }
  0x51   :  { %553 = vmatmul.bf16.gmra.mxu0 %v901_v12 }
  0x52   :  { %616 = vmatmul.bf16.gmra.mxu1 %v905_v13  ;;  %v989_v13 = vor.u32 %v1173_v6, %v988_v5  ;;  %v291_v5 = vpack.c.b16 %v247_v59, %v247_v59 }
  0x53   :  { %679 = vmatmul.bf16.gmra.mxu2 %v909_v14  ;;  %v993_v14 = vor.u32 %v1171_v7, %v990_v8 }
  0x54   :  { %742 = vmatmul.bf16.gmra.mxu3 %v913_v15 }
  0x61   :  { %558 = vmatmul.bf16.gmra.mxu0 %v917_v24  ;;  %v996_v24 = vld [vmem:[%s1685_s0 + $0x120] sm:$0xf] }
  0x62   :  { %621 = vmatmul.bf16.gmra.mxu1 %v921_v25  ;;  %v1176_v25 = vld [vmem:[%s1685_s0 + $0x12c] sm:$0xf0] }
  0x63   :  { %684 = vmatmul.bf16.gmra.mxu2 %v925_v26  ;;  %v1174_v26 = vld [vmem:[%s1685_s0 + $0x124] sm:$0xf] }
  0x64   :  { %747 = vmatmul.bf16.gmra.mxu3 %v929_v27 }
  0x71   :  { %563 = vmatmul.bf16.gmra.mxu0 %v933_v36 }
  0x72   :  { %626 = vmatmul.bf16.gmra.mxu1 %v937_v37  ;;  %v997_v37 = vor.u32 %v1176_v25, %v996_v24 }
  0x73   :  { %689 = vmatmul.bf16.gmra.mxu2 %v941_v38  ;;  %v1001_v38 = vor.u32 %v1174_v26, %v998_v28 }
  0x74   :  { %752 = vmatmul.bf16.gmra.mxu3 %v945_v39 }
  0x81   :  { %568 = vmatmul.bf16.gmra.mxu0 %v949_v48 }
  0x82   :  { %631 = vmatmul.bf16.gmra.mxu1 %v953_v49 }
  0x83   :  { %694 = vmatmul.bf16.gmra.mxu2 %v957_v50 }
  0x84   :  { %757 = vmatmul.bf16.gmra.mxu3 %v961_v51 }
  0x91   :  { %573 = vmatmul.bf16.gmra.mxu0 %v965_v60 }
  0x92   :  { %636 = vmatmul.bf16.gmra.mxu1 %v969_v61  ;;  %v248_v61 = vunpack.c.l.b16 %v55_v55 }
  0x93   :  { %699 = vmatmul.bf16.gmra.mxu2 %v973_v62  ;;  %v249_v62 = vunpack.c.h.b16 %v55_v55 }
  0x94   :  { %762 = vmatmul.bf16.gmra.mxu3 %v977_v63 }
  0x9e   :  { %v539_v11 = vpop.f32.mrf.mxu0 }
  0x9f   :  { %v602_v12 = vpop.f32.mrf.mxu1  ;;  %v540_v15 = vadd.f32 %v1522_v0, %v539_v11 }
  0xa1   :  { %578 = vmatmul.bf16.gmra.mxu0 %v981_v9  ;;  %v603_v16 = vadd.f32 %v602_v12, %v540_v15  ;;  %v292_v9 = vpack.c.b16 %v248_v61, %v248_v61 }
  0xa2   :  { %641 = vmatmul.bf16.gmra.mxu1 %v985_v10  ;;  %v293_v10 = vpack.c.b16 %v249_v62, %v249_v62 }
  0xa3   :  { %704 = vmatmul.bf16.gmra.mxu2 %v989_v13 }
  0xa4   :  { %767 = vmatmul.bf16.gmra.mxu3 %v993_v14 }
  0xa6   :  { %v665_v17 = vpop.f32.mrf.mxu2  ;;  %v541_v20 = vpop.f32.mrf.mxu0 }
  0xa7   :  { %v728_v18 = vpop.f32.mrf.mxu3  ;;  %v666_v19 = vadd.f32 %v665_v17, %v603_v16  ;;  %v604_v21 = vpop.f32.mrf.mxu1  ;;  %v542_v23 = vadd.f32 %v1522_v0, %v541_v20 }
  0xa9   :  { %v729_v22 = vadd.f32 %v728_v18, %v666_v19  ;;  %v605_v34 = vadd.f32 %v604_v21, %v542_v23 }
  0xab   :  { %v782_v27 = vmax.f32 %v729_v22, 0.0 }
  0xad   :  { %v803_v33 = vpack.c.bf16 %v782_v27, %v782_v27 }
  0xae   :  { %v667_v35 = vpop.f32.mrf.mxu2  ;;  %v544_v40 = vpop.f32.mrf.mxu0 }
  0xaf   :  { %v730_v36 = vpop.f32.mrf.mxu3  ;;  %825 = vst.msk [vmem:[%s1686_s3] sm:$0xf] %vm824_vm0, %v803_v33  ;;  %v668_v39 = vadd.f32 %v667_v35, %v605_v34  ;;  %v607_v41 = vpop.f32.mrf.mxu1  ;;  %v545_v44 = vadd.f32 %v1522_v0, %v544_v40 }
  0xb1   :  { %v731_v45 = vadd.f32 %v730_v36, %v668_v39  ;;  %583 = vmatmul.bf16.gmra.mxu0 %v997_v37  ;;  %v608_v47 = vadd.f32 %v607_v41, %v545_v44 }
  0xb2   :  { %646 = vmatmul.bf16.gmra.mxu1 %v1001_v38 }
  0xb3   :  { %v783_v46 = vmax.f32 %v731_v45, 0.0  ;;  %709 = vmatmul.bf16.gmra.mxu2 %v1005_v42 }
  0xb4   :  { %772 = vmatmul.bf16.gmra.mxu3 %v1009_v43 }
  0xb5   :  { %v804_v48 = vpack.c.bf16 %v783_v46, %v783_v46 }
  0xb6   :  { %v670_v49 = vpop.f32.mrf.mxu2  ;;  %v546_v52 = vpop.f32.mrf.mxu0 }
  0xb7   :  { %v733_v50 = vpop.f32.mrf.mxu3  ;;  %826 = vst.msk [vmem:[%s1686_s3 + $0x4] sm:$0xf] %vm824_vm0, %v804_v48  ;;  %v671_v51 = vadd.f32 %v670_v49, %v608_v47  ;;  %v609_v53 = vpop.f32.mrf.mxu1  ;;  %v547_v57 = vadd.f32 %v1522_v0, %v546_v52 }
  0xb9   :  { %v734_v56 = vadd.f32 %v733_v50, %v671_v51  ;;  %v610_v1 = vadd.f32 %v609_v53, %v547_v57 }
  0xbb   :  { %v784_v60 = vmax.f32 %v734_v56, 0.0 }
  0xbd   :  { %v805_v63 = vpack.c.bf16 %v784_v60, %v784_v60 }
  0xbe   :  { %v672_v2 = vpop.f32.mrf.mxu2  ;;  %v549_v7 = vpop.f32.mrf.mxu0 }
  0xbf   :  { %v735_v3 = vpop.f32.mrf.mxu3  ;;  %827 = vst.msk [vmem:[%s1686_s3 + $0x8] sm:$0xf] %vm824_vm0, %v805_v63  ;;  %v673_v6 = vadd.f32 %v672_v2, %v610_v1  ;;  %v612_v8 = vpop.f32.mrf.mxu1  ;;  %v550_v11 = vadd.f32 %v1522_v0, %v549_v7 }
  0xc1   :  { %v736_v12 = vadd.f32 %v735_v3, %v673_v6  ;;  %588 = vmatmul.bf16.gmra.mxu0 %v290_v4  ;;  %v613_v14 = vadd.f32 %v612_v8, %v550_v11 }
  0xc2   :  { %651 = vmatmul.bf16.gmra.mxu1 %v291_v5 }
  0xc3   :  { %v785_v13 = vmax.f32 %v736_v12, 0.0  ;;  %714 = vmatmul.bf16.gmra.mxu2 %v292_v9 }
  0xc4   :  { %777 = vmatmul.bf16.gmra.mxu3 %v293_v10 }
  0xc5   :  { %v806_v15 = vpack.c.bf16 %v785_v13, %v785_v13 }
  0xc6   :  { %v675_v16 = vpop.f32.mrf.mxu2  ;;  %v551_v19 = vpop.f32.mrf.mxu0 }
  0xc7   :  { %v738_v17 = vpop.f32.mrf.mxu3  ;;  %828 = vst.msk [vmem:[%s1686_s3 + $0xc] sm:$0xf] %vm824_vm0, %v806_v15  ;;  %v676_v18 = vadd.f32 %v675_v16, %v613_v14  ;;  %v614_v20 = vpop.f32.mrf.mxu1  ;;  %v552_v22 = vadd.f32 %v1522_v0, %v551_v19 }
  0xc9   :  { %v739_v21 = vadd.f32 %v738_v17, %v676_v18  ;;  %v615_v25 = vadd.f32 %v614_v20, %v552_v22 }
  0xcb   :  { %v786_v23 = vmax.f32 %v739_v21, 0.0 }
  0xcd   :  { %v807_v24 = vpack.c.bf16 %v786_v23, %v786_v23 }
  0xce   :  { %v677_v26 = vpop.f32.mrf.mxu2  ;;  %v554_v29 = vpop.f32.mrf.mxu0 }
  0xcf   :  { %v740_v27 = vpop.f32.mrf.mxu3  ;;  %829 = vst.msk [vmem:[%s1686_s3 + $0x10] sm:$0xf] %vm824_vm0, %v807_v24  ;;  %v678_v28 = vadd.f32 %v677_v26, %v615_v25  ;;  %v617_v30 = vpop.f32.mrf.mxu1  ;;  %v555_v31 = vadd.f32 %v1522_v0, %v554_v29 }
  0xd1   :  { %v741_v32 = vadd.f32 %v740_v27, %v678_v28  ;;  %v618_v34 = vadd.f32 %v617_v30, %v555_v31 }
  0xd3   :  { %v787_v33 = vmax.f32 %v741_v32, 0.0 }
  0xd5   :  { %v808_v35 = vpack.c.bf16 %v787_v33, %v787_v33 }
  0xd6   :  { %v680_v36 = vpop.f32.mrf.mxu2  ;;  %v556_v39 = vpop.f32.mrf.mxu0 }
  0xd7   :  { %v743_v37 = vpop.f32.mrf.mxu3  ;;  %830 = vst.msk [vmem:[%s1686_s3 + $0x14] sm:$0xf] %vm824_vm0, %v808_v35  ;;  %v681_v38 = vadd.f32 %v680_v36, %v618_v34  ;;  %v619_v40 = vpop.f32.mrf.mxu1  ;;  %v557_v42 = vadd.f32 %v1522_v0, %v556_v39 }
  0xd9   :  { %v744_v41 = vadd.f32 %v743_v37, %v681_v38  ;;  %v620_v45 = vadd.f32 %v619_v40, %v557_v42 }
  0xdb   :  { %v788_v43 = vmax.f32 %v744_v41, 0.0 }
  0xdd   :  { %v809_v44 = vpack.c.bf16 %v788_v43, %v788_v43 }
  0xde   :  { %v682_v46 = vpop.f32.mrf.mxu2  ;;  %v559_v49 = vpop.f32.mrf.mxu0 }
  0xdf   :  { %v745_v47 = vpop.f32.mrf.mxu3  ;;  %831 = vst.msk [vmem:[%s1686_s3 + $0x18] sm:$0xf] %vm824_vm0, %v809_v44  ;;  %v683_v48 = vadd.f32 %v682_v46, %v620_v45  ;;  %v622_v50 = vpop.f32.mrf.mxu1  ;;  %v560_v51 = vadd.f32 %v1522_v0, %v559_v49 }
  0xe1   :  { %v746_v52 = vadd.f32 %v745_v47, %v683_v48  ;;  %v623_v54 = vadd.f32 %v622_v50, %v560_v51 }
  0xe3   :  { %v789_v53 = vmax.f32 %v746_v52, 0.0 }
  0xe5   :  { %v810_v55 = vpack.c.bf16 %v789_v53, %v789_v53 }
  0xe6   :  { %v685_v56 = vpop.f32.mrf.mxu2  ;;  %v561_v59 = vpop.f32.mrf.mxu0 }
  0xe7   :  { %v748_v57 = vpop.f32.mrf.mxu3  ;;  %832 = vst.msk [vmem:[%s1686_s3 + $0x1c] sm:$0xf] %vm824_vm0, %v810_v55  ;;  %v686_v58 = vadd.f32 %v685_v56, %v623_v54  ;;  %v624_v60 = vpop.f32.mrf.mxu1  ;;  %v562_v62 = vadd.f32 %v1522_v0, %v561_v59 }
  0xe9   :  { %v749_v61 = vadd.f32 %v748_v57, %v686_v58  ;;  %v625_v2 = vadd.f32 %v624_v60, %v562_v62 }
  0xeb   :  { %v790_v63 = vmax.f32 %v749_v61, 0.0 }
  0xed   :  { %v811_v1 = vpack.c.bf16 %v790_v63, %v790_v63 }
  0xee   :  { %v687_v3 = vpop.f32.mrf.mxu2  ;;  %v564_v6 = vpop.f32.mrf.mxu0 }
  0xef   :  { %v750_v4 = vpop.f32.mrf.mxu3  ;;  %833 = vst.msk [vmem:[%s1686_s3 + $0x20] sm:$0xf] %vm824_vm0, %v811_v1  ;;  %v688_v5 = vadd.f32 %v687_v3, %v625_v2  ;;  %v627_v7 = vpop.f32.mrf.mxu1  ;;  %v565_v8 = vadd.f32 %v1522_v0, %v564_v6 }
  0xf1   :  { %v751_v9 = vadd.f32 %v750_v4, %v688_v5  ;;  %v628_v11 = vadd.f32 %v627_v7, %v565_v8 }
  0xf3   :  { %v791_v10 = vmax.f32 %v751_v9, 0.0 }
  0xf5   :  { %v812_v12 = vpack.c.bf16 %v791_v10, %v791_v10 }
  0xf6   :  { %v690_v13 = vpop.f32.mrf.mxu2  ;;  %v566_v16 = vpop.f32.mrf.mxu0 }
  0xf7   :  { %v753_v14 = vpop.f32.mrf.mxu3  ;;  %834 = vst.msk [vmem:[%s1686_s3 + $0x24] sm:$0xf] %vm824_vm0, %v812_v12  ;;  %v691_v15 = vadd.f32 %v690_v13, %v628_v11  ;;  %v629_v17 = vpop.f32.mrf.mxu1  ;;  %v567_v19 = vadd.f32 %v1522_v0, %v566_v16 }
  0xf9   :  { %v754_v18 = vadd.f32 %v753_v14, %v691_v15  ;;  %v630_v22 = vadd.f32 %v629_v17, %v567_v19 }
  0xfb   :  { %v792_v20 = vmax.f32 %v754_v18, 0.0 }
  0xfd   :  { %v813_v21 = vpack.c.bf16 %v792_v20, %v792_v20 }
  0xfe   :  { %v692_v23 = vpop.f32.mrf.mxu2  ;;  %v569_v26 = vpop.f32.mrf.mxu0 }
  0xff   :  { %v755_v24 = vpop.f32.mrf.mxu3  ;;  %835 = vst.msk [vmem:[%s1686_s3 + $0x28] sm:$0xf] %vm824_vm0, %v813_v21  ;;  %v693_v25 = vadd.f32 %v692_v23, %v630_v22  ;;  %v632_v27 = vpop.f32.mrf.mxu1  ;;  %v570_v28 = vadd.f32 %v1522_v0, %v569_v26 }
 0x101   :  { %v756_v29 = vadd.f32 %v755_v24, %v693_v25  ;;  %v633_v31 = vadd.f32 %v632_v27, %v570_v28 }
 0x103   :  { %v793_v30 = vmax.f32 %v756_v29, 0.0 }
 0x105   :  { %v814_v32 = vpack.c.bf16 %v793_v30, %v793_v30 }
 0x106   :  { %v695_v33 = vpop.f32.mrf.mxu2  ;;  %v571_v36 = vpop.f32.mrf.mxu0 }
 0x107   :  { %v758_v34 = vpop.f32.mrf.mxu3  ;;  %836 = vst.msk [vmem:[%s1686_s3 + $0x2c] sm:$0xf] %vm824_vm0, %v814_v32  ;;  %v696_v35 = vadd.f32 %v695_v33, %v633_v31  ;;  %v634_v37 = vpop.f32.mrf.mxu1  ;;  %v572_v39 = vadd.f32 %v1522_v0, %v571_v36 }
 0x109   :  { %v759_v38 = vadd.f32 %v758_v34, %v696_v35  ;;  %v635_v42 = vadd.f32 %v634_v37, %v572_v39 }
 0x10b   :  { %v794_v40 = vmax.f32 %v759_v38, 0.0 }
 0x10d   :  { %v815_v41 = vpack.c.bf16 %v794_v40, %v794_v40 }
 0x10e   :  { %v697_v43 = vpop.f32.mrf.mxu2  ;;  %v574_v46 = vpop.f32.mrf.mxu0 }
 0x10f   :  { %v760_v44 = vpop.f32.mrf.mxu3  ;;  %837 = vst.msk [vmem:[%s1686_s3 + $0x30] sm:$0xf] %vm824_vm0, %v815_v41  ;;  %v698_v45 = vadd.f32 %v697_v43, %v635_v42  ;;  %v637_v47 = vpop.f32.mrf.mxu1  ;;  %v575_v48 = vadd.f32 %v1522_v0, %v574_v46 }
 0x111   :  { %v761_v49 = vadd.f32 %v760_v44, %v698_v45  ;;  %v638_v51 = vadd.f32 %v637_v47, %v575_v48 }
 0x113   :  { %v795_v50 = vmax.f32 %v761_v49, 0.0 }
 0x115   :  { %v816_v52 = vpack.c.bf16 %v795_v50, %v795_v50 }
 0x116   :  { %v700_v53 = vpop.f32.mrf.mxu2  ;;  %v576_v56 = vpop.f32.mrf.mxu0 }
 0x117   :  { %v763_v54 = vpop.f32.mrf.mxu3  ;;  %838 = vst.msk [vmem:[%s1686_s3 + $0x34] sm:$0xf] %vm824_vm0, %v816_v52  ;;  %v701_v55 = vadd.f32 %v700_v53, %v638_v51  ;;  %v639_v57 = vpop.f32.mrf.mxu1  ;;  %v577_v59 = vadd.f32 %v1522_v0, %v576_v56 }
 0x119   :  { %v764_v58 = vadd.f32 %v763_v54, %v701_v55  ;;  %v640_v62 = vadd.f32 %v639_v57, %v577_v59 }
 0x11b   :  { %v796_v60 = vmax.f32 %v764_v58, 0.0 }
 0x11d   :  { %v817_v61 = vpack.c.bf16 %v796_v60, %v796_v60 }
 0x11e   :  { %v702_v63 = vpop.f32.mrf.mxu2  ;;  %v579_v3 = vpop.f32.mrf.mxu0 }
 0x11f   :  { %v765_v1 = vpop.f32.mrf.mxu3  ;;  %839 = vst.msk [vmem:[%s1686_s3 + $0x38] sm:$0xf] %vm824_vm0, %v817_v61  ;;  %v703_v2 = vadd.f32 %v702_v63, %v640_v62  ;;  %v642_v4 = vpop.f32.mrf.mxu1  ;;  %v580_v5 = vadd.f32 %v1522_v0, %v579_v3 }
 0x121   :  { %v766_v6 = vadd.f32 %v765_v1, %v703_v2  ;;  %v643_v8 = vadd.f32 %v642_v4, %v580_v5 }
 0x123   :  { %v797_v7 = vmax.f32 %v766_v6, 0.0 }
 0x125   :  { %v818_v9 = vpack.c.bf16 %v797_v7, %v797_v7 }
 0x126   :  { %v705_v10 = vpop.f32.mrf.mxu2  ;;  %v581_v13 = vpop.f32.mrf.mxu0 }
 0x127   :  { %v768_v11 = vpop.f32.mrf.mxu3  ;;  %840 = vst.msk [vmem:[%s1686_s3 + $0x3c] sm:$0xf] %vm824_vm0, %v818_v9  ;;  %v706_v12 = vadd.f32 %v705_v10, %v643_v8  ;;  %v644_v14 = vpop.f32.mrf.mxu1  ;;  %v582_v16 = vadd.f32 %v1522_v0, %v581_v13 }
 0x129   :  { %v769_v15 = vadd.f32 %v768_v11, %v706_v12  ;;  %v645_v19 = vadd.f32 %v644_v14, %v582_v16 }
 0x12b   :  { %v798_v17 = vmax.f32 %v769_v15, 0.0 }
 0x12d   :  { %v819_v18 = vpack.c.bf16 %v798_v17, %v798_v17 }
 0x12e   :  { %v707_v20 = vpop.f32.mrf.mxu2  ;;  %v584_v23 = vpop.f32.mrf.mxu0 }
 0x12f   :  { %v770_v21 = vpop.f32.mrf.mxu3  ;;  %841 = vst.msk [vmem:[%s1686_s3 + $0x40] sm:$0xf] %vm824_vm0, %v819_v18  ;;  %v708_v22 = vadd.f32 %v707_v20, %v645_v19  ;;  %v647_v24 = vpop.f32.mrf.mxu1  ;;  %v585_v25 = vadd.f32 %v1522_v0, %v584_v23 }
 0x131   :  { %v771_v26 = vadd.f32 %v770_v21, %v708_v22  ;;  %v648_v28 = vadd.f32 %v647_v24, %v585_v25 }
 0x133   :  { %v799_v27 = vmax.f32 %v771_v26, 0.0 }
 0x135   :  { %v820_v29 = vpack.c.bf16 %v799_v27, %v799_v27 }
 0x136   :  { %v710_v30 = vpop.f32.mrf.mxu2  ;;  %v586_v33 = vpop.f32.mrf.mxu0 }
 0x137   :  { %v773_v31 = vpop.f32.mrf.mxu3  ;;  %842 = vst.msk [vmem:[%s1686_s3 + $0x44] sm:$0xf] %vm824_vm0, %v820_v29  ;;  %v711_v32 = vadd.f32 %v710_v30, %v648_v28  ;;  %v649_v34 = vpop.f32.mrf.mxu1  ;;  %v587_v36 = vadd.f32 %v1522_v0, %v586_v33 }
 0x139   :  { %v774_v35 = vadd.f32 %v773_v31, %v711_v32  ;;  %v650_v39 = vadd.f32 %v649_v34, %v587_v36 }
 0x13b   :  { %v800_v37 = vmax.f32 %v774_v35, 0.0 }
 0x13d   :  { %v821_v38 = vpack.c.bf16 %v800_v37, %v800_v37 }
 0x13e   :  { %v712_v40 = vpop.f32.mrf.mxu2  ;;  %v589_v43 = vpop.f32.mrf.mxu0 }
 0x13f   :  { %v775_v41 = vpop.f32.mrf.mxu3  ;;  %843 = vst.msk [vmem:[%s1686_s3 + $0x48] sm:$0xf] %vm824_vm0, %v821_v38  ;;  %v713_v42 = vadd.f32 %v712_v40, %v650_v39  ;;  %v652_v44 = vpop.f32.mrf.mxu1  ;;  %v590_v45 = vadd.f32 %v1522_v0, %v589_v43 }
 0x141   :  { %v776_v46 = vadd.f32 %v775_v41, %v713_v42  ;;  %v653_v48 = vadd.f32 %v652_v44, %v590_v45 }
 0x143   :  { %v801_v47 = vmax.f32 %v776_v46, 0.0 }
 0x145   :  { %v822_v49 = vpack.c.bf16 %v801_v47, %v801_v47 }
 0x146   :  { %v715_v50 = vpop.f32.mrf.mxu2  ;;  %v591_v53 = vpop.f32.mrf.mxu0 }
 0x147   :  { %v778_v51 = vpop.f32.mrf.mxu3  ;;  %844 = vst.msk [vmem:[%s1686_s3 + $0x4c] sm:$0xf] %vm824_vm0, %v822_v49  ;;  %v716_v52 = vadd.f32 %v715_v50, %v653_v48  ;;  %v654_v54 = vpop.f32.mrf.mxu1 }
 0x149   :  { %v779_v55 = vadd.f32 %v778_v51, %v716_v52 }
 0x14b   :  { %v802_v56 = vmax.f32 %v779_v55, 0.0 }
 0x14d   :  { %v823_v57 = vpack.c.bf16 %v802_v56, %v802_v56 }
 0x14e   :  { %v717_v58 = vpop.f32.mrf.mxu2 }
 0x14f   :  { %v780_v59 = vpop.f32.mrf.mxu3  ;;  %845 = vst.msk [vmem:[%s1686_s3 + $0x50] sm:$0xf] %vm824_vm0, %v823_v57 }

// kernel: cnn_base_forward.6
= control target key start
LH: loop header
LB: loop body
LE: loop exit
PB: predicated region body
PF: predicated region fallthrough
CT: control target
= control target key end

     0   :  { %vm513_vm0 = vcmask 523264   ;;  %vm776_vm1 = vcmask 257024   ;;  %s1581_s1 = inlined_call_operand.vmem [shape: bf16[576,32], index: 1, kind: input, shape index: {}]   ;;  %s1582_s2 = inlined_call_operand.vmem [shape: f32[1,32], index: 2, kind: input, shape index: {}]   ;;  %s1583_s0 = inlined_call_operand.vmem [shape: bf16[98,576], index: 0, kind: input, shape index: {}]   ;;  %s1584_s3 = inlined_call_operand.vmem [shape: bf16[98,32], index: 3, kind: output, shape index: {}]  }
   0x1   :  { %v1102_v0 = vld [vmem:[%s1581_s1 + $0x38] sm:$0xff]  ;;  %v1101_v1 = vld [vmem:[%s1581_s1 + $0x30] sm:$0xff]  ;;  %v1100_v2 = vld [vmem:[%s1581_s1 + $0x28] sm:$0xff] }
   0x2   :  { %1131 = vmatpush.bf16.msra.mxu1 %v1102_v0  ;;  %1132 = vmatpush.bf16.msra.mxu2 %v1102_v0  ;;  %v1099_v3 = vld [vmem:[%s1581_s1 + $0x20] sm:$0xff]  ;;  %v1098_v4 = vld [vmem:[%s1581_s1 + $0x18] sm:$0xff]  ;;  %v1097_v5 = vld [vmem:[%s1581_s1 + $0x10] sm:$0xff] }
   0x3   :  { %1133 = vmatpush.bf16.msra.mxu3 %v1102_v0  ;;  %535 = vmatpush.bf16.msra.mxu0 %v1102_v0  ;;  %v1096_v6 = vld [vmem:[%s1581_s1 + $0x8] sm:$0xff]  ;;  %v1200_v7 = vld [vmem:[%s1583_s0 + $0xf0] sm:$0xff]  ;;  %v1095_v8 = vld [vmem:[%s1581_s1] sm:$0xff] }
   0x4   :  { %v836_v9 = vld [vmem:[%s1583_s0 + $0x50] sm:$0xf]  ;;  %v1077_v10 = vld [vmem:[%s1583_s0 + $0x60] sm:$0xf0]  ;;  %v876_v11 = vld [vmem:[%s1583_s0 + $0xa0] sm:$0xf]  ;;  %v229_v15 = vunpack.c.l.b16 %v1200_v7 }
   0x5   :  { %v1087_v12 = vld [vmem:[%s1583_s0 + $0xb0] sm:$0xf0]  ;;  %v796_v13 = vld [vmem:[%s1583_s0] sm:$0xf]  ;;  %v1126_v16 = vld [vmem:[%s1581_s1 + $0xf8] sm:$0xff]  ;;  %v837_v18 = vor.u32 %v1077_v10, %v836_v9 }
   0x6   :  { %1134 = vmatpush.bf16.msra.mxu1 %v1101_v1  ;;  %1135 = vmatpush.bf16.msra.mxu2 %v1101_v1  ;;  %v1067_v14 = vld [vmem:[%s1583_s0 + $0x10] sm:$0xf0]  ;;  %v1118_v17 = vld [vmem:[%s1581_s1 + $0xb8] sm:$0xff]  ;;  %v877_v19 = vor.u32 %v1087_v12, %v876_v11  ;;  %v264_v23 = vpack.c.b16 %v229_v15, %v229_v15  ;;  %v1124_v28 = vld [vmem:[%s1581_s1 + $0xe8] sm:$0xff] }
   0x7   :  { %1136 = vmatpush.bf16.msra.mxu3 %v1101_v1  ;;  %536 = vmatpush.bf16.msra.mxu0 %v1101_v1  ;;  %v797_v20 = vor.u32 %v1067_v14, %v796_v13  ;;  %v1110_v21 = vld [vmem:[%s1581_s1 + $0x78] sm:$0xff]  ;;  %v1125_v24 = vld [vmem:[%s1581_s1 + $0xf0] sm:$0xff]  ;;  %v1116_v29 = vld [vmem:[%s1581_s1 + $0xa8] sm:$0xff] }
   0x8   :  { %v1130_v22 = vld [vmem:[%s1581_s1 + $0x118] sm:$0xff]  ;;  %v1117_v25 = vld [vmem:[%s1581_s1 + $0xb0] sm:$0xff]  ;;  %v1108_v30 = vld [vmem:[%s1581_s1 + $0x68] sm:$0xff] }
   0x9   :  { %v1109_v26 = vld [vmem:[%s1581_s1 + $0x70] sm:$0xff]  ;;  %v1128_v31 = vld [vmem:[%s1581_s1 + $0x108] sm:$0xff]  ;;  %v1123_v32 = vld [vmem:[%s1581_s1 + $0xe0] sm:$0xff] }
   0xa   :  { %1137 = vmatpush.bf16.msra.mxu1 %v1100_v2  ;;  %1138 = vmatpush.bf16.msra.mxu2 %v1100_v2  ;;  %v1129_v27 = vld [vmem:[%s1581_s1 + $0x110] sm:$0xff]  ;;  %v1115_v33 = vld [vmem:[%s1581_s1 + $0xa0] sm:$0xff]  ;;  %v856_v35 = vld [vmem:[%s1583_s0 + $0x78] sm:$0xf] }
   0xb   :  { %1139 = vmatpush.bf16.msra.mxu3 %v1100_v2  ;;  %537 = vmatpush.bf16.msra.mxu0 %v1100_v2  ;;  %v1107_v34 = vld [vmem:[%s1581_s1 + $0x60] sm:$0xff]  ;;  %v1082_v36 = vld [vmem:[%s1583_s0 + $0x88] sm:$0xf0]  ;;  %v896_v37 = vld [vmem:[%s1583_s0 + $0xc8] sm:$0xf] }
   0xc   :  { %v1092_v38 = vld [vmem:[%s1583_s0 + $0xd8] sm:$0xf0]  ;;  %v816_v39 = vld [vmem:[%s1583_s0 + $0x28] sm:$0xf]  ;;  %v1127_v41 = vld [vmem:[%s1581_s1 + $0x100] sm:$0xff]  ;;  %v857_v44 = vor.u32 %v1082_v36, %v856_v35 }
   0xd   :  { %v1072_v40 = vld [vmem:[%s1583_s0 + $0x38] sm:$0xf0]  ;;  %v897_v45 = vor.u32 %v1092_v38, %v896_v37  ;;  %v1121_v48 = vld [vmem:[%s1581_s1 + $0xd0] sm:$0xff]  ;;  %v1120_v51 = vld [vmem:[%s1581_s1 + $0xc8] sm:$0xff] }
   0xe   :  { %1140 = vmatpush.bf16.msra.mxu1 %v1099_v3  ;;  %1141 = vmatpush.bf16.msra.mxu2 %v1099_v3  ;;  %v1122_v42 = vld [vmem:[%s1581_s1 + $0xd8] sm:$0xff]  ;;  %v817_v46 = vor.u32 %v1072_v40, %v816_v39  ;;  %v1113_v49 = vld [vmem:[%s1581_s1 + $0x90] sm:$0xff]  ;;  %v1112_v52 = vld [vmem:[%s1581_s1 + $0x88] sm:$0xff] }
   0xf   :  { %1142 = vmatpush.bf16.msra.mxu3 %v1099_v3  ;;  %538 = vmatpush.bf16.msra.mxu0 %v1099_v3  ;;  %v1114_v43 = vld [vmem:[%s1581_s1 + $0x98] sm:$0xff]  ;;  %v1105_v50 = vld [vmem:[%s1581_s1 + $0x50] sm:$0xff]  ;;  %v1104_v53 = vld [vmem:[%s1581_s1 + $0x48] sm:$0xff] }
  0x10   :  { %v1106_v47 = vld [vmem:[%s1581_s1 + $0x58] sm:$0xff]  ;;  %v1119_v54 = vld [vmem:[%s1581_s1 + $0xc0] sm:$0xff]  ;;  %v1066_v56 = vld [vmem:[%s1583_s0 + $0xc] sm:$0xf] }
  0x11   :  { %v1111_v55 = vld [vmem:[%s1581_s1 + $0x80] sm:$0xff]  ;;  %v798_v60 = vld [vmem:[%s1583_s0 + $0x14] sm:$0xf0]  ;;  %v804_v61 = vld [vmem:[%s1583_s0 + $0x8] sm:$0xf] }
  0x12   :  { %1143 = vmatpush.bf16.msra.mxu1 %v1098_v4  ;;  %1144 = vmatpush.bf16.msra.mxu2 %v1098_v4  ;;  %v806_v57 = vld [vmem:[%s1583_s0 + $0x1c] sm:$0xf0]  ;;  %v1065_v59 = vld [vmem:[%s1583_s0 + $0x4] sm:$0xf]  ;;  %v1068_v62 = vld [vmem:[%s1583_s0 + $0x18] sm:$0xf0] }
  0x13   :  { %1145 = vmatpush.bf16.msra.mxu3 %v1098_v4  ;;  %539 = vmatpush.bf16.msra.mxu0 %v1098_v4  ;;  %v1103_v58 = vld [vmem:[%s1581_s1 + $0x40] sm:$0xff]  ;;  %v809_v63 = vor.u32 %v1066_v56, %v806_v57  ;;  %v812_v0 = vld [vmem:[%s1583_s0 + $0x10] sm:$0xf]  ;;  %v801_v2 = vor.u32 %v1065_v59, %v798_v60  ;;  %v805_v3 = vor.u32 %v1068_v62, %v804_v61  ;;  %v832_v13 = vld [vmem:[%s1583_s0 + $0x38] sm:$0xf] }
  0x14   :  { %v1069_v1 = vld [vmem:[%s1583_s0 + $0x20] sm:$0xf0]  ;;  %v818_v9 = vld [vmem:[%s1583_s0 + $0x3c] sm:$0xf0]  ;;  %v824_v10 = vld [vmem:[%s1583_s0 + $0x30] sm:$0xf] }
  0x15   :  { %v813_v4 = vor.u32 %v1069_v1, %v812_v0  ;;  %v1073_v11 = vld [vmem:[%s1583_s0 + $0x40] sm:$0xf0]  ;;  %v1074_v14 = vld [vmem:[%s1583_s0 + $0x48] sm:$0xf0]  ;;  %v1083_v35 = vld [vmem:[%s1583_s0 + $0x90] sm:$0xf0] }
  0x16   :  { %1146 = vmatpush.bf16.msra.mxu1 %v1097_v5  ;;  %1147 = vmatpush.bf16.msra.mxu2 %v1097_v5  ;;  %v872_v37 = vld [vmem:[%s1583_s0 + $0x88] sm:$0xf]  ;;  %v1084_v38 = vld [vmem:[%s1583_s0 + $0x98] sm:$0xf0]  ;;  %v1090_v56 = vld [vmem:[%s1583_s0 + $0xcc] sm:$0xf] }
  0x17   :  { %1148 = vmatpush.bf16.msra.mxu3 %v1097_v5  ;;  %540 = vmatpush.bf16.msra.mxu0 %v1097_v5  ;;  %v1071_v5 = vld [vmem:[%s1583_s0 + $0x34] sm:$0xf]  ;;  %v898_v57 = vld [vmem:[%s1583_s0 + $0xdc] sm:$0xf0]  ;;  %v1093_v59 = vld [vmem:[%s1583_s0 + $0xe0] sm:$0xf0] }
  0x18   :  { %v912_v61 = vld [vmem:[%s1583_s0 + $0xd8] sm:$0xf]  ;;  %v1094_v62 = vld [vmem:[%s1583_s0 + $0xe8] sm:$0xf0] }
  0x19   :  { %v913_v1 = vor.u32 %v1094_v62, %v912_v61 }
  0x1a   :  { %1149 = vmatpush.bf16.msra.mxu1 %v1096_v6  ;;  %1150 = vmatpush.bf16.msra.mxu2 %v1096_v6 }
  0x1b   :  { %1151 = vmatpush.bf16.msra.mxu3 %v1096_v6  ;;  %541 = vmatpush.bf16.msra.mxu0 %v1096_v6  ;;  %v826_v6 = vld [vmem:[%s1583_s0 + $0x44] sm:$0xf0] }
  0x1c   :  { %v829_v12 = vor.u32 %v1071_v5, %v826_v6  ;;  %v230_v5 = vunpack.c.h.b16 %v1200_v7 }
  0x1e   :  { %1152 = vmatpush.bf16.msra.mxu1 %v1095_v8  ;;  %1153 = vmatpush.bf16.msra.mxu2 %v1095_v8 }
  0x1f   :  { %1154 = vmatpush.bf16.msra.mxu3 %v1095_v8  ;;  %542 = vmatpush.bf16.msra.mxu0 %v1095_v8  ;;  %v1070_v8 = vld [vmem:[%s1583_s0 + $0x2c] sm:$0xf] }
  0x20   :  { %v821_v15 = vor.u32 %v1070_v8, %v818_v9 }
  0x21   :  { %553 = vmatmul.bf16.vlgmr.msra.gmra.mxu1 %v837_v18  ;;  %563 = vmatmul.bf16.vlgmr.msra.gmra.mxu2 %v877_v19  ;;  %v1076_v18 = vld [vmem:[%s1583_s0 + $0x5c] sm:$0xf]  ;;  %v846_v19 = vld [vmem:[%s1583_s0 + $0x6c] sm:$0xf0] }
  0x22   :  { %621 = vmatpush.bf16.msrb.mxu2 %v1118_v17  ;;  %543 = vmatmul.bf16.vlgmr.msra.gmra.mxu0 %v797_v20  ;;  %v833_v17 = vor.u32 %v1074_v14, %v832_v13  ;;  %v1075_v20 = vld [vmem:[%s1583_s0 + $0x54] sm:$0xf] }
  0x23   :  { %664 = vmatpush.bf16.msrb.mxu3 %v1126_v16  ;;  %578 = vmatpush.bf16.msrb.mxu1 %v1110_v21  ;;  %v825_v16 = vor.u32 %v1073_v11, %v824_v10  ;;  %v838_v21 = vld [vmem:[%s1583_s0 + $0x64] sm:$0xf0]  ;;  %v265_v10 = vpack.c.b16 %v230_v5, %v230_v5 }
  0x24   :  { %711 = vmatpush.bf16.msrb.mxu0 %v1130_v22  ;;  %573 = vmatmul.bf16.vlgmr.msra.gmra.mxu3 %v264_v23  ;;  %v844_v22 = vld [vmem:[%s1583_s0 + $0x58] sm:$0xf]  ;;  %v1078_v23 = vld [vmem:[%s1583_s0 + $0x68] sm:$0xf0] }
  0x26   :  { %622 = vmatpush.bf16.msrb.mxu2 %v1117_v25  ;;  %v852_v25 = vld [vmem:[%s1583_s0 + $0x60] sm:$0xf] }
  0x27   :  { %665 = vmatpush.bf16.msrb.mxu3 %v1125_v24  ;;  %579 = vmatpush.bf16.msrb.mxu1 %v1109_v26  ;;  %v849_v24 = vor.u32 %v1076_v18, %v846_v19  ;;  %v1079_v26 = vld [vmem:[%s1583_s0 + $0x70] sm:$0xf0] }
  0x28   :  { %712 = vmatpush.bf16.msrb.mxu0 %v1129_v27  ;;  %v841_v27 = vor.u32 %v1075_v20, %v838_v21 }
  0x2a   :  { %623 = vmatpush.bf16.msrb.mxu2 %v1116_v29  ;;  %v853_v29 = vor.u32 %v1079_v26, %v852_v25 }
  0x2b   :  { %666 = vmatpush.bf16.msrb.mxu3 %v1124_v28  ;;  %580 = vmatpush.bf16.msrb.mxu1 %v1108_v30  ;;  %v845_v28 = vor.u32 %v1078_v23, %v844_v22  ;;  %v1081_v30 = vld [vmem:[%s1583_s0 + $0x84] sm:$0xf] }
  0x2c   :  { %713 = vmatpush.bf16.msrb.mxu0 %v1128_v31  ;;  %v866_v31 = vld [vmem:[%s1583_s0 + $0x94] sm:$0xf0] }
  0x2d   :  { %v869_v36 = vor.u32 %v1081_v30, %v866_v31 }
  0x2e   :  { %624 = vmatpush.bf16.msrb.mxu2 %v1115_v33  ;;  %v858_v33 = vld [vmem:[%s1583_s0 + $0x8c] sm:$0xf0] }
  0x2f   :  { %667 = vmatpush.bf16.msrb.mxu3 %v1123_v32  ;;  %581 = vmatpush.bf16.msrb.mxu1 %v1107_v34  ;;  %v1080_v32 = vld [vmem:[%s1583_s0 + $0x7c] sm:$0xf]  ;;  %v864_v34 = vld [vmem:[%s1583_s0 + $0x80] sm:$0xf] }
  0x30   :  { %714 = vmatpush.bf16.msrb.mxu0 %v1127_v41  ;;  %v861_v39 = vor.u32 %v1080_v32, %v858_v33  ;;  %v865_v40 = vor.u32 %v1083_v35, %v864_v34  ;;  %v873_v41 = vor.u32 %v1084_v38, %v872_v37 }
  0x31   :  { %558 = vmatmul.bf16.gmra.mxu1 %v857_v44  ;;  %568 = vmatmul.bf16.gmra.mxu2 %v897_v45  ;;  %v1085_v44 = vld [vmem:[%s1583_s0 + $0xa4] sm:$0xf]  ;;  %v878_v45 = vld [vmem:[%s1583_s0 + $0xb4] sm:$0xf0] }
  0x32   :  { %625 = vmatpush.bf16.msrb.mxu2 %v1114_v43  ;;  %548 = vmatmul.bf16.gmra.mxu0 %v817_v46  ;;  %v886_v43 = vld [vmem:[%s1583_s0 + $0xbc] sm:$0xf0]  ;;  %v884_v46 = vld [vmem:[%s1583_s0 + $0xa8] sm:$0xf] }
  0x33   :  { %668 = vmatpush.bf16.msrb.mxu3 %v1122_v42  ;;  %582 = vmatpush.bf16.msrb.mxu1 %v1106_v47  ;;  %v1086_v42 = vld [vmem:[%s1583_s0 + $0xac] sm:$0xf]  ;;  %v1088_v47 = vld [vmem:[%s1583_s0 + $0xb8] sm:$0xf0] }
  0x36   :  { %626 = vmatpush.bf16.msrb.mxu2 %v1113_v49  ;;  %v892_v49 = vld [vmem:[%s1583_s0 + $0xb0] sm:$0xf] }
  0x37   :  { %669 = vmatpush.bf16.msrb.mxu3 %v1121_v48  ;;  %583 = vmatpush.bf16.msrb.mxu1 %v1105_v50  ;;  %v889_v48 = vor.u32 %v1086_v42, %v886_v43  ;;  %v1089_v50 = vld [vmem:[%s1583_s0 + $0xc0] sm:$0xf0] }
  0x3a   :  { %627 = vmatpush.bf16.msrb.mxu2 %v1112_v52  ;;  %v885_v52 = vor.u32 %v1088_v47, %v884_v46 }
  0x3b   :  { %670 = vmatpush.bf16.msrb.mxu3 %v1120_v51  ;;  %584 = vmatpush.bf16.msrb.mxu1 %v1104_v53  ;;  %v881_v51 = vor.u32 %v1085_v44, %v878_v45  ;;  %v893_v53 = vor.u32 %v1089_v50, %v892_v49 }
  0x3e   :  { %628 = vmatpush.bf16.msrb.mxu2 %v1111_v55  ;;  %v906_v55 = vld [vmem:[%s1583_s0 + $0xe4] sm:$0xf0] }
  0x3f   :  { %671 = vmatpush.bf16.msrb.mxu3 %v1119_v54  ;;  %585 = vmatpush.bf16.msrb.mxu1 %v1103_v58  ;;  %v1091_v54 = vld [vmem:[%s1583_s0 + $0xd4] sm:$0xf]  ;;  %v904_v58 = vld [vmem:[%s1583_s0 + $0xd0] sm:$0xf] }
  0x40   :  { %v909_v60 = vor.u32 %v1091_v54, %v906_v55  ;;  %v905_v0 = vor.u32 %v1093_v59, %v904_v58 }
  0x41   :  { %629 = vmatmul.bf16.vlgmr.msrb.gmra.mxu2 %v805_v3 }
  0x42   :  { %672 = vmatmul.bf16.vlgmr.msrb.gmra.mxu3 %v809_v63  ;;  %586 = vmatmul.bf16.vlgmr.msrb.gmra.mxu1 %v801_v2  ;;  %v901_v63 = vor.u32 %v1090_v56, %v898_v57  ;;  %v52_v2 = vld [vmem:[%s1583_s0 + $0xf8] sm:$0xff] }
  0x43   :  { %1058 = vmatmul.msk.bf16.vlgmr.msrb.gmra.mxu0 %vm513_vm0, %v813_v4  ;;  %v232_v3 = vunpack.c.h.b16 %v52_v2  ;;  %v53_v4 = vld [vmem:[%s1583_s0 + $0x100] sm:$0xf]  ;;  %v231_v6 = vunpack.c.l.b16 %v52_v2 }
  0x44   :  { %v233_v8 = vunpack.c.l.b16 %v53_v4 }
  0x45   :  { %v267_v9 = vpack.c.b16 %v232_v3, %v232_v3  ;;  %v266_v11 = vpack.c.b16 %v231_v6, %v231_v6 }
  0x46   :  { %v268_v13 = vpack.c.b16 %v233_v8, %v233_v8 }
  0x51   :  { %634 = vmatmul.bf16.gmra.mxu2 %v825_v16 }
  0x52   :  { %677 = vmatmul.bf16.gmra.mxu3 %v829_v12  ;;  %591 = vmatmul.bf16.gmra.mxu1 %v821_v15  ;;  %v1489_v15 = vld [vmem:[%s1582_s2] ss:$0 sm:$0xff] }
  0x53   :  { %1059 = vmatmul.msk.bf16.gmra.mxu0 %vm513_vm0, %v833_v17 }
  0x61   :  { %639 = vmatmul.bf16.gmra.mxu2 %v845_v28 }
  0x62   :  { %682 = vmatmul.bf16.gmra.mxu3 %v849_v24  ;;  %596 = vmatmul.bf16.gmra.mxu1 %v841_v27 }
  0x63   :  { %1060 = vmatmul.msk.bf16.gmra.mxu0 %vm513_vm0, %v853_v29 }
  0x71   :  { %644 = vmatmul.bf16.gmra.mxu2 %v865_v40 }
  0x72   :  { %687 = vmatmul.bf16.gmra.mxu3 %v869_v36  ;;  %601 = vmatmul.bf16.gmra.mxu1 %v861_v39 }
  0x73   :  { %1061 = vmatmul.msk.bf16.gmra.mxu0 %vm513_vm0, %v873_v41 }
  0x81   :  { %649 = vmatmul.bf16.gmra.mxu2 %v885_v52 }
  0x82   :  { %692 = vmatmul.bf16.gmra.mxu3 %v889_v48  ;;  %606 = vmatmul.bf16.gmra.mxu1 %v881_v51 }
  0x83   :  { %1062 = vmatmul.msk.bf16.gmra.mxu0 %vm513_vm0, %v893_v53 }
  0x91   :  { %654 = vmatmul.bf16.gmra.mxu2 %v905_v0 }
  0x92   :  { %697 = vmatmul.bf16.gmra.mxu3 %v909_v60  ;;  %611 = vmatmul.bf16.gmra.mxu1 %v901_v63 }
  0x93   :  { %1063 = vmatmul.msk.bf16.gmra.mxu0 %vm513_vm0, %v913_v1 }
  0x9e   :  { %v1483_v12 = vpop.f32.mrf.mxu1 }
  0x9f   :  { %v544_v14 = vpop.f32.mrf.mxu0 }
  0xa0   :  { %v545_v34 = vadd.f32 %v1489_v15, %v544_v14 }
  0xa1   :  { %659 = vmatmul.bf16.gmra.mxu2 %v266_v11 }
  0xa2   :  { %702 = vmatmul.bf16.gmra.mxu3 %v267_v9  ;;  %616 = vmatmul.bf16.gmra.mxu1 %v265_v10 }
  0xa3   :  { %1064 = vmatmul.msk.bf16.gmra.mxu0 %vm513_vm0, %v268_v13  ;;  %v555_v13 = vadd.f32 %v1489_v15, %v1483_v12 }
  0xa4   :  { %v564_v7 = vpop.f32.mrf.mxu2 }
  0xa5   :  { %v1492_v16 = vadd.f32 %v1489_v15, %v564_v7 }
  0xa6   :  { %v1494_v17 = vpop.f32.mrf.mxu1 }
  0xa7   :  { %v574_v18 = vpop.f32.mrf.mxu3  ;;  %v546_v19 = vpop.f32.mrf.mxu0 }
  0xa8   :  { %v1497_v20 = vadd.f32 %v1489_v15, %v574_v18  ;;  %v547_v42 = vadd.f32 %v1489_v15, %v546_v19 }
  0xac   :  { %v566_v21 = vpop.f32.mrf.mxu2 }
  0xad   :  { %v1500_v22 = vadd.f32 %v1489_v15, %v566_v21 }
  0xae   :  { %v1502_v23 = vpop.f32.mrf.mxu1 }
  0xaf   :  { %v576_v24 = vpop.f32.mrf.mxu3  ;;  %v549_v25 = vpop.f32.mrf.mxu0 }
  0xb0   :  { %v550_v53 = vadd.f32 %v1489_v15, %v549_v25 }
  0xb4   :  { %v569_v26 = vpop.f32.mrf.mxu2 }
  0xb5   :  { %v1505_v27 = vadd.f32 %v1489_v15, %v569_v26 }
  0xb6   :  { %v1507_v28 = vpop.f32.mrf.mxu1 }
  0xb7   :  { %v551_v29 = vpop.f32.mrf.mxu0 }
  0xb8   :  { %v552_v0 = vadd.f32 %v1489_v15, %v551_v29 }
  0xbc   :  { %v571_v30 = vpop.f32.mrf.mxu2 }
  0xbd   :  { %v1510_v31 = vadd.f32 %v1489_v15, %v571_v30 }
  0xbf   :  { %v587_v32 = vpop.f32.mrf.mxu1 }
  0xc0   :  { %v716_v33 = vpop.f32.mrf.mxu0  ;;  %v588_v36 = vadd.f32 %v587_v32, %v545_v34  ;;  %v557_v32 = vadd.f32 %v1489_v15, %v1494_v17 }
  0xc4   :  { %v630_v37 = vpop.f32.mrf.mxu2 }
  0xc5   :  { %v673_v35 = vpop.f32.mrf.mxu3  ;;  %v631_v38 = vadd.f32 %v630_v37, %v588_v36 }
  0xc7   :  { %v589_v39 = vpop.f32.mrf.mxu1  ;;  %v674_v40 = vadd.f32 %v673_v35, %v631_v38 }
  0xc8   :  { %v718_v41 = vpop.f32.mrf.mxu0  ;;  %v590_v46 = vadd.f32 %v589_v39, %v547_v42  ;;  %v560_v42 = vadd.f32 %v1489_v15, %v1502_v23 }
  0xc9   :  { %v717_v43 = vadd.f32 %v716_v33, %v674_v40 }
  0xcb   :  { %v750_v45 = vmax.f32 %v717_v43, 0.0 }
  0xcc   :  { %v632_v47 = vpop.f32.mrf.mxu2 }
  0xcd   :  { %v675_v44 = vpop.f32.mrf.mxu3  ;;  %v763_v48 = vpack.c.bf16 %v750_v45, %v750_v45  ;;  %v633_v49 = vadd.f32 %v632_v47, %v590_v46 }
  0xcf   :  { %v592_v50 = vpop.f32.mrf.mxu1  ;;  %777 = vst.msk [vmem:[%s1584_s3] sm:$0xf] %vm776_vm1, %v763_v48  ;;  %v676_v51 = vadd.f32 %v675_v44, %v633_v49 }
  0xd0   :  { %v721_v52 = vpop.f32.mrf.mxu0  ;;  %v593_v57 = vadd.f32 %v592_v50, %v550_v53 }
  0xd1   :  { %v719_v54 = vadd.f32 %v718_v41, %v676_v51 }
  0xd3   :  { %v751_v56 = vmax.f32 %v719_v54, 0.0 }
  0xd4   :  { %v635_v58 = vpop.f32.mrf.mxu2 }
  0xd5   :  { %v678_v55 = vpop.f32.mrf.mxu3  ;;  %v764_v59 = vpack.c.bf16 %v751_v56, %v751_v56  ;;  %v636_v60 = vadd.f32 %v635_v58, %v593_v57 }
  0xd7   :  { %v594_v61 = vpop.f32.mrf.mxu1  ;;  %778 = vst.msk [vmem:[%s1584_s3 + $0x4] sm:$0xf] %vm776_vm1, %v764_v59  ;;  %v679_v62 = vadd.f32 %v678_v55, %v636_v60 }
  0xd8   :  { %v723_v63 = vpop.f32.mrf.mxu0  ;;  %v595_v4 = vadd.f32 %v594_v61, %v552_v0 }
  0xd9   :  { %v722_v1 = vadd.f32 %v721_v52, %v679_v62  ;;  %v562_v52 = vadd.f32 %v1489_v15, %v1507_v28 }
  0xdb   :  { %v752_v3 = vmax.f32 %v722_v1, 0.0 }
  0xdc   :  { %v637_v5 = vpop.f32.mrf.mxu2 }
  0xdd   :  { %v680_v2 = vpop.f32.mrf.mxu3  ;;  %v765_v6 = vpack.c.bf16 %v752_v3, %v752_v3  ;;  %v638_v8 = vadd.f32 %v637_v5, %v595_v4 }
  0xdf   :  { %v597_v9 = vpop.f32.mrf.mxu1  ;;  %779 = vst.msk [vmem:[%s1584_s3 + $0x8] sm:$0xf] %vm776_vm1, %v765_v6  ;;  %v681_v10 = vadd.f32 %v680_v2, %v638_v8 }
  0xe0   :  { %v726_v11 = vpop.f32.mrf.mxu0  ;;  %v598_v19 = vadd.f32 %v597_v9, %v555_v13 }
  0xe1   :  { %v724_v14 = vadd.f32 %v723_v63, %v681_v10 }
  0xe3   :  { %v753_v18 = vmax.f32 %v724_v14, 0.0 }
  0xe4   :  { %v640_v21 = vpop.f32.mrf.mxu2 }
  0xe5   :  { %v683_v7 = vpop.f32.mrf.mxu3  ;;  %v766_v24 = vpack.c.bf16 %v753_v18, %v753_v18  ;;  %v641_v25 = vadd.f32 %v640_v21, %v598_v19 }
  0xe7   :  { %v599_v26 = vpop.f32.mrf.mxu1  ;;  %780 = vst.msk [vmem:[%s1584_s3 + $0xc] sm:$0xf] %vm776_vm1, %v766_v24  ;;  %v684_v29 = vadd.f32 %v683_v7, %v641_v25 }
  0xe8   :  { %v728_v30 = vpop.f32.mrf.mxu0  ;;  %v600_v35 = vadd.f32 %v599_v26, %v557_v32 }
  0xe9   :  { %v727_v33 = vadd.f32 %v726_v11, %v684_v29 }
  0xeb   :  { %v754_v34 = vmax.f32 %v727_v33, 0.0 }
  0xec   :  { %v642_v36 = vpop.f32.mrf.mxu2 }
  0xed   :  { %v685_v12 = vpop.f32.mrf.mxu3  ;;  %v767_v37 = vpack.c.bf16 %v754_v34, %v754_v34  ;;  %v643_v38 = vadd.f32 %v642_v36, %v600_v35 }
  0xef   :  { %v602_v39 = vpop.f32.mrf.mxu1  ;;  %781 = vst.msk [vmem:[%s1584_s3 + $0x10] sm:$0xf] %vm776_vm1, %v767_v37  ;;  %v686_v40 = vadd.f32 %v685_v12, %v643_v38 }
  0xf0   :  { %v731_v41 = vpop.f32.mrf.mxu0  ;;  %v603_v45 = vadd.f32 %v602_v39, %v560_v42 }
  0xf1   :  { %v729_v43 = vadd.f32 %v728_v30, %v686_v40 }
  0xf3   :  { %v755_v44 = vmax.f32 %v729_v43, 0.0 }
  0xf4   :  { %v645_v46 = vpop.f32.mrf.mxu2 }
  0xf5   :  { %v688_v17 = vpop.f32.mrf.mxu3  ;;  %v768_v47 = vpack.c.bf16 %v755_v44, %v755_v44  ;;  %v646_v48 = vadd.f32 %v645_v46, %v603_v45 }
  0xf7   :  { %v604_v49 = vpop.f32.mrf.mxu1  ;;  %782 = vst.msk [vmem:[%s1584_s3 + $0x14] sm:$0xf] %vm776_vm1, %v768_v47  ;;  %v689_v50 = vadd.f32 %v688_v17, %v646_v48 }
  0xf8   :  { %v733_v51 = vpop.f32.mrf.mxu0  ;;  %v605_v55 = vadd.f32 %v604_v49, %v562_v52 }
  0xf9   :  { %v732_v53 = vadd.f32 %v731_v41, %v689_v50 }
  0xfb   :  { %v756_v54 = vmax.f32 %v732_v53, 0.0 }
  0xfc   :  { %v647_v56 = vpop.f32.mrf.mxu2 }
  0xfd   :  { %v690_v23 = vpop.f32.mrf.mxu3  ;;  %v769_v57 = vpack.c.bf16 %v756_v54, %v756_v54  ;;  %v648_v58 = vadd.f32 %v647_v56, %v605_v55 }
  0xff   :  { %v607_v59 = vpop.f32.mrf.mxu1  ;;  %783 = vst.msk [vmem:[%s1584_s3 + $0x18] sm:$0xf] %vm776_vm1, %v769_v57  ;;  %v691_v60 = vadd.f32 %v690_v23, %v648_v58 }
 0x100   :  { %v736_v61 = vpop.f32.mrf.mxu0  ;;  %v608_v15 = vadd.f32 %v607_v59, %v1492_v16 }
 0x101   :  { %v734_v62 = vadd.f32 %v733_v51, %v691_v60 }
 0x103   :  { %v757_v0 = vmax.f32 %v734_v62, 0.0 }
 0x104   :  { %v650_v28 = vpop.f32.mrf.mxu2 }
 0x105   :  { %v693_v63 = vpop.f32.mrf.mxu3  ;;  %v770_v1 = vpack.c.bf16 %v757_v0, %v757_v0  ;;  %v651_v2 = vadd.f32 %v650_v28, %v608_v15 }
 0x107   :  { %v609_v3 = vpop.f32.mrf.mxu1  ;;  %784 = vst.msk [vmem:[%s1584_s3 + $0x1c] sm:$0xf] %vm776_vm1, %v770_v1  ;;  %v694_v4 = vadd.f32 %v693_v63, %v651_v2 }
 0x108   :  { %v738_v5 = vpop.f32.mrf.mxu0  ;;  %v610_v10 = vadd.f32 %v609_v3, %v1500_v22 }
 0x109   :  { %v737_v6 = vadd.f32 %v736_v61, %v694_v4 }
 0x10b   :  { %v758_v9 = vmax.f32 %v737_v6, 0.0 }
 0x10c   :  { %v652_v11 = vpop.f32.mrf.mxu2 }
 0x10d   :  { %v695_v8 = vpop.f32.mrf.mxu3  ;;  %v771_v13 = vpack.c.bf16 %v758_v9, %v758_v9  ;;  %v653_v14 = vadd.f32 %v652_v11, %v610_v10 }
 0x10f   :  { %v612_v16 = vpop.f32.mrf.mxu1  ;;  %785 = vst.msk [vmem:[%s1584_s3 + $0x20] sm:$0xf] %vm776_vm1, %v771_v13  ;;  %v696_v7 = vadd.f32 %v695_v8, %v653_v14 }
 0x110   :  { %v741_v18 = vpop.f32.mrf.mxu0  ;;  %v613_v25 = vadd.f32 %v612_v16, %v1505_v27 }
 0x111   :  { %v739_v19 = vadd.f32 %v738_v5, %v696_v7 }
 0x113   :  { %v759_v24 = vmax.f32 %v739_v19, 0.0 }
 0x114   :  { %v655_v26 = vpop.f32.mrf.mxu2 }
 0x115   :  { %v698_v21 = vpop.f32.mrf.mxu3  ;;  %v772_v29 = vpack.c.bf16 %v759_v24, %v759_v24  ;;  %v656_v30 = vadd.f32 %v655_v26, %v613_v25 }
 0x117   :  { %v614_v22 = vpop.f32.mrf.mxu1  ;;  %786 = vst.msk [vmem:[%s1584_s3 + $0x24] sm:$0xf] %vm776_vm1, %v772_v29  ;;  %v699_v32 = vadd.f32 %v698_v21, %v656_v30 }
 0x118   :  { %v743_v33 = vpop.f32.mrf.mxu0  ;;  %v615_v36 = vadd.f32 %v614_v22, %v1510_v31 }
 0x119   :  { %v742_v12 = vadd.f32 %v741_v18, %v699_v32 }
 0x11b   :  { %v760_v35 = vmax.f32 %v742_v12, 0.0 }
 0x11c   :  { %v657_v37 = vpop.f32.mrf.mxu2 }
 0x11d   :  { %v700_v34 = vpop.f32.mrf.mxu3  ;;  %v773_v38 = vpack.c.bf16 %v760_v35, %v760_v35  ;;  %v658_v39 = vadd.f32 %v657_v37, %v615_v36 }
 0x11f   :  { %v617_v27 = vpop.f32.mrf.mxu1  ;;  %787 = vst.msk [vmem:[%s1584_s3 + $0x28] sm:$0xf] %vm776_vm1, %v773_v38  ;;  %v701_v40 = vadd.f32 %v700_v34, %v658_v39 }
 0x120   :  { %v746_v41 = vpop.f32.mrf.mxu0  ;;  %v618_v44 = vadd.f32 %v617_v27, %v1497_v20 }
 0x121   :  { %v744_v42 = vadd.f32 %v743_v33, %v701_v40 }
 0x123   :  { %v761_v17 = vmax.f32 %v744_v42, 0.0 }
 0x124   :  { %v660_v45 = vpop.f32.mrf.mxu2 }
 0x125   :  { %v703_v43 = vpop.f32.mrf.mxu3  ;;  %v774_v46 = vpack.c.bf16 %v761_v17, %v761_v17  ;;  %v661_v47 = vadd.f32 %v660_v45, %v618_v44 }
 0x127   :  { %v619_v31 = vpop.f32.mrf.mxu1  ;;  %788 = vst.msk [vmem:[%s1584_s3 + $0x2c] sm:$0xf] %vm776_vm1, %v774_v46  ;;  %v704_v48 = vadd.f32 %v703_v43, %v661_v47 }
 0x128   :  { %v748_v49 = vpop.f32.mrf.mxu0 }
 0x129   :  { %v747_v50 = vadd.f32 %v746_v41, %v704_v48 }
 0x12b   :  { %v762_v52 = vmax.f32 %v747_v50, 0.0 }
 0x12c   :  { %v662_v53 = vpop.f32.mrf.mxu2 }
 0x12d   :  { %v705_v51 = vpop.f32.mrf.mxu3  ;;  %v775_v23 = vpack.c.bf16 %v762_v52, %v762_v52 }
 0x12f   :  { %789 = vst.msk [vmem:[%s1584_s3 + $0x30] sm:$0xf] %vm776_vm1, %v775_v23 }

// kernel: cnn_base_forward.7
= control target key start
LH: loop header
LB: loop body
LE: loop exit
PB: predicated region body
PF: predicated region fallthrough
CT: control target
= control target key end

     0   :  { %s2021_s0 = inlined_call_operand.vmem [shape: bf16[2,1568], index: 0, kind: input, shape index: {}]   ;;  %s2022_s1 = inlined_call_operand.vmem [shape: bf16[1568,64], index: 1, kind: input, shape index: {}]   ;;  %s2023_s2 = inlined_call_operand.vmem [shape: f32[1,64], index: 2, kind: input, shape index: {}]   ;;  %s2024_s3 = inlined_call_operand.vmem [shape: f32[1,64], index: 3, kind: input, shape index: {}]   ;;  %s2025_s4 = inlined_call_operand.<no memory space> [shape: f32[1,1], index: 4, kind: input, shape index: {}]   ;;  %s2026_s5 = inlined_call_operand.hbm [shape: f32[2,64], index: 5, kind: output, shape index: {0}]   ;;  %s2027_s6 = inlined_call_operand.vmem [shape: f32[2,1], index: 6, kind: output, shape index: {1}]  }
   0x1   :  { %v12_v0 = vstv %s2025_s4 }
   0x2   :  { %13 = vst [vmem:[#allocation2] sm:$0x1] %v12_v0 }
   0x3   :  { %14 = vsyncpa [#allocation4], 0  ;;  %v1515_v1 = vld [vmem:[%s2022_s1 + $0x38] sm:$0xff]  ;;  %v1514_v5 = vld [vmem:[%s2022_s1 + $0x30] sm:$0xff]  ;;  %vm866_vm0 = vcmask 261120   ;;  %vm1039_vm1 = vcmask 523264  }
   0x4   :  { %v1531_v2 = vld [vmem:[%s2022_s1 + $0xb8] sm:$0xff]  ;;  %869 = vmatpush.bf16.msra.mxu0 %v1515_v1  ;;  %v1530_v6 = vld [vmem:[%s2022_s1 + $0xb0] sm:$0xff]  ;;  %v1513_v9 = vld [vmem:[%s2022_s1 + $0x28] sm:$0xff]  ;;  %vm1054_vm2 = vcmask 7168  }
   0x5   :  { %v1539_v3 = vld [vmem:[%s2022_s1 + $0xf8] sm:$0xff]  ;;  %895 = vmatpush.bf16.msra.mxu2 %v1531_v2  ;;  %v1538_v7 = vld [vmem:[%s2022_s1 + $0xf0] sm:$0xff]  ;;  %v1529_v10 = vld [vmem:[%s2022_s1 + $0xa8] sm:$0xff] }
   0x6   :  { %v1523_v4 = vld [vmem:[%s2022_s1 + $0x78] sm:$0xff]  ;;  %908 = vmatpush.bf16.msra.mxu3 %v1539_v3  ;;  %v1522_v8 = vld [vmem:[%s2022_s1 + $0x70] sm:$0xff]  ;;  %v1537_v11 = vld [vmem:[%s2022_s1 + $0xe8] sm:$0xff] }
   0x7   :  { %882 = vmatpush.bf16.msra.mxu1 %v1523_v4  ;;  %v1521_v12 = vld [vmem:[%s2022_s1 + $0x68] sm:$0xff]  ;;  %v1512_v13 = vld [vmem:[%s2022_s1 + $0x20] sm:$0xff]  ;;  %v1511_v17 = vld [vmem:[%s2022_s1 + $0x18] sm:$0xff] }
   0x8   :  { %870 = vmatpush.bf16.msra.mxu0 %v1514_v5  ;;  %v1528_v14 = vld [vmem:[%s2022_s1 + $0xa0] sm:$0xff]  ;;  %v1527_v18 = vld [vmem:[%s2022_s1 + $0x98] sm:$0xff]  ;;  %v1510_v21 = vld [vmem:[%s2022_s1 + $0x10] sm:$0xff] }
   0x9   :  { %896 = vmatpush.bf16.msra.mxu2 %v1530_v6  ;;  %v1536_v15 = vld [vmem:[%s2022_s1 + $0xe0] sm:$0xff]  ;;  %v1535_v19 = vld [vmem:[%s2022_s1 + $0xd8] sm:$0xff]  ;;  %v28_v23 = vld [vmem:[%s2021_s0 + $0xd] sm:$0xff] }
   0xa   :  { %909 = vmatpush.bf16.msra.mxu3 %v1538_v7  ;;  %v1520_v16 = vld [vmem:[%s2022_s1 + $0x60] sm:$0xff]  ;;  %v1519_v20 = vld [vmem:[%s2022_s1 + $0x58] sm:$0xff]  ;;  %v1526_v24 = vld [vmem:[%s2022_s1 + $0x90] sm:$0xff]  ;;  %238 = vst [vmem:[#allocation1 + $0x1] ss:$9 sm:$0xff] %v28_v23 }
   0xb   :  { %883 = vmatpush.bf16.msra.mxu1 %v1522_v8  ;;  %v26_v22 = vld [vmem:[%s2021_s0] sm:$0xff]  ;;  %v1534_v27 = vld [vmem:[%s2022_s1 + $0xd0] sm:$0xff]  ;;  %v1509_v29 = vld [vmem:[%s2022_s1 + $0x8] sm:$0xff] }
   0xc   :  { %871 = vmatpush.bf16.msra.mxu0 %v1513_v9  ;;  %v30_v25 = vld [vmem:[%s2021_s0 + $0x1a] sm:$0xff]  ;;  %v32_v26 = vld [vmem:[%s2021_s0 + $0x27] sm:$0xff]  ;;  %235 = vst [vmem:[#allocation1] ss:$9 sm:$0xff] %v26_v22  ;;  %v1518_v28 = vld [vmem:[%s2022_s1 + $0x50] sm:$0xff] }
   0xd   :  { %897 = vmatpush.bf16.msra.mxu2 %v1529_v10  ;;  %241 = vst [vmem:[#allocation1 + $0x2] ss:$9 sm:$0xff] %v30_v25  ;;  %v1525_v30 = vld [vmem:[%s2022_s1 + $0x88] sm:$0xff]  ;;  %v1508_v33 = vld [vmem:[%s2022_s1] sm:$0xff]  ;;  %v1547_v36 = vld [vmem:[%s2022_s1 + $0x138] sm:$0xff] }
   0xe   :  { %910 = vmatpush.bf16.msra.mxu3 %v1537_v11  ;;  %244 = vst [vmem:[#allocation1 + $0x3] ss:$9 sm:$0xff] %v32_v26  ;;  %v1533_v31 = vld [vmem:[%s2022_s1 + $0xc8] sm:$0xff]  ;;  %v1524_v34 = vld [vmem:[%s2022_s1 + $0x80] sm:$0xff]  ;;  %v1563_v37 = vld [vmem:[%s2022_s1 + $0x1b8] sm:$0xff] }
   0xf   :  { %884 = vmatpush.bf16.msra.mxu1 %v1521_v12  ;;  %v1517_v32 = vld [vmem:[%s2022_s1 + $0x48] sm:$0xff]  ;;  %v1532_v35 = vld [vmem:[%s2022_s1 + $0xc0] sm:$0xff]  ;;  %v1571_v38 = vld [vmem:[%s2022_s1 + $0x1f8] sm:$0xff] }
  0x10   :  { %872 = vmatpush.bf16.msra.mxu0 %v1512_v13  ;;  %v1516_v39 = vld [vmem:[%s2022_s1 + $0x40] sm:$0xff]  ;;  %v1555_v40 = vld [vmem:[%s2022_s1 + $0x178] sm:$0xff]  ;;  %v1546_v42 = vld [vmem:[%s2022_s1 + $0x130] sm:$0xff] }
  0x11   :  { %898 = vmatpush.bf16.msra.mxu2 %v1528_v14  ;;  %v1562_v44 = vld [vmem:[%s2022_s1 + $0x1b0] sm:$0xff]  ;;  %v1545_v49 = vld [vmem:[%s2022_s1 + $0x128] sm:$0xff]  ;;  %v1544_v53 = vld [vmem:[%s2022_s1 + $0x120] sm:$0xff] }
  0x12   :  { %911 = vmatpush.bf16.msra.mxu3 %v1536_v15  ;;  %v1570_v45 = vld [vmem:[%s2022_s1 + $0x1f0] sm:$0xff]  ;;  %v1561_v50 = vld [vmem:[%s2022_s1 + $0x1a8] sm:$0xff]  ;;  %v31_v59 = vld [vmem:[%s2021_s0 + $0x22] sm:$0x1f] }
  0x13   :  { %885 = vmatpush.bf16.msra.mxu1 %v1520_v16  ;;  %v1554_v47 = vld [vmem:[%s2022_s1 + $0x170] sm:$0xff]  ;;  %v1569_v51 = vld [vmem:[%s2022_s1 + $0x1e8] sm:$0xff]  ;;  %v1560_v61 = vld [vmem:[%s2022_s1 + $0x1a0] sm:$0xff] }
  0x14   :  { %873 = vmatpush.bf16.msra.mxu0 %v1511_v17  ;;  %v1553_v52 = vld [vmem:[%s2022_s1 + $0x168] sm:$0xff]  ;;  %v29_v57 = vld [vmem:[%s2021_s0 + $0x15] sm:$0x1f]  ;;  %v1568_v62 = vld [vmem:[%s2022_s1 + $0x1e0] sm:$0xff] }
  0x15   :  { %899 = vmatpush.bf16.msra.mxu2 %v1527_v18  ;;  %v247_v41 = vld [vmem:[#allocation1 + $0x12] sm:$0xff]  ;;  %v245_v43 = vld [vmem:[#allocation1] sm:$0xff]  ;;  %v246_v48 = vld [vmem:[#allocation1 + $0x9] sm:$0xff] }
  0x16   :  { %912 = vmatpush.bf16.msra.mxu3 %v1535_v19  ;;  %v248_v46 = vld [vmem:[#allocation1 + $0x1b] sm:$0xff]  ;;  %v1828_v55 = vld [vmem:[#allocation1 + $0x24] sm:$0xff]  ;;  %v1841_v60 = vld [vmem:[#allocation1 + $0x2d] sm:$0xff] }
  0x17   :  { %886 = vmatpush.bf16.msra.mxu1 %v1519_v20  ;;  %v1826_v54 = vld [vmem:[#allocation1 + $0x36] sm:$0xff]  ;;  %v27_v56 = vld [vmem:[%s2021_s0 + $0x8] sm:$0x1f]  ;;  %v1836_v58 = vld [vmem:[#allocation1 + $0x3f] sm:$0xff] }
  0x18   :  { %874 = vmatpush.bf16.msra.mxu0 %v1510_v21  ;;  %v33_v63 = vld [vmem:[%s2021_s0 + $0x2f] sm:$0x1f]  ;;  %254 = vst [vmem:[#allocation1] ss:$9 sm:$0xff] %v27_v56  ;;  %v1552_v0 = vld [vmem:[%s2022_s1 + $0x160] sm:$0xff]  ;;  %v1543_v1 = vld [vmem:[%s2022_s1 + $0x118] sm:$0xff] }
  0x19   :  { %900 = vmatpush.bf16.msra.mxu2 %v1526_v24  ;;  %256 = vst [vmem:[#allocation1 + $0x1] ss:$9 sm:$0xff] %v29_v57  ;;  %v1559_v2 = vld [vmem:[%s2022_s1 + $0x198] sm:$0xff]  ;;  %v1542_v5 = vld [vmem:[%s2022_s1 + $0x110] sm:$0xff]  ;;  %v1541_v9 = vld [vmem:[%s2022_s1 + $0x108] sm:$0xff] }
  0x1a   :  { %913 = vmatpush.bf16.msra.mxu3 %v1534_v27  ;;  %258 = vst [vmem:[#allocation1 + $0x2] ss:$9 sm:$0xff] %v31_v59  ;;  %v1567_v3 = vld [vmem:[%s2022_s1 + $0x1d8] sm:$0xff]  ;;  %v1558_v6 = vld [vmem:[%s2022_s1 + $0x190] sm:$0xff]  ;;  %v1557_v10 = vld [vmem:[%s2022_s1 + $0x188] sm:$0xff] }
  0x1b   :  { %887 = vmatpush.bf16.msra.mxu1 %v1518_v28  ;;  %260 = vst [vmem:[#allocation1 + $0x3] ss:$9 sm:$0xff] %v33_v63  ;;  %v1551_v4 = vld [vmem:[%s2022_s1 + $0x158] sm:$0xff]  ;;  %v1566_v7 = vld [vmem:[%s2022_s1 + $0x1d0] sm:$0xff]  ;;  %v1565_v11 = vld [vmem:[%s2022_s1 + $0x1c8] sm:$0xff] }
  0x1c   :  { %875 = vmatpush.bf16.msra.mxu0 %v1509_v29  ;;  %v1550_v8 = vld [vmem:[%s2022_s1 + $0x150] sm:$0xff]  ;;  %v1549_v12 = vld [vmem:[%s2022_s1 + $0x148] sm:$0xff]  ;;  %v1540_v13 = vld [vmem:[%s2022_s1 + $0x100] sm:$0xff] }
  0x1d   :  { %901 = vmatpush.bf16.msra.mxu2 %v1525_v30  ;;  %v1556_v14 = vld [vmem:[%s2022_s1 + $0x180] sm:$0xff]  ;;  %v1579_v16 = vld [vmem:[%s2022_s1 + $0x238] sm:$0xff]  ;;  %v1578_v21 = vld [vmem:[%s2022_s1 + $0x230] sm:$0xff] }
  0x1e   :  { %914 = vmatpush.bf16.msra.mxu3 %v1533_v31  ;;  %v1564_v15 = vld [vmem:[%s2022_s1 + $0x1c0] sm:$0xff]  ;;  %v1595_v17 = vld [vmem:[%s2022_s1 + $0x2b8] sm:$0xff]  ;;  %v1594_v22 = vld [vmem:[%s2022_s1 + $0x2b0] sm:$0xff] }
  0x1f   :  { %888 = vmatpush.bf16.msra.mxu1 %v1517_v32  ;;  %v1603_v18 = vld [vmem:[%s2022_s1 + $0x2f8] sm:$0xff]  ;;  %v1548_v19 = vld [vmem:[%s2022_s1 + $0x140] sm:$0xff]  ;;  %v1602_v23 = vld [vmem:[%s2022_s1 + $0x2f0] sm:$0xff] }
  0x20   :  { %876 = vmatpush.bf16.msra.mxu0 %v1508_v33  ;;  %v1587_v20 = vld [vmem:[%s2022_s1 + $0x278] sm:$0xff]  ;;  %v1586_v24 = vld [vmem:[%s2022_s1 + $0x270] sm:$0xff]  ;;  %v1577_v25 = vld [vmem:[%s2022_s1 + $0x228] sm:$0xff] }
  0x21   :  { %902 = vmatpush.bf16.msra.mxu2 %v1524_v34  ;;  %v1593_v26 = vld [vmem:[%s2022_s1 + $0x2a8] sm:$0xff]  ;;  %v1576_v29 = vld [vmem:[%s2022_s1 + $0x220] sm:$0xff]  ;;  %v1575_v33 = vld [vmem:[%s2022_s1 + $0x218] sm:$0xff] }
  0x22   :  { %915 = vmatpush.bf16.msra.mxu3 %v1532_v35  ;;  %v1601_v27 = vld [vmem:[%s2022_s1 + $0x2e8] sm:$0xff]  ;;  %v1592_v30 = vld [vmem:[%s2022_s1 + $0x2a0] sm:$0xff]  ;;  %v1591_v34 = vld [vmem:[%s2022_s1 + $0x298] sm:$0xff] }
  0x23   :  { %889 = vmatpush.bf16.msra.mxu1 %v1516_v39  ;;  %877 = vmatmul.bf16.vlgmr.msra.gmra.mxu0 %v245_v43  ;;  %v1585_v28 = vld [vmem:[%s2022_s1 + $0x268] sm:$0xff]  ;;  %v1600_v31 = vld [vmem:[%s2022_s1 + $0x2e0] sm:$0xff]  ;;  %v1599_v35 = vld [vmem:[%s2022_s1 + $0x2d8] sm:$0xff] }
  0x24   :  { %921 = vmatpush.bf16.msrb.mxu0 %v1547_v36  ;;  %903 = vmatmul.bf16.vlgmr.msra.gmra.mxu2 %v247_v41  ;;  %v1584_v32 = vld [vmem:[%s2022_s1 + $0x260] sm:$0xff]  ;;  %v1583_v36 = vld [vmem:[%s2022_s1 + $0x258] sm:$0xff]  ;;  %v1598_v39 = vld [vmem:[%s2022_s1 + $0x2d0] sm:$0xff] }
  0x25   :  { %947 = vmatpush.bf16.msrb.mxu2 %v1563_v37  ;;  %916 = vmatmul.bf16.vlgmr.msra.gmra.mxu3 %v248_v46  ;;  %v1574_v37 = vld [vmem:[%s2022_s1 + $0x210] sm:$0xff]  ;;  %v1573_v41 = vld [vmem:[%s2022_s1 + $0x208] sm:$0xff]  ;;  %v1588_v46 = vld [vmem:[%s2022_s1 + $0x280] sm:$0xff] }
  0x26   :  { %960 = vmatpush.bf16.msrb.mxu3 %v1571_v38  ;;  %890 = vmatmul.bf16.vlgmr.msra.gmra.mxu1 %v246_v48  ;;  %v1590_v38 = vld [vmem:[%s2022_s1 + $0x290] sm:$0xff]  ;;  %v1597_v43 = vld [vmem:[%s2022_s1 + $0x2c8] sm:$0xff] }
  0x27   :  { %934 = vmatpush.bf16.msrb.mxu1 %v1555_v40  ;;  %v1582_v40 = vld [vmem:[%s2022_s1 + $0x250] sm:$0xff]  ;;  %v1605_v48 = vld [vmem:[%s2022_s1 + $0x308] sm:$0xff] }
  0x28   :  { %922 = vmatpush.bf16.msrb.mxu0 %v1546_v42  ;;  %v1589_v42 = vld [vmem:[%s2022_s1 + $0x288] sm:$0xff] }
  0x29   :  { %948 = vmatpush.bf16.msrb.mxu2 %v1562_v44  ;;  %v1581_v44 = vld [vmem:[%s2022_s1 + $0x248] sm:$0xff] }
  0x2a   :  { %961 = vmatpush.bf16.msrb.mxu3 %v1570_v45  ;;  %v1572_v45 = vld [vmem:[%s2022_s1 + $0x200] sm:$0xff] }
  0x2b   :  { %935 = vmatpush.bf16.msrb.mxu1 %v1554_v47  ;;  %v1596_v47 = vld [vmem:[%s2022_s1 + $0x2c0] sm:$0xff] }
  0x2c   :  { %923 = vmatpush.bf16.msrb.mxu0 %v1545_v49  ;;  %v1580_v49 = vld [vmem:[%s2022_s1 + $0x240] sm:$0xff] }
  0x2d   :  { %949 = vmatpush.bf16.msrb.mxu2 %v1561_v50  ;;  %v261_v50 = vld [vmem:[#allocation1] sm:$0xff] }
  0x2e   :  { %962 = vmatpush.bf16.msrb.mxu3 %v1569_v51  ;;  %v263_v51 = vld [vmem:[#allocation1 + $0x12] sm:$0xff] }
  0x2f   :  { %936 = vmatpush.bf16.msrb.mxu1 %v1553_v52  ;;  %v264_v52 = vld [vmem:[#allocation1 + $0x1b] sm:$0xff] }
  0x30   :  { %924 = vmatpush.bf16.msrb.mxu0 %v1544_v53  ;;  %v1604_v53 = vld [vmem:[%s2022_s1 + $0x300] sm:$0xff] }
  0x31   :  { %950 = vmatpush.bf16.msrb.mxu2 %v1560_v61 }
  0x32   :  { %963 = vmatpush.bf16.msrb.mxu3 %v1568_v62 }
  0x33   :  { %937 = vmatpush.bf16.msrb.mxu1 %v1552_v0  ;;  %v1609_v0 = vld [vmem:[%s2023_s2] ss:$0 sm:$0xff] }
  0x34   :  { %925 = vmatpush.bf16.msrb.mxu0 %v1543_v1 }
  0x35   :  { %951 = vmatpush.bf16.msrb.mxu2 %v1559_v2 }
  0x36   :  { %964 = vmatpush.bf16.msrb.mxu3 %v1567_v3 }
  0x37   :  { %938 = vmatpush.bf16.msrb.mxu1 %v1551_v4 }
  0x38   :  { %926 = vmatpush.bf16.msrb.mxu0 %v1542_v5 }
  0x39   :  { %952 = vmatpush.bf16.msrb.mxu2 %v1558_v6 }
  0x3a   :  { %965 = vmatpush.bf16.msrb.mxu3 %v1566_v7 }
  0x3b   :  { %939 = vmatpush.bf16.msrb.mxu1 %v1550_v8 }
  0x3c   :  { %927 = vmatpush.bf16.msrb.mxu0 %v1541_v9 }
  0x3d   :  { %953 = vmatpush.bf16.msrb.mxu2 %v1557_v10 }
  0x3e   :  { %966 = vmatpush.bf16.msrb.mxu3 %v1565_v11 }
  0x3f   :  { %940 = vmatpush.bf16.msrb.mxu1 %v1549_v12 }
  0x40   :  { %928 = vmatpush.bf16.msrb.mxu0 %v1540_v13 }
  0x41   :  { %954 = vmatpush.bf16.msrb.mxu2 %v1556_v14 }
  0x42   :  { %967 = vmatpush.bf16.msrb.mxu3 %v1564_v15 }
  0x43   :  { %941 = vmatpush.bf16.msrb.mxu1 %v1548_v19  ;;  %929 = vmatmul.bf16.vlgmr.msrb.gmra.mxu0 %v1828_v55  ;;  %v265_v55 = vld [vmem:[#allocation1 + $0x24] sm:$0xff] }
  0x44   :  { %973 = vmatpush.bf16.msra.mxu0 %v1579_v16  ;;  %955 = vmatmul.bf16.vlgmr.msrb.gmra.mxu2 %v1826_v54  ;;  %v262_v54 = vld [vmem:[#allocation1 + $0x9] sm:$0xff] }
  0x45   :  { %999 = vmatpush.bf16.msra.mxu2 %v1595_v17  ;;  %968 = vmatmul.bf16.vlgmr.msrb.gmra.mxu3 %v1836_v58 }
  0x46   :  { %1012 = vmatpush.bf16.msra.mxu3 %v1603_v18  ;;  %942 = vmatmul.bf16.vlgmr.msrb.gmra.mxu1 %v1841_v60 }
  0x47   :  { %986 = vmatpush.bf16.msra.mxu1 %v1587_v20 }
  0x48   :  { %974 = vmatpush.bf16.msra.mxu0 %v1578_v21 }
  0x49   :  { %1000 = vmatpush.bf16.msra.mxu2 %v1594_v22 }
  0x4a   :  { %1013 = vmatpush.bf16.msra.mxu3 %v1602_v23 }
  0x4b   :  { %987 = vmatpush.bf16.msra.mxu1 %v1586_v24 }
  0x4c   :  { %975 = vmatpush.bf16.msra.mxu0 %v1577_v25 }
  0x4d   :  { %1001 = vmatpush.bf16.msra.mxu2 %v1593_v26 }
  0x4e   :  { %1014 = vmatpush.bf16.msra.mxu3 %v1601_v27 }
  0x4f   :  { %988 = vmatpush.bf16.msra.mxu1 %v1585_v28 }
  0x50   :  { %976 = vmatpush.bf16.msra.mxu0 %v1576_v29 }
  0x51   :  { %1002 = vmatpush.bf16.msra.mxu2 %v1592_v30 }
  0x52   :  { %1015 = vmatpush.bf16.msra.mxu3 %v1600_v31  ;;  %v1610_v31 = vld [vmem:[%s2024_s3] ss:$0 sm:$0xff] }
  0x53   :  { %989 = vmatpush.bf16.msra.mxu1 %v1584_v32 }
  0x54   :  { %977 = vmatpush.bf16.msra.mxu0 %v1575_v33 }
  0x55   :  { %1003 = vmatpush.bf16.msra.mxu2 %v1591_v34 }
  0x56   :  { %1016 = vmatpush.bf16.msra.mxu3 %v1599_v35 }
  0x57   :  { %990 = vmatpush.bf16.msra.mxu1 %v1583_v36  ;;  %v1611_v36 = vld [vmem:[#allocation2] ss:$0 sm:$0xff] }
  0x58   :  { %978 = vmatpush.bf16.msra.mxu0 %v1574_v37 }
  0x59   :  { %1004 = vmatpush.bf16.msra.mxu2 %v1590_v38 }
  0x5a   :  { %1017 = vmatpush.bf16.msra.mxu3 %v1598_v39 }
  0x5b   :  { %991 = vmatpush.bf16.msra.mxu1 %v1582_v40 }
  0x5c   :  { %979 = vmatpush.bf16.msra.mxu0 %v1573_v41 }
  0x5d   :  { %1005 = vmatpush.bf16.msra.mxu2 %v1589_v42 }
  0x5e   :  { %1018 = vmatpush.bf16.msra.mxu3 %v1597_v43 }
  0x5f   :  { %992 = vmatpush.bf16.msra.mxu1 %v1581_v44 }
  0x60   :  { %980 = vmatpush.bf16.msra.mxu0 %v1572_v45 }
  0x61   :  { %1006 = vmatpush.bf16.msra.mxu2 %v1588_v46 }
  0x62   :  { %1019 = vmatpush.bf16.msra.mxu3 %v1596_v47 }
  0x63   :  { %993 = vmatpush.bf16.msra.mxu1 %v1580_v49  ;;  %981 = vmatmul.bf16.vlgmr.msra.gmra.mxu0 %v261_v50 }
  0x64   :  { %1031 = vmatpush.bf16.msrb.mxu0 %v1605_v48  ;;  %1007 = vmatmul.bf16.vlgmr.msra.gmra.mxu2 %v263_v51 }
  0x65   :  { %1020 = vmatmul.bf16.vlgmr.msra.gmra.mxu3 %v264_v52 }
  0x66   :  { %994 = vmatmul.bf16.vlgmr.msra.gmra.mxu1 %v262_v54 }
  0x68   :  { %1032 = vmatpush.bf16.msrb.mxu0 %v1604_v53 }
  0x73   :  { %1507 = vmatmul.msk.bf16.vlgmr.msrb.gmra.mxu0 %vm866_vm0, %v265_v55 }
  0xa0   :  { %v878_v56 = vpop.f32.mrf.mxu0 }
  0xa1   :  { %v879_v3 = vadd.f32 %v1609_v0, %v878_v56 }
  0xa3   :  { %v891_v57 = vpop.f32.mrf.mxu1 }
  0xa4   :  { %v892_v6 = vadd.f32 %v891_v57, %v879_v3 }
  0xa7   :  { %v904_v58 = vpop.f32.mrf.mxu2 }
  0xa8   :  { %v917_v59 = vpop.f32.mrf.mxu3  ;;  %v880_v60 = vpop.f32.mrf.mxu0  ;;  %v905_v9 = vadd.f32 %v904_v58, %v892_v6 }
  0xaa   :  { %v918_v12 = vadd.f32 %v917_v59, %v905_v9 }
  0xab   :  { %v893_v61 = vpop.f32.mrf.mxu1 }
  0xaf   :  { %v906_v62 = vpop.f32.mrf.mxu2 }
  0xb0   :  { %v919_v63 = vpop.f32.mrf.mxu3 }
  0xc0   :  { %v930_v1 = vpop.f32.mrf.mxu0 }
  0xc1   :  { %v931_v13 = vadd.f32 %v930_v1, %v918_v12 }
  0xc3   :  { %v943_v2 = vpop.f32.mrf.mxu1 }
  0xc4   :  { %v944_v14 = vadd.f32 %v943_v2, %v931_v13 }
  0xc7   :  { %v956_v4 = vpop.f32.mrf.mxu2 }
  0xc8   :  { %v969_v5 = vpop.f32.mrf.mxu3  ;;  %v932_v7 = vpop.f32.mrf.mxu0  ;;  %v957_v15 = vadd.f32 %v956_v4, %v944_v14 }
  0xca   :  { %v970_v18 = vadd.f32 %v969_v5, %v957_v15 }
  0xcb   :  { %v945_v8 = vpop.f32.mrf.mxu1 }
  0xcf   :  { %v958_v10 = vpop.f32.mrf.mxu2 }
  0xd0   :  { %v971_v11 = vpop.f32.mrf.mxu3 }
  0xe0   :  { %v982_v16 = vpop.f32.mrf.mxu0 }
  0xe1   :  { %v983_v19 = vadd.f32 %v982_v16, %v970_v18 }
  0xe3   :  { %v995_v17 = vpop.f32.mrf.mxu1 }
  0xe4   :  { %v996_v23 = vadd.f32 %v995_v17, %v983_v19 }
  0xe7   :  { %v1008_v20 = vpop.f32.mrf.mxu2 }
  0xe8   :  { %v1021_v21 = vpop.f32.mrf.mxu3  ;;  %v984_v22 = vpop.f32.mrf.mxu0  ;;  %v1009_v25 = vadd.f32 %v1008_v20, %v996_v23 }
  0xea   :  { %v1022_v27 = vadd.f32 %v1021_v21, %v1009_v25 }
  0xeb   :  { %v997_v24 = vpop.f32.mrf.mxu1 }
  0xef   :  { %v1010_v26 = vpop.f32.mrf.mxu2 }
  0xf0   :  { %v1023_v28 = vpop.f32.mrf.mxu3  ;;  %v1034_v29 = vpop.f32.mrf.mxu0 }
  0xf1   :  { %v1035_v30 = vadd.f32 %v1034_v29, %v1022_v27 }
  0xf3   :  { %v1038_v32 = vmax.f32 %v1035_v30, 0.0 }
  0xf5   :  { %1040 = vst.msk [vmem:[#allocation3] sm:$0xff] %vm1039_vm1, %v1038_v32  ;;  %v1045_v33 = vmul.f32 %v1610_v31, %v1038_v32 }
  0xf7   :  { %v1046_v34 = vsel %vm1039_vm1, %v1045_v33, 0.0 }
  0xf8   :  { %v1036_v35 = vpop.f32.mrf.mxu0  ;;  %1047 = vadd.xlane.f32.xlu0 %v1046_v34 }
 0x16b   :  { %v1048_v37 = vpop.xlane.xlu0 %1047 }
 0x16c   :  { %v1053_v38 = vadd.f32 %v1611_v36, %v1048_v37 }
 0x16e   :  { %1055 = vst.msk [vmem:[#allocation5] sm:$0xff] %vm1054_vm2, %v1053_v38 }
 0x16f   :  { %1059 = vsyncadd [#allocation4], 96  ;;  %s1062_s10 = sshll.u32 %s2026_s5, 4  ;;  %s1638_s11 = smov [#allocation3]   ;;  %s1063_s10 = int_to_ptr.hbm [resolvable:$true] %s1062_s10 }
 0x170   :  { %s1060_s3 = sshll.u32 %s1638_s11, 4  ;;  %s1639_s0 = smov 32   ;;  %s1061_s3 = int_to_ptr.vmem [resolvable:$true] %s1060_s3 }
 0x171   :  { %s1640_s14 = smov 2  }
 0x172   :  { %1068 = dma.vmem_to_hbm [thread:$0]  %s1061_s3, 32, %s1063_s10, [#allocation4], %s1639_s0, %s1639_s0, %s1640_s14  }
 0x175   :  { %v1087_v39 = vld [vmem:[#allocation5] sm:$0x3] }
 0x176   :  { %1088 = vst [vmem:[%s2027_s6] sm:$0x3] %v1087_v39 }
 0x177   :  { %1636 = dma.done.wait [#allocation4], 128  }
 0x178   :  { %1637 = vsyncadd [#allocation4], 4294967168 }
 0x179   :  { %1110 = vsyncpa [#allocation4], 1 }

</bundles_post_ra>
